<compile_context>
chip_gen: v7x
topology: tpu7x:2x2x1
jax: 0.10.0
libtpu: 0.0.40
codegen_flags: <defaults>
</compile_context>

<pallas_src>
import functools

import jax
import jax.numpy as jnp
import numpy as np
from jax.experimental import pallas as pl
from jax.experimental.pallas import tpu as pltpu

# ---------------------------------------------------------------------------
# Static network configuration (never traced)
# ---------------------------------------------------------------------------
NUM_CLASSES = 10
CPAD = 128            # every channel dim padded to one 128-lane vreg (lane-dense stores)
STEM_CIN = 3
STEM_CIN_PAD = 16     # sublane-aligned padding of the RGB input for the stem im2col
STEM_CH = 16
WIDTHS = (24, 56)     # TODO(synk): scaled-down; real regnety_320 = depths [2,5,12,1],
                      #             widths [232,696,1392,3712] (~145M params).
GROUP_WIDTH = 8
SE_RATIO = 0.25

BLOCK_CONFIGS = tuple(
    dict(stride=2, w_in=w_in, w_out=w_out,
         groups=w_out // GROUP_WIDTH,
         se_ch=max(1, int(w_in * SE_RATIO)))
    for w_in, w_out in zip((STEM_CH,) + WIDTHS[:-1], WIDTHS)
)


# ---------------------------------------------------------------------------
# Pallas kernels
# ---------------------------------------------------------------------------
def _matmul_scale_bias_act_kernel(a_ref, b_ref, s_ref, c_ref, o_ref, *, act):
    """o = act((a @ b) * scale + bias) — stem conv(im2col) on the MXU."""
    acc = jnp.dot(a_ref[...], b_ref[...], preferred_element_type=jnp.float32)
    acc = acc * s_ref[...] + c_ref[...]
    if act == "relu":
        acc = jnp.maximum(acc, 0.0)
    o_ref[...] = acc.astype(o_ref.dtype)


def _block_kernel(x_ref, t_ref, d_ref,
                  w1_ref, s1_ref, b1_ref,
                  w2_ref, s2_ref, b2_ref,
                  wd_ref, sd_ref, bd_ref,
                  wse1_ref, bse1_ref, wse2_ref, bse2_ref,
                  w3_ref, s3_ref, b3_ref,
                  *rest, with_head):
    """Fully fused RegNetY bottleneck block for one sample (grid over batch):

       c1  = relu(BN(x @ W1))                                    1x1 conv
       c2  = relu(BN(sum_k (T_k @ c1) @ W2_k))                   grouped 3x3, stride 2
       sc  = BN((D @ x) @ Wd)                                    projected shortcut
       g   = sigmoid(relu(mean(c2) @ Wse1 + b1) @ Wse2 + b2)     SE
       out = relu(BN((c2 * g) @ W3) + sc)
       (+ optional fused GAP + classifier head on the last block)

    T_k / D are constant 0/1 selection matrices: T_k gathers the stride-2 3x3 window
    tap k (zero rows = padding), D gathers the stride-2 spatial subsample.  Exact row
    selection on the MXU, no strided loads / relayouts required."""
    if with_head:
        wh_ref, bh_ref, o_ref = rest
    else:
        (o_ref,) = rest

    C = x_ref.shape[-1]
    HoWo = d_ref.shape[0]
    inv_hw = 1.0 / HoWo

    x = x_ref[...][0]                                      # (HW, C) bf16

    # conv1: 1x1 conv + folded BN + ReLU (f32 accumulate/epilogue)
    c1 = jnp.dot(x, w1_ref[...], preferred_element_type=jnp.float32)
    c1 = jnp.maximum(c1 * s1_ref[...] + b1_ref[...], 0.0).astype(jnp.bfloat16)

    # conv2: grouped 3x3 stride-2 conv + BN + ReLU, fully in-kernel.
    # Group structure is baked into a block-diagonal dense weight at init.
    acc2 = jnp.zeros((HoWo, C), jnp.float32)
    for k in range(9):
        tk = t_ref[k * HoWo:(k + 1) * HoWo, :]             # tap-k selection (static slice)
        win = jnp.dot(tk, c1, preferred_element_type=jnp.float32).astype(jnp.bfloat16)
        acc2 = acc2 + jnp.dot(win, w2_ref[k * C:(k + 1) * C, :],
                              preferred_element_type=jnp.float32)
    c2 = jnp.maximum(acc2 * s2_ref[...] + b2_ref[...], 0.0).astype(jnp.bfloat16)

    # projected shortcut: stride-2 subsample (selection matmul) + 1x1 conv + folded BN
    xs = jnp.dot(d_ref[...], x, preferred_element_type=jnp.float32).astype(jnp.bfloat16)
    short = (jnp.dot(xs, wd_ref[...], preferred_element_type=jnp.float32)
             * sd_ref[...] + bd_ref[...])

    # SE: GAP -> fc1 + ReLU -> fc2 + sigmoid -> gate
    # TODO(synk): at larger batch, hoist the squeeze into a batched (N, C) matmul
    # instead of per-sample 1-row MXU matmuls.
    pooled = jnp.sum(c2.astype(jnp.float32), axis=0, keepdims=True) * inv_hw
    h = jnp.dot(pooled.astype(jnp.bfloat16), wse1_ref[...],
                preferred_element_type=jnp.float32) + bse1_ref[...]
    h = jnp.maximum(h, 0.0)
    g = jnp.dot(h.astype(jnp.bfloat16), wse2_ref[...],
                preferred_element_type=jnp.float32) + bse2_ref[...]
    gate = jax.nn.sigmoid(g)                               # (1, C) f32 (EUP)
    xg = (c2.astype(jnp.float32) * gate).astype(jnp.bfloat16)

    # conv3: 1x1 conv + folded BN + residual + ReLU
    out = (jnp.dot(xg, w3_ref[...], preferred_element_type=jnp.float32)
           * s3_ref[...] + b3_ref[...] + short)
    out = jnp.maximum(out, 0.0)

    if with_head:
        # fused global average pool + classifier Linear (last block only)
        pooled2 = jnp.sum(out, axis=0, keepdims=True) * inv_hw
        logits = jnp.dot(pooled2.astype(jnp.bfloat16), wh_ref[...],
                         preferred_element_type=jnp.float32) + bh_ref[...]
        o_ref[...] = logits[None]                          # (1, 1, CPAD) f32
    else:
        o_ref[...] = out[None].astype(o_ref.dtype)         # (1, HoWo, CPAD) bf16


# ---------------------------------------------------------------------------
# pallas_call wrappers
# ---------------------------------------------------------------------------
def matmul_pallas(a, b, scale, bias, act):
    """(M, K) bf16 @ (K, Co) bf16 with f32 scale/bias/act epilogue, M-tiled grid."""
    M, K = a.shape
    K2, Co = b.shape
    assert K == K2
    tm = M
    for cand in (1024, 512, 256, 128):
        if M % cand == 0 and M // cand >= 2:   # keep grid >= 2 so both v7x TCs get work
            tm = cand
            break
    kern = functools.partial(_matmul_scale_bias_act_kernel, act=act)
    # TODO(synk): at real regnety_320 widths, add K/N grid axes with an f32 VMEM
    # accumulator (reduction axis last, "arbitrary") instead of a whole-(K,Co) weight.
    return pl.pallas_call(
        kern,
        out_shape=jax.ShapeDtypeStruct((M, Co), jnp.bfloat16),
        grid=(M // tm,),
        in_specs=[
            pl.BlockSpec((tm, K), lambda i: (i, 0)),
            pl.BlockSpec((K, Co), lambda i: (0, 0)),
            pl.BlockSpec((1, Co), lambda i: (0, 0)),
            pl.BlockSpec((1, Co), lambda i: (0, 0)),
        ],
        out_specs=pl.BlockSpec((tm, Co), lambda i: (i, 0)),
        compiler_params=pltpu.CompilerParams(dimension_semantics=("parallel",)),
    )(a, b, scale, bias)


def block_pallas(x, tmat, dmat, bp, head=None):
    """One fused pallas_call per Y-block; grid over the batch dimension."""
    N, HW, C = x.shape
    HoWo = dmat.shape[0]
    with_head = head is not None

    operands = [x, tmat, dmat,
                bp["conv1"]["w"], bp["conv1"]["scale"], bp["conv1"]["bias"],
                bp["conv2"]["w"], bp["conv2"]["scale"], bp["conv2"]["bias"],
                bp["down"]["w"], bp["down"]["scale"], bp["down"]["bias"],
                bp["se_fc1"]["w"], bp["se_fc1"]["bias"],
                bp["se_fc2"]["w"], bp["se_fc2"]["bias"],
                bp["conv3"]["w"], bp["conv3"]["scale"], bp["conv3"]["bias"]]
    if with_head:
        operands += [head["w"], head["bias"]]

    in_specs = [pl.BlockSpec((1, HW, C), lambda n: (n, 0, 0))]
    in_specs += [pl.BlockSpec(op.shape, lambda n: (0, 0)) for op in operands[1:]]

    if with_head:
        out_shape = jax.ShapeDtypeStruct((N, 1, CPAD), jnp.float32)
        out_specs = pl.BlockSpec((1, 1, CPAD), lambda n: (n, 0, 0))
    else:
        out_shape = jax.ShapeDtypeStruct((N, HoWo, CPAD), jnp.bfloat16)
        out_specs = pl.BlockSpec((1, HoWo, CPAD), lambda n: (n, 0, 0))

    kern = functools.partial(_block_kernel, with_head=with_head)
    return pl.pallas_call(
        kern,
        out_shape=out_shape,
        grid=(N,),
        in_specs=in_specs,
        out_specs=out_specs,
        compiler_params=pltpu.CompilerParams(dimension_semantics=("parallel",)),
    )(*operands)


# ---------------------------------------------------------------------------
# Structural constants: stride-2 3x3 tap-selection and shortcut-subsample matrices
# ---------------------------------------------------------------------------
def _stride2_select_mats(H, W):
    """T: (9*Ho*Wo, H*W) 0/1 bf16, tap k=kh*3+kw gathers padded window rows of the
    activation (all-zero rows encode padding).  D: (Ho*Wo, H*W) stride-2 subsample."""
    Ho = (H - 1) // 2 + 1
    Wo = (W - 1) // 2 + 1
    T = np.zeros((9, Ho * Wo, H * W), np.float32)
    for kh in range(3):
        for kw in range(3):
            k = kh * 3 + kw
            for ho in range(Ho):
                for wo in range(Wo):
                    hi = 2 * ho + kh - 1
                    wi = 2 * wo + kw - 1
                    if 0 <= hi < H and 0 <= wi < W:
                        T[k, ho * Wo + wo, hi * W + wi] = 1.0
    D = np.zeros((Ho * Wo, H * W), np.float32)
    for ho in range(Ho):
        for wo in range(Wo):
            D[ho * Wo + wo, (2 * ho) * W + 2 * wo] = 1.0
    return (jnp.asarray(T.reshape(9 * Ho * Wo, H * W), jnp.bfloat16),
            jnp.asarray(D, jnp.bfloat16), Ho, Wo)


def im2col(x, k, stride, pad):
    """Stem-only (Cin=16, ~0.15 MB): (N, H, W, C) -> (N*Ho*Wo, k*k*C), (kh, kw, C) order."""
    N, H, W, C = x.shape
    xp = jnp.pad(x, ((0, 0), (pad, pad), (pad, pad), (0, 0)))
    Ho = (H + 2 * pad - k) // stride + 1
    Wo = (W + 2 * pad - k) // stride + 1
    cols = []
    for i in range(k):
        for j in range(k):
            cols.append(xp[:, i:i + stride * (Ho - 1) + 1:stride,
                              j:j + stride * (Wo - 1) + 1:stride, :])
    cols = jnp.concatenate(cols, axis=-1)
    return cols.reshape(N * Ho * Wo, k * k * C), Ho, Wo


# ---------------------------------------------------------------------------
# RegNetY-style forward (all hot-path compute inside the Pallas kernels above)
# ---------------------------------------------------------------------------
def regnet_forward(params, x_nchw):
    # PyTorch NCHW -> NHWC; pad RGB channels to a sublane-aligned width.
    x = jnp.transpose(x_nchw, (0, 2, 3, 1))
    x = jnp.pad(x, ((0, 0), (0, 0), (0, 0), (0, STEM_CIN_PAD - x.shape[-1])))
    x = x.astype(jnp.bfloat16)
    N = x.shape[0]

    # stem: 3x3 stride-2 conv-BN-ReLU (im2col on the tiny 16-channel input)
    cols, H, W = im2col(x, 3, 2, 1)
    feat = matmul_pallas(cols, params["stem"]["w"], params["stem"]["scale"],
                         params["stem"]["bias"], "relu").reshape(N, H * W, CPAD)

    nblocks = len(BLOCK_CONFIGS)
    for i, bp in enumerate(params["stages"]):
        tmat, dmat, Ho, Wo = _stride2_select_mats(H, W)
        last = (i == nblocks - 1)
        feat = block_pallas(feat, tmat, dmat, bp,
                            head=params["head"] if last else None)
        H, W = Ho, Wo

    # last block already fused GAP + head; drop padded class lanes
    return feat[:, 0, :NUM_CLASSES]


# ---------------------------------------------------------------------------
# Deterministic synthetic parameters (folded BN, lane-padded, bf16 matmul weights)
# ---------------------------------------------------------------------------
def _fold_bn(key, cout):
    kg, kb = jax.random.split(key)
    gamma = 1.0 + 0.1 * jax.random.normal(kg, (cout,), jnp.float32)
    beta = 0.1 * jax.random.normal(kb, (cout,), jnp.float32)
    mean = jnp.zeros((cout,), jnp.float32)
    var = jnp.ones((cout,), jnp.float32)
    scale = gamma / jnp.sqrt(var + 1e-5)
    bias = beta - mean * scale
    return scale, bias


def _init_conv_bn(key, k, cin, cout, *, groups=1, cin_pad=CPAD, cout_pad=CPAD):
    """Folded conv-BN in im2col layout: w (k*k*cin_pad, cout_pad) bf16, scale/bias f32.

    Grouped convs are expanded to a block-diagonal dense weight so they run as
    lane-dense MXU matmuls.  Padded lanes get zero weights / scale / bias so they
    stay exactly zero through the network."""
    kw, kbn = jax.random.split(key)
    cg_in = cin // groups
    fan_in = k * k * cg_in
    w = jax.random.normal(kw, (k, k, cg_in, cout), jnp.float32) / np.sqrt(fan_in)
    if groups > 1:
        cg_out = cout // groups
        dense = jnp.zeros((k, k, cin, cout), jnp.float32)
        for g in range(groups):
            dense = dense.at[:, :,
                             g * cg_in:(g + 1) * cg_in,
                             g * cg_out:(g + 1) * cg_out].set(
                w[:, :, :, g * cg_out:(g + 1) * cg_out])
        w = dense
    scale, bias = _fold_bn(kbn, cout)
    w = jnp.pad(w, ((0, 0), (0, 0), (0, cin_pad - cin), (0, cout_pad - cout)))
    w = w.reshape(k * k * cin_pad, cout_pad).astype(jnp.bfloat16)
    scale = jnp.pad(scale, (0, cout_pad - cout)).reshape(1, cout_pad)
    bias = jnp.pad(bias, (0, cout_pad - cout)).reshape(1, cout_pad)
    return {"w": w, "scale": scale, "bias": bias}


def _init_linear(key, cin, cout, *, cin_pad=CPAD, cout_pad=CPAD):
    kw, kb = jax.random.split(key)
    w = jax.random.normal(kw, (cin, cout), jnp.float32) / np.sqrt(cin)
    b = 0.1 * jax.random.normal(kb, (cout,), jnp.float32)
    w = jnp.pad(w, ((0, cin_pad - cin), (0, cout_pad - cout))).astype(jnp.bfloat16)
    b = jnp.pad(b, (0, cout_pad - cout)).reshape(1, cout_pad).astype(jnp.float32)
    return {"w": w, "bias": b}


def init_params(key):
    keys = iter(jax.random.split(key, 64))
    params = {"stem": _init_conv_bn(next(keys), 3, STEM_CIN, STEM_CH,
                                    cin_pad=STEM_CIN_PAD)}
    stages = []
    for cfg in BLOCK_CONFIGS:
        block = {
            "conv1": _init_conv_bn(next(keys), 1, cfg["w_in"], cfg["w_out"]),
            "conv2": _init_conv_bn(next(keys), 3, cfg["w_out"], cfg["w_out"],
                                   groups=cfg["groups"]),
            "se_fc1": _init_linear(next(keys), cfg["w_out"], cfg["se_ch"]),
            "se_fc2": _init_linear(next(keys), cfg["se_ch"], cfg["w_out"]),
            "conv3": _init_conv_bn(next(keys), 1, cfg["w_out"], cfg["w_out"]),
            "down": _init_conv_bn(next(keys), 1, cfg["w_in"], cfg["w_out"]),
        }
        stages.append(block)
    params["stages"] = stages
    params["head"] = _init_linear(next(keys), WIDTHS[-1], NUM_CLASSES)
    return params


# ---------------------------------------------------------------------------
if __name__ == "__main__":
    key = jax.random.PRNGKey(0)
    pkey, xkey = jax.random.split(key)
    params = init_params(pkey)

    # PyTorch-convention NCHW input: batch=2, channels=3, spatial=32x32.
    x = jax.random.normal(xkey, (2, 3, 32, 32), jnp.float32)

    logits = jax.jit(regnet_forward)(params, x)
    logits = jax.block_until_ready(logits)
    assert logits.shape == (2, NUM_CLASSES), logits.shape
    assert bool(jnp.all(jnp.isfinite(logits)))
    print("KERNEL_OK")
</pallas_src>

<mosaic_0001>
module attributes {stable_mosaic.version = 11 : i64} {
  func.func @_matmul_scale_bias_act_kernel(%arg0: i32, %arg1: memref<256x144xbf16, #tpu.memory_space<vmem>>, %arg2: memref<144x128xbf16, #tpu.memory_space<vmem>>, %arg3: memref<1x128xf32, #tpu.memory_space<vmem>>, %arg4: memref<1x128xf32, #tpu.memory_space<vmem>>, %arg5: memref<256x128xbf16, #tpu.memory_space<vmem>>) attributes {dimension_semantics = [#tpu.dimension_semantics<parallel>], iteration_bounds = array<i64: 2>, scalar_prefetch = 0 : i64, scratch_operands = 0 : i64, tpu.core_type = #tpu.core_type<tc>, window_params = [{transform_indices = @transform_0, window_bounds = array<i64: 256, 144>}, {pipeline_mode = #tpu.pipeline_mode<synchronous>, transform_indices = @transform_1, window_bounds = array<i64: 144, 128>}, {pipeline_mode = #tpu.pipeline_mode<synchronous>, transform_indices = @transform_2, window_bounds = array<i64: 1, 128>}, {pipeline_mode = #tpu.pipeline_mode<synchronous>, transform_indices = @transform_3, window_bounds = array<i64: 1, 128>}, {transform_indices = @transform_4, window_bounds = array<i64: 256, 128>}]} {
    %c0 = arith.constant 0 : index
    %c0_0 = arith.constant 0 : index
    %0 = vector.load %arg1[%c0, %c0_0] : memref<256x144xbf16, #tpu.memory_space<vmem>>, vector<256x144xbf16>
    %c0_1 = arith.constant 0 : index
    %c0_2 = arith.constant 0 : index
    %1 = vector.load %arg2[%c0_1, %c0_2] : memref<144x128xbf16, #tpu.memory_space<vmem>>, vector<144x128xbf16>
    %cst = arith.constant dense<0.000000e+00> : vector<256x128xf32>
    %2 = tpu.matmul %0, %1, %cst {dimension_numbers = #tpu.dot_dimension_numbers<[1], [0], [0], [1], [0, 0, 1, 1], [], []>} : vector<256x144xbf16>, vector<144x128xbf16>, vector<256x128xf32> -> vector<256x128xf32>
    %c0_3 = arith.constant 0 : index
    %c0_4 = arith.constant 0 : index
    %3 = vector.load %arg3[%c0_3, %c0_4] : memref<1x128xf32, #tpu.memory_space<vmem>>, vector<1x128xf32>
    %4 = vector.broadcast %3 : vector<1x128xf32> to vector<256x128xf32>
    %5 = arith.mulf %2, %4 : vector<256x128xf32>
    %c0_5 = arith.constant 0 : index
    %c0_6 = arith.constant 0 : index
    %6 = vector.load %arg4[%c0_5, %c0_6] : memref<1x128xf32, #tpu.memory_space<vmem>>, vector<1x128xf32>
    %7 = vector.broadcast %6 : vector<1x128xf32> to vector<256x128xf32>
    %8 = arith.addf %5, %7 : vector<256x128xf32>
    %cst_7 = arith.constant 0.000000e+00 : f32
    %9 = vector.broadcast %cst_7 : f32 to vector<256x128xf32>
    %10 = arith.maximumf %8, %9 : vector<256x128xf32>
    %11 = arith.truncf %10 : vector<256x128xf32> to vector<256x128xbf16>
    %c0_8 = arith.constant 0 : index
    %c0_9 = arith.constant 0 : index
    %12 = vector.load %arg5[%c0_8, %c0_9] : memref<256x128xbf16, #tpu.memory_space<vmem>>, vector<256x128xbf16>
    tpu.vector_store %arg5[%c0_8, %c0_9], %11 {strides = array<i32>} : memref<256x128xbf16, #tpu.memory_space<vmem>>, vector<256x128xbf16>,
    return
  }
  func.func @transform_0(%arg0: i32) -> (i32, i32) {
    %c0_i32 = arith.constant 0 : i32
    %c0_i32_0 = arith.constant 0 : i32
    return %arg0, %c0_i32 : i32, i32
  }
  func.func @transform_1(%arg0: i32) -> (i32, i32) {
    %c0_i32 = arith.constant 0 : i32
    %c0_i32_0 = arith.constant 0 : i32
    %c0_i32_1 = arith.constant 0 : i32
    return %c0_i32, %c0_i32_0 : i32, i32
  }
  func.func @transform_2(%arg0: i32) -> (i32, i32) {
    %c0_i32 = arith.constant 0 : i32
    %c0_i32_0 = arith.constant 0 : i32
    %c0_i32_1 = arith.constant 0 : i32
    return %c0_i32, %c0_i32_0 : i32, i32
  }
  func.func @transform_3(%arg0: i32) -> (i32, i32) {
    %c0_i32 = arith.constant 0 : i32
    %c0_i32_0 = arith.constant 0 : i32
    %c0_i32_1 = arith.constant 0 : i32
    return %c0_i32, %c0_i32_0 : i32, i32
  }
  func.func @transform_4(%arg0: i32) -> (i32, i32) {
    %c0_i32 = arith.constant 0 : i32
    %c0_i32_0 = arith.constant 0 : i32
    return %arg0, %c0_i32 : i32, i32
  }
}

module attributes {stable_mosaic.version = 11 : i64} {
  func.func @_block_kernel(%arg0: i32, %arg1: memref<1x256x128xbf16, #tpu.memory_space<vmem>>, %arg2: memref<576x256xbf16, #tpu.memory_space<vmem>>, %arg3: memref<64x256xbf16, #tpu.memory_space<vmem>>, %arg4: memref<128x128xbf16, #tpu.memory_space<vmem>>, %arg5: memref<1x128xf32, #tpu.memory_space<vmem>>, %arg6: memref<1x128xf32, #tpu.memory_space<vmem>>, %arg7: memref<1152x128xbf16, #tpu.memory_space<vmem>>, %arg8: memref<1x128xf32, #tpu.memory_space<vmem>>, %arg9: memref<1x128xf32, #tpu.memory_space<vmem>>, %arg10: memref<128x128xbf16, #tpu.memory_space<vmem>>, %arg11: memref<1x128xf32, #tpu.memory_space<vmem>>, %arg12: memref<1x128xf32, #tpu.memory_space<vmem>>, %arg13: memref<128x128xbf16, #tpu.memory_space<vmem>>, %arg14: memref<1x128xf32, #tpu.memory_space<vmem>>, %arg15: memref<128x128xbf16, #tpu.memory_space<vmem>>, %arg16: memref<1x128xf32, #tpu.memory_space<vmem>>, %arg17: memref<128x128xbf16, #tpu.memory_space<vmem>>, %arg18: memref<1x128xf32, #tpu.memory_space<vmem>>, %arg19: memref<1x128xf32, #tpu.memory_space<vmem>>, %arg20: memref<1x64x128xbf16, #tpu.memory_space<vmem>>) attributes {dimension_semantics = [#tpu.dimension_semantics<parallel>], iteration_bounds = array<i64: 2>, scalar_prefetch = 0 : i64, scratch_operands = 0 : i64, tpu.core_type = #tpu.core_type<tc>, window_params = [{transform_indices = @transform_0, window_bounds = array<i64: 1, 256, 128>}, {pipeline_mode = #tpu.pipeline_mode<synchronous>, transform_indices = @transform_1, window_bounds = array<i64: 576, 256>}, {pipeline_mode = #tpu.pipeline_mode<synchronous>, transform_indices = @transform_2, window_bounds = array<i64: 64, 256>}, {pipeline_mode = #tpu.pipeline_mode<synchronous>, transform_indices = @transform_3, window_bounds = array<i64: 128, 128>}, {pipeline_mode = #tpu.pipeline_mode<synchronous>, transform_indices = @transform_4, window_bounds = array<i64: 1, 128>}, {pipeline_mode = #tpu.pipeline_mode<synchronous>, transform_indices = @transform_5, window_bounds = array<i64: 1, 128>}, {pipeline_mode = #tpu.pipeline_mode<synchronous>, transform_indices = @transform_6, window_bounds = array<i64: 1152, 128>}, {pipeline_mode = #tpu.pipeline_mode<synchronous>, transform_indices = @transform_7, window_bounds = array<i64: 1, 128>}, {pipeline_mode = #tpu.pipeline_mode<synchronous>, transform_indices = @transform_8, window_bounds = array<i64: 1, 128>}, {pipeline_mode = #tpu.pipeline_mode<synchronous>, transform_indices = @transform_9, window_bounds = array<i64: 128, 128>}, {pipeline_mode = #tpu.pipeline_mode<synchronous>, transform_indices = @transform_10, window_bounds = array<i64: 1, 128>}, {pipeline_mode = #tpu.pipeline_mode<synchronous>, transform_indices = @transform_11, window_bounds = array<i64: 1, 128>}, {pipeline_mode = #tpu.pipeline_mode<synchronous>, transform_indices = @transform_12, window_bounds = array<i64: 128, 128>}, {pipeline_mode = #tpu.pipeline_mode<synchronous>, transform_indices = @transform_13, window_bounds = array<i64: 1, 128>}, {pipeline_mode = #tpu.pipeline_mode<synchronous>, transform_indices = @transform_14, window_bounds = array<i64: 128, 128>}, {pipeline_mode = #tpu.pipeline_mode<synchronous>, transform_indices = @transform_15, window_bounds = array<i64: 1, 128>}, {pipeline_mode = #tpu.pipeline_mode<synchronous>, transform_indices = @transform_16, window_bounds = array<i64: 128, 128>}, {pipeline_mode = #tpu.pipeline_mode<synchronous>, transform_indices = @transform_17, window_bounds = array<i64: 1, 128>}, {pipeline_mode = #tpu.pipeline_mode<synchronous>, transform_indices = @transform_18, window_bounds = array<i64: 1, 128>}, {transform_indices = @transform_19, window_bounds = array<i64: 1, 64, 128>}]} {
    %c0 = arith.constant 0 : index
    %c0_0 = arith.constant 0 : index
    %c0_1 = arith.constant 0 : index
    %0 = vector.load %arg1[%c0, %c0_0, %c0_1] : memref<1x256x128xbf16, #tpu.memory_space<vmem>>, vector<1x256x128xbf16>
    %1 = vector.shape_cast %0 : vector<1x256x128xbf16> to vector<256x128xbf16>
    %c0_2 = arith.constant 0 : index
    %c0_3 = arith.constant 0 : index
    %2 = vector.load %arg4[%c0_2, %c0_3] : memref<128x128xbf16, #tpu.memory_space<vmem>>, vector<128x128xbf16>
    %cst = arith.constant dense<0.000000e+00> : vector<256x128xf32>
    %3 = tpu.matmul %1, %2, %cst {dimension_numbers = #tpu.dot_dimension_numbers<[1], [0], [0], [1], [0, 0, 1, 1], [], []>} : vector<256x128xbf16>, vector<128x128xbf16>, vector<256x128xf32> -> vector<256x128xf32>
    %c0_4 = arith.constant 0 : index
    %c0_5 = arith.constant 0 : index
    %4 = vector.load %arg5[%c0_4, %c0_5] : memref<1x128xf32, #tpu.memory_space<vmem>>, vector<1x128xf32>
    %5 = vector.broadcast %4 : vector<1x128xf32> to vector<256x128xf32>
    %6 = arith.mulf %3, %5 : vector<256x128xf32>
    %c0_6 = arith.constant 0 : index
    %c0_7 = arith.constant 0 : index
    %7 = vector.load %arg6[%c0_6, %c0_7] : memref<1x128xf32, #tpu.memory_space<vmem>>, vector<1x128xf32>
    %8 = vector.broadcast %7 : vector<1x128xf32> to vector<256x128xf32>
    %9 = arith.addf %6, %8 : vector<256x128xf32>
    %cst_8 = arith.constant 0.000000e+00 : f32
    %10 = vector.broadcast %cst_8 : f32 to vector<256x128xf32>
    %11 = arith.maximumf %9, %10 : vector<256x128xf32>
    %12 = arith.truncf %11 : vector<256x128xf32> to vector<256x128xbf16>
    %cst_9 = arith.constant 0.000000e+00 : f32
    %13 = vector.broadcast %cst_9 : f32 to vector<64x128xf32>
    %c0_10 = arith.constant 0 : index
    %c0_11 = arith.constant 0 : index
    %14 = vector.load %arg2[%c0_10, %c0_11] : memref<576x256xbf16, #tpu.memory_space<vmem>>, vector<64x256xbf16>
    %cst_12 = arith.constant dense<0.000000e+00> : vector<64x128xf32>
    %15 = tpu.matmul %14, %12, %cst_12 {dimension_numbers = #tpu.dot_dimension_numbers<[1], [0], [0], [1], [0, 0, 1, 1], [], []>} : vector<64x256xbf16>, vector<256x128xbf16>, vector<64x128xf32> -> vector<64x128xf32>
    %16 = arith.truncf %15 : vector<64x128xf32> to vector<64x128xbf16>
    %c0_13 = arith.constant 0 : index
    %c0_14 = arith.constant 0 : index
    %17 = vector.load %arg7[%c0_13, %c0_14] : memref<1152x128xbf16, #tpu.memory_space<vmem>>, vector<128x128xbf16>
    %cst_15 = arith.constant dense<0.000000e+00> : vector<64x128xf32>
    %18 = tpu.matmul %16, %17, %cst_15 {dimension_numbers = #tpu.dot_dimension_numbers<[1], [0], [0], [1], [0, 0, 1, 1], [], []>} : vector<64x128xbf16>, vector<128x128xbf16>, vector<64x128xf32> -> vector<64x128xf32>
    %19 = arith.addf %13, %18 : vector<64x128xf32>
    %c64 = arith.constant 64 : index
    %c0_16 = arith.constant 0 : index
    %20 = vector.load %arg2[%c64, %c0_16] : memref<576x256xbf16, #tpu.memory_space<vmem>>, vector<64x256xbf16>
    %cst_17 = arith.constant dense<0.000000e+00> : vector<64x128xf32>
    %21 = tpu.matmul %20, %12, %cst_17 {dimension_numbers = #tpu.dot_dimension_numbers<[1], [0], [0], [1], [0, 0, 1, 1], [], []>} : vector<64x256xbf16>, vector<256x128xbf16>, vector<64x128xf32> -> vector<64x128xf32>
    %22 = arith.truncf %21 : vector<64x128xf32> to vector<64x128xbf16>
    %c128 = arith.constant 128 : index
    %c0_18 = arith.constant 0 : index
    %23 = vector.load %arg7[%c128, %c0_18] : memref<1152x128xbf16, #tpu.memory_space<vmem>>, vector<128x128xbf16>
    %cst_19 = arith.constant dense<0.000000e+00> : vector<64x128xf32>
    %24 = tpu.matmul %22, %23, %cst_19 {dimension_numbers = #tpu.dot_dimension_numbers<[1], [0], [0], [1], [0, 0, 1, 1], [], []>} : vector<64x128xbf16>, vector<128x128xbf16>, vector<64x128xf32> -> vector<64x128xf32>
    %25 = arith.addf %19, %24 : vector<64x128xf32>
    %c128_20 = arith.constant 128 : index
    %c0_21 = arith.constant 0 : index
    %26 = vector.load %arg2[%c128_20, %c0_21] : memref<576x256xbf16, #tpu.memory_space<vmem>>, vector<64x256xbf16>
    %cst_22 = arith.constant dense<0.000000e+00> : vector<64x128xf32>
    %27 = tpu.matmul %26, %12, %cst_22 {dimension_numbers = #tpu.dot_dimension_numbers<[1], [0], [0], [1], [0, 0, 1, 1], [], []>} : vector<64x256xbf16>, vector<256x128xbf16>, vector<64x128xf32> -> vector<64x128xf32>
    %28 = arith.truncf %27 : vector<64x128xf32> to vector<64x128xbf16>
    %c256 = arith.constant 256 : index
    %c0_23 = arith.constant 0 : index
    %29 = vector.load %arg7[%c256, %c0_23] : memref<1152x128xbf16, #tpu.memory_space<vmem>>, vector<128x128xbf16>
    %cst_24 = arith.constant dense<0.000000e+00> : vector<64x128xf32>
    %30 = tpu.matmul %28, %29, %cst_24 {dimension_numbers = #tpu.dot_dimension_numbers<[1], [0], [0], [1], [0, 0, 1, 1], [], []>} : vector<64x128xbf16>, vector<128x128xbf16>, vector<64x128xf32> -> vector<64x128xf32>
    %31 = arith.addf %25, %30 : vector<64x128xf32>
    %c192 = arith.constant 192 : index
    %c0_25 = arith.constant 0 : index
    %32 = vector.load %arg2[%c192, %c0_25] : memref<576x256xbf16, #tpu.memory_space<vmem>>, vector<64x256xbf16>
    %cst_26 = arith.constant dense<0.000000e+00> : vector<64x128xf32>
    %33 = tpu.matmul %32, %12, %cst_26 {dimension_numbers = #tpu.dot_dimension_numbers<[1], [0], [0], [1], [0, 0, 1, 1], [], []>} : vector<64x256xbf16>, vector<256x128xbf16>, vector<64x128xf32> -> vector<64x128xf32>
    %34 = arith.truncf %33 : vector<64x128xf32> to vector<64x128xbf16>
    %c384 = arith.constant 384 : index
    %c0_27 = arith.constant 0 : index
    %35 = vector.load %arg7[%c384, %c0_27] : memref<1152x128xbf16, #tpu.memory_space<vmem>>, vector<128x128xbf16>
    %cst_28 = arith.constant dense<0.000000e+00> : vector<64x128xf32>
    %36 = tpu.matmul %34, %35, %cst_28 {dimension_numbers = #tpu.dot_dimension_numbers<[1], [0], [0], [1], [0, 0, 1, 1], [], []>} : vector<64x128xbf16>, vector<128x128xbf16>, vector<64x128xf32> -> vector<64x128xf32>
    %37 = arith.addf %31, %36 : vector<64x128xf32>
    %c256_29 = arith.constant 256 : index
    %c0_30 = arith.constant 0 : index
    %38 = vector.load %arg2[%c256_29, %c0_30] : memref<576x256xbf16, #tpu.memory_space<vmem>>, vector<64x256xbf16>
    %cst_31 = arith.constant dense<0.000000e+00> : vector<64x128xf32>
    %39 = tpu.matmul %38, %12, %cst_31 {dimension_numbers = #tpu.dot_dimension_numbers<[1], [0], [0], [1], [0, 0, 1, 1], [], []>} : vector<64x256xbf16>, vector<256x128xbf16>, vector<64x128xf32> -> vector<64x128xf32>
    %40 = arith.truncf %39 : vector<64x128xf32> to vector<64x128xbf16>
    %c512 = arith.constant 512 : index
    %c0_32 = arith.constant 0 : index
    %41 = vector.load %arg7[%c512, %c0_32] : memref<1152x128xbf16, #tpu.memory_space<vmem>>, vector<128x128xbf16>
    %cst_33 = arith.constant dense<0.000000e+00> : vector<64x128xf32>
    %42 = tpu.matmul %40, %41, %cst_33 {dimension_numbers = #tpu.dot_dimension_numbers<[1], [0], [0], [1], [0, 0, 1, 1], [], []>} : vector<64x128xbf16>, vector<128x128xbf16>, vector<64x128xf32> -> vector<64x128xf32>
    %43 = arith.addf %37, %42 : vector<64x128xf32>
    %c320 = arith.constant 320 : index
    %c0_34 = arith.constant 0 : index
    %44 = vector.load %arg2[%c320, %c0_34] : memref<576x256xbf16, #tpu.memory_space<vmem>>, vector<64x256xbf16>
    %cst_35 = arith.constant dense<0.000000e+00> : vector<64x128xf32>
    %45 = tpu.matmul %44, %12, %cst_35 {dimension_numbers = #tpu.dot_dimension_numbers<[1], [0], [0], [1], [0, 0, 1, 1], [], []>} : vector<64x256xbf16>, vector<256x128xbf16>, vector<64x128xf32> -> vector<64x128xf32>
    %46 = arith.truncf %45 : vector<64x128xf32> to vector<64x128xbf16>
    %c640 = arith.constant 640 : index
    %c0_36 = arith.constant 0 : index
    %47 = vector.load %arg7[%c640, %c0_36] : memref<1152x128xbf16, #tpu.memory_space<vmem>>, vector<128x128xbf16>
    %cst_37 = arith.constant dense<0.000000e+00> : vector<64x128xf32>
    %48 = tpu.matmul %46, %47, %cst_37 {dimension_numbers = #tpu.dot_dimension_numbers<[1], [0], [0], [1], [0, 0, 1, 1], [], []>} : vector<64x128xbf16>, vector<128x128xbf16>, vector<64x128xf32> -> vector<64x128xf32>
    %49 = arith.addf %43, %48 : vector<64x128xf32>
    %c384_38 = arith.constant 384 : index
    %c0_39 = arith.constant 0 : index
    %50 = vector.load %arg2[%c384_38, %c0_39] : memref<576x256xbf16, #tpu.memory_space<vmem>>, vector<64x256xbf16>
    %cst_40 = arith.constant dense<0.000000e+00> : vector<64x128xf32>
    %51 = tpu.matmul %50, %12, %cst_40 {dimension_numbers = #tpu.dot_dimension_numbers<[1], [0], [0], [1], [0, 0, 1, 1], [], []>} : vector<64x256xbf16>, vector<256x128xbf16>, vector<64x128xf32> -> vector<64x128xf32>
    %52 = arith.truncf %51 : vector<64x128xf32> to vector<64x128xbf16>
    %c768 = arith.constant 768 : index
    %c0_41 = arith.constant 0 : index
    %53 = vector.load %arg7[%c768, %c0_41] : memref<1152x128xbf16, #tpu.memory_space<vmem>>, vector<128x128xbf16>
    %cst_42 = arith.constant dense<0.000000e+00> : vector<64x128xf32>
    %54 = tpu.matmul %52, %53, %cst_42 {dimension_numbers = #tpu.dot_dimension_numbers<[1], [0], [0], [1], [0, 0, 1, 1], [], []>} : vector<64x128xbf16>, vector<128x128xbf16>, vector<64x128xf32> -> vector<64x128xf32>
    %55 = arith.addf %49, %54 : vector<64x128xf32>
    %c448 = arith.constant 448 : index
    %c0_43 = arith.constant 0 : index
    %56 = vector.load %arg2[%c448, %c0_43] : memref<576x256xbf16, #tpu.memory_space<vmem>>, vector<64x256xbf16>
    %cst_44 = arith.constant dense<0.000000e+00> : vector<64x128xf32>
    %57 = tpu.matmul %56, %12, %cst_44 {dimension_numbers = #tpu.dot_dimension_numbers<[1], [0], [0], [1], [0, 0, 1, 1], [], []>} : vector<64x256xbf16>, vector<256x128xbf16>, vector<64x128xf32> -> vector<64x128xf32>
    %58 = arith.truncf %57 : vector<64x128xf32> to vector<64x128xbf16>
    %c896 = arith.constant 896 : index
    %c0_45 = arith.constant 0 : index
    %59 = vector.load %arg7[%c896, %c0_45] : memref<1152x128xbf16, #tpu.memory_space<vmem>>, vector<128x128xbf16>
    %cst_46 = arith.constant dense<0.000000e+00> : vector<64x128xf32>
    %60 = tpu.matmul %58, %59, %cst_46 {dimension_numbers = #tpu.dot_dimension_numbers<[1], [0], [0], [1], [0, 0, 1, 1], [], []>} : vector<64x128xbf16>, vector<128x128xbf16>, vector<64x128xf32> -> vector<64x128xf32>
    %61 = arith.addf %55, %60 : vector<64x128xf32>
    %c512_47 = arith.constant 512 : index
    %c0_48 = arith.constant 0 : index
    %62 = vector.load %arg2[%c512_47, %c0_48] : memref<576x256xbf16, #tpu.memory_space<vmem>>, vector<64x256xbf16>
    %cst_49 = arith.constant dense<0.000000e+00> : vector<64x128xf32>
    %63 = tpu.matmul %62, %12, %cst_49 {dimension_numbers = #tpu.dot_dimension_numbers<[1], [0], [0], [1], [0, 0, 1, 1], [], []>} : vector<64x256xbf16>, vector<256x128xbf16>, vector<64x128xf32> -> vector<64x128xf32>
    %64 = arith.truncf %63 : vector<64x128xf32> to vector<64x128xbf16>
    %c1024 = arith.constant 1024 : index
    %c0_50 = arith.constant 0 : index
    %65 = vector.load %arg7[%c1024, %c0_50] : memref<1152x128xbf16, #tpu.memory_space<vmem>>, vector<128x128xbf16>
    %cst_51 = arith.constant dense<0.000000e+00> : vector<64x128xf32>
    %66 = tpu.matmul %64, %65, %cst_51 {dimension_numbers = #tpu.dot_dimension_numbers<[1], [0], [0], [1], [0, 0, 1, 1], [], []>} : vector<64x128xbf16>, vector<128x128xbf16>, vector<64x128xf32> -> vector<64x128xf32>
    %67 = arith.addf %61, %66 : vector<64x128xf32>
    %c0_52 = arith.constant 0 : index
    %c0_53 = arith.constant 0 : index
    %68 = vector.load %arg8[%c0_52, %c0_53] : memref<1x128xf32, #tpu.memory_space<vmem>>, vector<1x128xf32>
    %69 = vector.broadcast %68 : vector<1x128xf32> to vector<64x128xf32>
    %70 = arith.mulf %67, %69 : vector<64x128xf32>
    %c0_54 = arith.constant 0 : index
    %c0_55 = arith.constant 0 : index
    %71 = vector.load %arg9[%c0_54, %c0_55] : memref<1x128xf32, #tpu.memory_space<vmem>>, vector<1x128xf32>
    %72 = vector.broadcast %71 : vector<1x128xf32> to vector<64x128xf32>
    %73 = arith.addf %70, %72 : vector<64x128xf32>
    %cst_56 = arith.constant 0.000000e+00 : f32
    %74 = vector.broadcast %cst_56 : f32 to vector<64x128xf32>
    %75 = arith.maximumf %73, %74 : vector<64x128xf32>
    %76 = arith.truncf %75 : vector<64x128xf32> to vector<64x128xbf16>
    %c0_57 = arith.constant 0 : index
    %c0_58 = arith.constant 0 : index
    %77 = vector.load %arg3[%c0_57, %c0_58] : memref<64x256xbf16, #tpu.memory_space<vmem>>, vector<64x256xbf16>
    %cst_59 = arith.constant dense<0.000000e+00> : vector<64x128xf32>
    %78 = tpu.matmul %77, %1, %cst_59 {dimension_numbers = #tpu.dot_dimension_numbers<[1], [0], [0], [1], [0, 0, 1, 1], [], []>} : vector<64x256xbf16>, vector<256x128xbf16>, vector<64x128xf32> -> vector<64x128xf32>
    %79 = arith.truncf %78 : vector<64x128xf32> to vector<64x128xbf16>
    %c0_60 = arith.constant 0 : index
    %c0_61 = arith.constant 0 : index
    %80 = vector.load %arg10[%c0_60, %c0_61] : memref<128x128xbf16, #tpu.memory_space<vmem>>, vector<128x128xbf16>
    %cst_62 = arith.constant dense<0.000000e+00> : vector<64x128xf32>
    %81 = tpu.matmul %79, %80, %cst_62 {dimension_numbers = #tpu.dot_dimension_numbers<[1], [0], [0], [1], [0, 0, 1, 1], [], []>} : vector<64x128xbf16>, vector<128x128xbf16>, vector<64x128xf32> -> vector<64x128xf32>
    %c0_63 = arith.constant 0 : index
    %c0_64 = arith.constant 0 : index
    %82 = vector.load %arg11[%c0_63, %c0_64] : memref<1x128xf32, #tpu.memory_space<vmem>>, vector<1x128xf32>
    %83 = vector.broadcast %82 : vector<1x128xf32> to vector<64x128xf32>
    %84 = arith.mulf %81, %83 : vector<64x128xf32>
    %c0_65 = arith.constant 0 : index
    %c0_66 = arith.constant 0 : index
    %85 = vector.load %arg12[%c0_65, %c0_66] : memref<1x128xf32, #tpu.memory_space<vmem>>, vector<1x128xf32>
    %86 = vector.broadcast %85 : vector<1x128xf32> to vector<64x128xf32>
    %87 = arith.addf %84, %86 : vector<64x128xf32>
    %88 = arith.extf %76 : vector<64x128xbf16> to vector<64x128xf32>
    %cst_67 = arith.constant dense<0.000000e+00> : vector<128xf32>
    %89 = vector.multi_reduction <add>, %88, %cst_67 [0] : vector<64x128xf32> to vector<128xf32>
    %90 = vector.shape_cast %89 : vector<128xf32> to vector<1x128xf32>
    %cst_68 = arith.constant 1.562500e-02 : f32
    %91 = vector.broadcast %cst_68 : f32 to vector<1x128xf32>
    %92 = arith.mulf %90, %91 : vector<1x128xf32>
    %93 = arith.truncf %92 : vector<1x128xf32> to vector<1x128xbf16>
    %c0_69 = arith.constant 0 : index
    %c0_70 = arith.constant 0 : index
    %94 = vector.load %arg13[%c0_69, %c0_70] : memref<128x128xbf16, #tpu.memory_space<vmem>>, vector<128x128xbf16>
    %cst_71 = arith.constant dense<0.000000e+00> : vector<1x128xf32>
    %95 = tpu.matmul %93, %94, %cst_71 {dimension_numbers = #tpu.dot_dimension_numbers<[1], [0], [0], [1], [0, 0, 1, 1], [], []>} : vector<1x128xbf16>, vector<128x128xbf16>, vector<1x128xf32> -> vector<1x128xf32>
    %c0_72 = arith.constant 0 : index
    %c0_73 = arith.constant 0 : index
    %96 = vector.load %arg14[%c0_72, %c0_73] : memref<1x128xf32, #tpu.memory_space<vmem>>, vector<1x128xf32>
    %97 = arith.addf %95, %96 : vector<1x128xf32>
    %cst_74 = arith.constant 0.000000e+00 : f32
    %98 = vector.broadcast %cst_74 : f32 to vector<1x128xf32>
    %99 = arith.maximumf %97, %98 : vector<1x128xf32>
    %100 = arith.truncf %99 : vector<1x128xf32> to vector<1x128xbf16>
    %c0_75 = arith.constant 0 : index
    %c0_76 = arith.constant 0 : index
    %101 = vector.load %arg15[%c0_75, %c0_76] : memref<128x128xbf16, #tpu.memory_space<vmem>>, vector<128x128xbf16>
    %cst_77 = arith.constant dense<0.000000e+00> : vector<1x128xf32>
    %102 = tpu.matmul %100, %101, %cst_77 {dimension_numbers = #tpu.dot_dimension_numbers<[1], [0], [0], [1], [0, 0, 1, 1], [], []>} : vector<1x128xbf16>, vector<128x128xbf16>, vector<1x128xf32> -> vector<1x128xf32>
    %c0_78 = arith.constant 0 : index
    %c0_79 = arith.constant 0 : index
    %103 = vector.load %arg16[%c0_78, %c0_79] : memref<1x128xf32, #tpu.memory_space<vmem>>, vector<1x128xf32>
    %104 = arith.addf %102, %103 : vector<1x128xf32>
    %105 = arith.negf %104 : vector<1x128xf32>
    %106 = math.exp %105 : vector<1x128xf32>
    %cst_80 = arith.constant 1.000000e+00 : f32
    %107 = vector.broadcast %cst_80 : f32 to vector<1x128xf32>
    %108 = arith.addf %107, %106 : vector<1x128xf32>
    %109 = arith.divf %107, %108 : vector<1x128xf32>
    %110 = arith.extf %76 : vector<64x128xbf16> to vector<64x128xf32>
    %111 = vector.broadcast %109 : vector<1x128xf32> to vector<64x128xf32>
    %112 = arith.mulf %110, %111 : vector<64x128xf32>
    %113 = arith.truncf %112 : vector<64x128xf32> to vector<64x128xbf16>
    %c0_81 = arith.constant 0 : index
    %c0_82 = arith.constant 0 : index
    %114 = vector.load %arg17[%c0_81, %c0_82] : memref<128x128xbf16, #tpu.memory_space<vmem>>, vector<128x128xbf16>
    %cst_83 = arith.constant dense<0.000000e+00> : vector<64x128xf32>
    %115 = tpu.matmul %113, %114, %cst_83 {dimension_numbers = #tpu.dot_dimension_numbers<[1], [0], [0], [1], [0, 0, 1, 1], [], []>} : vector<64x128xbf16>, vector<128x128xbf16>, vector<64x128xf32> -> vector<64x128xf32>
    %c0_84 = arith.constant 0 : index
    %c0_85 = arith.constant 0 : index
    %116 = vector.load %arg18[%c0_84, %c0_85] : memref<1x128xf32, #tpu.memory_space<vmem>>, vector<1x128xf32>
    %117 = vector.broadcast %116 : vector<1x128xf32> to vector<64x128xf32>
    %118 = arith.mulf %115, %117 : vector<64x128xf32>
    %c0_86 = arith.constant 0 : index
    %c0_87 = arith.constant 0 : index
    %119 = vector.load %arg19[%c0_86, %c0_87] : memref<1x128xf32, #tpu.memory_space<vmem>>, vector<1x128xf32>
    %120 = vector.broadcast %119 : vector<1x128xf32> to vector<64x128xf32>
    %121 = arith.addf %118, %120 : vector<64x128xf32>
    %122 = arith.addf %121, %87 : vector<64x128xf32>
    %cst_88 = arith.constant 0.000000e+00 : f32
    %123 = vector.broadcast %cst_88 : f32 to vector<64x128xf32>
    %124 = arith.maximumf %122, %123 : vector<64x128xf32>
    %125 = vector.shape_cast %124 : vector<64x128xf32> to vector<1x64x128xf32>
    %126 = arith.truncf %125 : vector<1x64x128xf32> to vector<1x64x128xbf16>
    %c0_89 = arith.constant 0 : index
    %c0_90 = arith.constant 0 : index
    %c0_91 = arith.constant 0 : index
    %127 = vector.load %arg20[%c0_89, %c0_90, %c0_91] : memref<1x64x128xbf16, #tpu.memory_space<vmem>>, vector<1x64x128xbf16>
    tpu.vector_store %arg20[%c0_89, %c0_90, %c0_91], %126 {strides = array<i32>} : memref<1x64x128xbf16, #tpu.memory_space<vmem>>, vector<1x64x128xbf16>,
    return
  }
  func.func @transform_0(%arg0: i32) -> (i32, i32, i32) {
    %c0_i32 = arith.constant 0 : i32
    %c0_i32_0 = arith.constant 0 : i32
    %c0_i32_1 = arith.constant 0 : i32
    return %arg0, %c0_i32, %c0_i32_0 : i32, i32, i32
  }
  func.func @transform_1(%arg0: i32) -> (i32, i32) {
    %c0_i32 = arith.constant 0 : i32
    %c0_i32_0 = arith.constant 0 : i32
    %c0_i32_1 = arith.constant 0 : i32
    return %c0_i32, %c0_i32_0 : i32, i32
  }
  func.func @transform_2(%arg0: i32) -> (i32, i32) {
    %c0_i32 = arith.constant 0 : i32
    %c0_i32_0 = arith.constant 0 : i32
    %c0_i32_1 = arith.constant 0 : i32
    return %c0_i32, %c0_i32_0 : i32, i32
  }
  func.func @transform_3(%arg0: i32) -> (i32, i32) {
    %c0_i32 = arith.constant 0 : i32
    %c0_i32_0 = arith.constant 0 : i32
    %c0_i32_1 = arith.constant 0 : i32
    return %c0_i32, %c0_i32_0 : i32, i32
  }
  func.func @transform_4(%arg0: i32) -> (i32, i32) {
    %c0_i32 = arith.constant 0 : i32
    %c0_i32_0 = arith.constant 0 : i32
    %c0_i32_1 = arith.constant 0 : i32
    return %c0_i32, %c0_i32_0 : i32, i32
  }
  func.func @transform_5(%arg0: i32) -> (i32, i32) {
    %c0_i32 = arith.constant 0 : i32
    %c0_i32_0 = arith.constant 0 : i32
    %c0_i32_1 = arith.constant 0 : i32
    return %c0_i32, %c0_i32_0 : i32, i32
  }
  func.func @transform_6(%arg0: i32) -> (i32, i32) {
    %c0_i32 = arith.constant 0 : i32
    %c0_i32_0 = arith.constant 0 : i32
    %c0_i32_1 = arith.constant 0 : i32
    return %c0_i32, %c0_i32_0 : i32, i32
  }
  func.func @transform_7(%arg0: i32) -> (i32, i32) {
    %c0_i32 = arith.constant 0 : i32
    %c0_i32_0 = arith.constant 0 : i32
    %c0_i32_1 = arith.constant 0 : i32
    return %c0_i32, %c0_i32_0 : i32, i32
  }
  func.func @transform_8(%arg0: i32) -> (i32, i32) {
    %c0_i32 = arith.constant 0 : i32
    %c0_i32_0 = arith.constant 0 : i32
    %c0_i32_1 = arith.constant 0 : i32
    return %c0_i32, %c0_i32_0 : i32, i32
  }
  func.func @transform_9(%arg0: i32) -> (i32, i32) {
    %c0_i32 = arith.constant 0 : i32
    %c0_i32_0 = arith.constant 0 : i32
    %c0_i32_1 = arith.constant 0 : i32
    return %c0_i32, %c0_i32_0 : i32, i32
  }
  func.func @transform_10(%arg0: i32) -> (i32, i32) {
    %c0_i32 = arith.constant 0 : i32
    %c0_i32_0 = arith.constant 0 : i32
    %c0_i32_1 = arith.constant 0 : i32
    return %c0_i32, %c0_i32_0 : i32, i32
  }
  func.func @transform_11(%arg0: i32) -> (i32, i32) {
    %c0_i32 = arith.constant 0 : i32
    %c0_i32_0 = arith.constant 0 : i32
    %c0_i32_1 = arith.constant 0 : i32
    return %c0_i32, %c0_i32_0 : i32, i32
  }
  func.func @transform_12(%arg0: i32) -> (i32, i32) {
    %c0_i32 = arith.constant 0 : i32
    %c0_i32_0 = arith.constant 0 : i32
    %c0_i32_1 = arith.constant 0 : i32
    return %c0_i32, %c0_i32_0 : i32, i32
  }
  func.func @transform_13(%arg0: i32) -> (i32, i32) {
    %c0_i32 = arith.constant 0 : i32
    %c0_i32_0 = arith.constant 0 : i32
    %c0_i32_1 = arith.constant 0 : i32
    return %c0_i32, %c0_i32_0 : i32, i32
  }
  func.func @transform_14(%arg0: i32) -> (i32, i32) {
    %c0_i32 = arith.constant 0 : i32
    %c0_i32_0 = arith.constant 0 : i32
    %c0_i32_1 = arith.constant 0 : i32
    return %c0_i32, %c0_i32_0 : i32, i32
  }
  func.func @transform_15(%arg0: i32) -> (i32, i32) {
    %c0_i32 = arith.constant 0 : i32
    %c0_i32_0 = arith.constant 0 : i32
    %c0_i32_1 = arith.constant 0 : i32
    return %c0_i32, %c0_i32_0 : i32, i32
  }
  func.func @transform_16(%arg0: i32) -> (i32, i32) {
    %c0_i32 = arith.constant 0 : i32
    %c0_i32_0 = arith.constant 0 : i32
    %c0_i32_1 = arith.constant 0 : i32
    return %c0_i32, %c0_i32_0 : i32, i32
  }
  func.func @transform_17(%arg0: i32) -> (i32, i32) {
    %c0_i32 = arith.constant 0 : i32
    %c0_i32_0 = arith.constant 0 : i32
    %c0_i32_1 = arith.constant 0 : i32
    return %c0_i32, %c0_i32_0 : i32, i32
  }
  func.func @transform_18(%arg0: i32) -> (i32, i32) {
    %c0_i32 = arith.constant 0 : i32
    %c0_i32_0 = arith.constant 0 : i32
    %c0_i32_1 = arith.constant 0 : i32
    return %c0_i32, %c0_i32_0 : i32, i32
  }
  func.func @transform_19(%arg0: i32) -> (i32, i32, i32) {
    %c0_i32 = arith.constant 0 : i32
    %c0_i32_0 = arith.constant 0 : i32
    %c0_i32_1 = arith.constant 0 : i32
    return %arg0, %c0_i32, %c0_i32_0 : i32, i32, i32
  }
}

module attributes {stable_mosaic.version = 11 : i64} {
  func.func @_block_kernel(%arg0: i32, %arg1: memref<1x64x128xbf16, #tpu.memory_space<vmem>>, %arg2: memref<144x64xbf16, #tpu.memory_space<vmem>>, %arg3: memref<16x64xbf16, #tpu.memory_space<vmem>>, %arg4: memref<128x128xbf16, #tpu.memory_space<vmem>>, %arg5: memref<1x128xf32, #tpu.memory_space<vmem>>, %arg6: memref<1x128xf32, #tpu.memory_space<vmem>>, %arg7: memref<1152x128xbf16, #tpu.memory_space<vmem>>, %arg8: memref<1x128xf32, #tpu.memory_space<vmem>>, %arg9: memref<1x128xf32, #tpu.memory_space<vmem>>, %arg10: memref<128x128xbf16, #tpu.memory_space<vmem>>, %arg11: memref<1x128xf32, #tpu.memory_space<vmem>>, %arg12: memref<1x128xf32, #tpu.memory_space<vmem>>, %arg13: memref<128x128xbf16, #tpu.memory_space<vmem>>, %arg14: memref<1x128xf32, #tpu.memory_space<vmem>>, %arg15: memref<128x128xbf16, #tpu.memory_space<vmem>>, %arg16: memref<1x128xf32, #tpu.memory_space<vmem>>, %arg17: memref<128x128xbf16, #tpu.memory_space<vmem>>, %arg18: memref<1x128xf32, #tpu.memory_space<vmem>>, %arg19: memref<1x128xf32, #tpu.memory_space<vmem>>, %arg20: memref<128x128xbf16, #tpu.memory_space<vmem>>, %arg21: memref<1x128xf32, #tpu.memory_space<vmem>>, %arg22: memref<1x1x128xf32, #tpu.memory_space<vmem>>) attributes {dimension_semantics = [#tpu.dimension_semantics<parallel>], iteration_bounds = array<i64: 2>, scalar_prefetch = 0 : i64, scratch_operands = 0 : i64, tpu.core_type = #tpu.core_type<tc>, window_params = [{transform_indices = @transform_0, window_bounds = array<i64: 1, 64, 128>}, {pipeline_mode = #tpu.pipeline_mode<synchronous>, transform_indices = @transform_1, window_bounds = array<i64: 144, 64>}, {pipeline_mode = #tpu.pipeline_mode<synchronous>, transform_indices = @transform_2, window_bounds = array<i64: 16, 64>}, {pipeline_mode = #tpu.pipeline_mode<synchronous>, transform_indices = @transform_3, window_bounds = array<i64: 128, 128>}, {pipeline_mode = #tpu.pipeline_mode<synchronous>, transform_indices = @transform_4, window_bounds = array<i64: 1, 128>}, {pipeline_mode = #tpu.pipeline_mode<synchronous>, transform_indices = @transform_5, window_bounds = array<i64: 1, 128>}, {pipeline_mode = #tpu.pipeline_mode<synchronous>, transform_indices = @transform_6, window_bounds = array<i64: 1152, 128>}, {pipeline_mode = #tpu.pipeline_mode<synchronous>, transform_indices = @transform_7, window_bounds = array<i64: 1, 128>}, {pipeline_mode = #tpu.pipeline_mode<synchronous>, transform_indices = @transform_8, window_bounds = array<i64: 1, 128>}, {pipeline_mode = #tpu.pipeline_mode<synchronous>, transform_indices = @transform_9, window_bounds = array<i64: 128, 128>}, {pipeline_mode = #tpu.pipeline_mode<synchronous>, transform_indices = @transform_10, window_bounds = array<i64: 1, 128>}, {pipeline_mode = #tpu.pipeline_mode<synchronous>, transform_indices = @transform_11, window_bounds = array<i64: 1, 128>}, {pipeline_mode = #tpu.pipeline_mode<synchronous>, transform_indices = @transform_12, window_bounds = array<i64: 128, 128>}, {pipeline_mode = #tpu.pipeline_mode<synchronous>, transform_indices = @transform_13, window_bounds = array<i64: 1, 128>}, {pipeline_mode = #tpu.pipeline_mode<synchronous>, transform_indices = @transform_14, window_bounds = array<i64: 128, 128>}, {pipeline_mode = #tpu.pipeline_mode<synchronous>, transform_indices = @transform_15, window_bounds = array<i64: 1, 128>}, {pipeline_mode = #tpu.pipeline_mode<synchronous>, transform_indices = @transform_16, window_bounds = array<i64: 128, 128>}, {pipeline_mode = #tpu.pipeline_mode<synchronous>, transform_indices = @transform_17, window_bounds = array<i64: 1, 128>}, {pipeline_mode = #tpu.pipeline_mode<synchronous>, transform_indices = @transform_18, window_bounds = array<i64: 1, 128>}, {pipeline_mode = #tpu.pipeline_mode<synchronous>, transform_indices = @transform_19, window_bounds = array<i64: 128, 128>}, {pipeline_mode = #tpu.pipeline_mode<synchronous>, transform_indices = @transform_20, window_bounds = array<i64: 1, 128>}, {transform_indices = @transform_21, window_bounds = array<i64: 1, 1, 128>}]} {
    %c0 = arith.constant 0 : index
    %c0_0 = arith.constant 0 : index
    %c0_1 = arith.constant 0 : index
    %0 = vector.load %arg1[%c0, %c0_0, %c0_1] : memref<1x64x128xbf16, #tpu.memory_space<vmem>>, vector<1x64x128xbf16>
    %1 = vector.shape_cast %0 : vector<1x64x128xbf16> to vector<64x128xbf16>
    %c0_2 = arith.constant 0 : index
    %c0_3 = arith.constant 0 : index
    %2 = vector.load %arg4[%c0_2, %c0_3] : memref<128x128xbf16, #tpu.memory_space<vmem>>, vector<128x128xbf16>
    %cst = arith.constant dense<0.000000e+00> : vector<64x128xf32>
    %3 = tpu.matmul %1, %2, %cst {dimension_numbers = #tpu.dot_dimension_numbers<[1], [0], [0], [1], [0, 0, 1, 1], [], []>} : vector<64x128xbf16>, vector<128x128xbf16>, vector<64x128xf32> -> vector<64x128xf32>
    %c0_4 = arith.constant 0 : index
    %c0_5 = arith.constant 0 : index
    %4 = vector.load %arg5[%c0_4, %c0_5] : memref<1x128xf32, #tpu.memory_space<vmem>>, vector<1x128xf32>
    %5 = vector.broadcast %4 : vector<1x128xf32> to vector<64x128xf32>
    %6 = arith.mulf %3, %5 : vector<64x128xf32>
    %c0_6 = arith.constant 0 : index
    %c0_7 = arith.constant 0 : index
    %7 = vector.load %arg6[%c0_6, %c0_7] : memref<1x128xf32, #tpu.memory_space<vmem>>, vector<1x128xf32>
    %8 = vector.broadcast %7 : vector<1x128xf32> to vector<64x128xf32>
    %9 = arith.addf %6, %8 : vector<64x128xf32>
    %cst_8 = arith.constant 0.000000e+00 : f32
    %10 = vector.broadcast %cst_8 : f32 to vector<64x128xf32>
    %11 = arith.maximumf %9, %10 : vector<64x128xf32>
    %12 = arith.truncf %11 : vector<64x128xf32> to vector<64x128xbf16>
    %cst_9 = arith.constant 0.000000e+00 : f32
    %13 = vector.broadcast %cst_9 : f32 to vector<16x128xf32>
    %c0_10 = arith.constant 0 : index
    %c0_11 = arith.constant 0 : index
    %14 = vector.load %arg2[%c0_10, %c0_11] : memref<144x64xbf16, #tpu.memory_space<vmem>>, vector<16x64xbf16>
    %cst_12 = arith.constant dense<0.000000e+00> : vector<16x128xf32>
    %15 = tpu.matmul %14, %12, %cst_12 {dimension_numbers = #tpu.dot_dimension_numbers<[1], [0], [0], [1], [0, 0, 1, 1], [], []>} : vector<16x64xbf16>, vector<64x128xbf16>, vector<16x128xf32> -> vector<16x128xf32>
    %16 = arith.truncf %15 : vector<16x128xf32> to vector<16x128xbf16>
    %c0_13 = arith.constant 0 : index
    %c0_14 = arith.constant 0 : index
    %17 = vector.load %arg7[%c0_13, %c0_14] : memref<1152x128xbf16, #tpu.memory_space<vmem>>, vector<128x128xbf16>
    %cst_15 = arith.constant dense<0.000000e+00> : vector<16x128xf32>
    %18 = tpu.matmul %16, %17, %cst_15 {dimension_numbers = #tpu.dot_dimension_numbers<[1], [0], [0], [1], [0, 0, 1, 1], [], []>} : vector<16x128xbf16>, vector<128x128xbf16>, vector<16x128xf32> -> vector<16x128xf32>
    %19 = arith.addf %13, %18 : vector<16x128xf32>
    %c16 = arith.constant 16 : index
    %c0_16 = arith.constant 0 : index
    %20 = vector.load %arg2[%c16, %c0_16] : memref<144x64xbf16, #tpu.memory_space<vmem>>, vector<16x64xbf16>
    %cst_17 = arith.constant dense<0.000000e+00> : vector<16x128xf32>
    %21 = tpu.matmul %20, %12, %cst_17 {dimension_numbers = #tpu.dot_dimension_numbers<[1], [0], [0], [1], [0, 0, 1, 1], [], []>} : vector<16x64xbf16>, vector<64x128xbf16>, vector<16x128xf32> -> vector<16x128xf32>
    %22 = arith.truncf %21 : vector<16x128xf32> to vector<16x128xbf16>
    %c128 = arith.constant 128 : index
    %c0_18 = arith.constant 0 : index
    %23 = vector.load %arg7[%c128, %c0_18] : memref<1152x128xbf16, #tpu.memory_space<vmem>>, vector<128x128xbf16>
    %cst_19 = arith.constant dense<0.000000e+00> : vector<16x128xf32>
    %24 = tpu.matmul %22, %23, %cst_19 {dimension_numbers = #tpu.dot_dimension_numbers<[1], [0], [0], [1], [0, 0, 1, 1], [], []>} : vector<16x128xbf16>, vector<128x128xbf16>, vector<16x128xf32> -> vector<16x128xf32>
    %25 = arith.addf %19, %24 : vector<16x128xf32>
    %c32 = arith.constant 32 : index
    %c0_20 = arith.constant 0 : index
    %26 = vector.load %arg2[%c32, %c0_20] : memref<144x64xbf16, #tpu.memory_space<vmem>>, vector<16x64xbf16>
    %cst_21 = arith.constant dense<0.000000e+00> : vector<16x128xf32>
    %27 = tpu.matmul %26, %12, %cst_21 {dimension_numbers = #tpu.dot_dimension_numbers<[1], [0], [0], [1], [0, 0, 1, 1], [], []>} : vector<16x64xbf16>, vector<64x128xbf16>, vector<16x128xf32> -> vector<16x128xf32>
    %28 = arith.truncf %27 : vector<16x128xf32> to vector<16x128xbf16>
    %c256 = arith.constant 256 : index
    %c0_22 = arith.constant 0 : index
    %29 = vector.load %arg7[%c256, %c0_22] : memref<1152x128xbf16, #tpu.memory_space<vmem>>, vector<128x128xbf16>
    %cst_23 = arith.constant dense<0.000000e+00> : vector<16x128xf32>
    %30 = tpu.matmul %28, %29, %cst_23 {dimension_numbers = #tpu.dot_dimension_numbers<[1], [0], [0], [1], [0, 0, 1, 1], [], []>} : vector<16x128xbf16>, vector<128x128xbf16>, vector<16x128xf32> -> vector<16x128xf32>
    %31 = arith.addf %25, %30 : vector<16x128xf32>
    %c48 = arith.constant 48 : index
    %c0_24 = arith.constant 0 : index
    %32 = vector.load %arg2[%c48, %c0_24] : memref<144x64xbf16, #tpu.memory_space<vmem>>, vector<16x64xbf16>
    %cst_25 = arith.constant dense<0.000000e+00> : vector<16x128xf32>
    %33 = tpu.matmul %32, %12, %cst_25 {dimension_numbers = #tpu.dot_dimension_numbers<[1], [0], [0], [1], [0, 0, 1, 1], [], []>} : vector<16x64xbf16>, vector<64x128xbf16>, vector<16x128xf32> -> vector<16x128xf32>
    %34 = arith.truncf %33 : vector<16x128xf32> to vector<16x128xbf16>
    %c384 = arith.constant 384 : index
    %c0_26 = arith.constant 0 : index
    %35 = vector.load %arg7[%c384, %c0_26] : memref<1152x128xbf16, #tpu.memory_space<vmem>>, vector<128x128xbf16>
    %cst_27 = arith.constant dense<0.000000e+00> : vector<16x128xf32>
    %36 = tpu.matmul %34, %35, %cst_27 {dimension_numbers = #tpu.dot_dimension_numbers<[1], [0], [0], [1], [0, 0, 1, 1], [], []>} : vector<16x128xbf16>, vector<128x128xbf16>, vector<16x128xf32> -> vector<16x128xf32>
    %37 = arith.addf %31, %36 : vector<16x128xf32>
    %c64 = arith.constant 64 : index
    %c0_28 = arith.constant 0 : index
    %38 = vector.load %arg2[%c64, %c0_28] : memref<144x64xbf16, #tpu.memory_space<vmem>>, vector<16x64xbf16>
    %cst_29 = arith.constant dense<0.000000e+00> : vector<16x128xf32>
    %39 = tpu.matmul %38, %12, %cst_29 {dimension_numbers = #tpu.dot_dimension_numbers<[1], [0], [0], [1], [0, 0, 1, 1], [], []>} : vector<16x64xbf16>, vector<64x128xbf16>, vector<16x128xf32> -> vector<16x128xf32>
    %40 = arith.truncf %39 : vector<16x128xf32> to vector<16x128xbf16>
    %c512 = arith.constant 512 : index
    %c0_30 = arith.constant 0 : index
    %41 = vector.load %arg7[%c512, %c0_30] : memref<1152x128xbf16, #tpu.memory_space<vmem>>, vector<128x128xbf16>
    %cst_31 = arith.constant dense<0.000000e+00> : vector<16x128xf32>
    %42 = tpu.matmul %40, %41, %cst_31 {dimension_numbers = #tpu.dot_dimension_numbers<[1], [0], [0], [1], [0, 0, 1, 1], [], []>} : vector<16x128xbf16>, vector<128x128xbf16>, vector<16x128xf32> -> vector<16x128xf32>
    %43 = arith.addf %37, %42 : vector<16x128xf32>
    %c80 = arith.constant 80 : index
    %c0_32 = arith.constant 0 : index
    %44 = vector.load %arg2[%c80, %c0_32] : memref<144x64xbf16, #tpu.memory_space<vmem>>, vector<16x64xbf16>
    %cst_33 = arith.constant dense<0.000000e+00> : vector<16x128xf32>
    %45 = tpu.matmul %44, %12, %cst_33 {dimension_numbers = #tpu.dot_dimension_numbers<[1], [0], [0], [1], [0, 0, 1, 1], [], []>} : vector<16x64xbf16>, vector<64x128xbf16>, vector<16x128xf32> -> vector<16x128xf32>
    %46 = arith.truncf %45 : vector<16x128xf32> to vector<16x128xbf16>
    %c640 = arith.constant 640 : index
    %c0_34 = arith.constant 0 : index
    %47 = vector.load %arg7[%c640, %c0_34] : memref<1152x128xbf16, #tpu.memory_space<vmem>>, vector<128x128xbf16>
    %cst_35 = arith.constant dense<0.000000e+00> : vector<16x128xf32>
    %48 = tpu.matmul %46, %47, %cst_35 {dimension_numbers = #tpu.dot_dimension_numbers<[1], [0], [0], [1], [0, 0, 1, 1], [], []>} : vector<16x128xbf16>, vector<128x128xbf16>, vector<16x128xf32> -> vector<16x128xf32>
    %49 = arith.addf %43, %48 : vector<16x128xf32>
    %c96 = arith.constant 96 : index
    %c0_36 = arith.constant 0 : index
    %50 = vector.load %arg2[%c96, %c0_36] : memref<144x64xbf16, #tpu.memory_space<vmem>>, vector<16x64xbf16>
    %cst_37 = arith.constant dense<0.000000e+00> : vector<16x128xf32>
    %51 = tpu.matmul %50, %12, %cst_37 {dimension_numbers = #tpu.dot_dimension_numbers<[1], [0], [0], [1], [0, 0, 1, 1], [], []>} : vector<16x64xbf16>, vector<64x128xbf16>, vector<16x128xf32> -> vector<16x128xf32>
    %52 = arith.truncf %51 : vector<16x128xf32> to vector<16x128xbf16>
    %c768 = arith.constant 768 : index
    %c0_38 = arith.constant 0 : index
    %53 = vector.load %arg7[%c768, %c0_38] : memref<1152x128xbf16, #tpu.memory_space<vmem>>, vector<128x128xbf16>
    %cst_39 = arith.constant dense<0.000000e+00> : vector<16x128xf32>
    %54 = tpu.matmul %52, %53, %cst_39 {dimension_numbers = #tpu.dot_dimension_numbers<[1], [0], [0], [1], [0, 0, 1, 1], [], []>} : vector<16x128xbf16>, vector<128x128xbf16>, vector<16x128xf32> -> vector<16x128xf32>
    %55 = arith.addf %49, %54 : vector<16x128xf32>
    %c112 = arith.constant 112 : index
    %c0_40 = arith.constant 0 : index
    %56 = vector.load %arg2[%c112, %c0_40] : memref<144x64xbf16, #tpu.memory_space<vmem>>, vector<16x64xbf16>
    %cst_41 = arith.constant dense<0.000000e+00> : vector<16x128xf32>
    %57 = tpu.matmul %56, %12, %cst_41 {dimension_numbers = #tpu.dot_dimension_numbers<[1], [0], [0], [1], [0, 0, 1, 1], [], []>} : vector<16x64xbf16>, vector<64x128xbf16>, vector<16x128xf32> -> vector<16x128xf32>
    %58 = arith.truncf %57 : vector<16x128xf32> to vector<16x128xbf16>
    %c896 = arith.constant 896 : index
    %c0_42 = arith.constant 0 : index
    %59 = vector.load %arg7[%c896, %c0_42] : memref<1152x128xbf16, #tpu.memory_space<vmem>>, vector<128x128xbf16>
    %cst_43 = arith.constant dense<0.000000e+00> : vector<16x128xf32>
    %60 = tpu.matmul %58, %59, %cst_43 {dimension_numbers = #tpu.dot_dimension_numbers<[1], [0], [0], [1], [0, 0, 1, 1], [], []>} : vector<16x128xbf16>, vector<128x128xbf16>, vector<16x128xf32> -> vector<16x128xf32>
    %61 = arith.addf %55, %60 : vector<16x128xf32>
    %c128_44 = arith.constant 128 : index
    %c0_45 = arith.constant 0 : index
    %62 = vector.load %arg2[%c128_44, %c0_45] : memref<144x64xbf16, #tpu.memory_space<vmem>>, vector<16x64xbf16>
    %cst_46 = arith.constant dense<0.000000e+00> : vector<16x128xf32>
    %63 = tpu.matmul %62, %12, %cst_46 {dimension_numbers = #tpu.dot_dimension_numbers<[1], [0], [0], [1], [0, 0, 1, 1], [], []>} : vector<16x64xbf16>, vector<64x128xbf16>, vector<16x128xf32> -> vector<16x128xf32>
    %64 = arith.truncf %63 : vector<16x128xf32> to vector<16x128xbf16>
    %c1024 = arith.constant 1024 : index
    %c0_47 = arith.constant 0 : index
    %65 = vector.load %arg7[%c1024, %c0_47] : memref<1152x128xbf16, #tpu.memory_space<vmem>>, vector<128x128xbf16>
    %cst_48 = arith.constant dense<0.000000e+00> : vector<16x128xf32>
    %66 = tpu.matmul %64, %65, %cst_48 {dimension_numbers = #tpu.dot_dimension_numbers<[1], [0], [0], [1], [0, 0, 1, 1], [], []>} : vector<16x128xbf16>, vector<128x128xbf16>, vector<16x128xf32> -> vector<16x128xf32>
    %67 = arith.addf %61, %66 : vector<16x128xf32>
    %c0_49 = arith.constant 0 : index
    %c0_50 = arith.constant 0 : index
    %68 = vector.load %arg8[%c0_49, %c0_50] : memref<1x128xf32, #tpu.memory_space<vmem>>, vector<1x128xf32>
    %69 = vector.broadcast %68 : vector<1x128xf32> to vector<16x128xf32>
    %70 = arith.mulf %67, %69 : vector<16x128xf32>
    %c0_51 = arith.constant 0 : index
    %c0_52 = arith.constant 0 : index
    %71 = vector.load %arg9[%c0_51, %c0_52] : memref<1x128xf32, #tpu.memory_space<vmem>>, vector<1x128xf32>
    %72 = vector.broadcast %71 : vector<1x128xf32> to vector<16x128xf32>
    %73 = arith.addf %70, %72 : vector<16x128xf32>
    %cst_53 = arith.constant 0.000000e+00 : f32
    %74 = vector.broadcast %cst_53 : f32 to vector<16x128xf32>
    %75 = arith.maximumf %73, %74 : vector<16x128xf32>
    %76 = arith.truncf %75 : vector<16x128xf32> to vector<16x128xbf16>
    %c0_54 = arith.constant 0 : index
    %c0_55 = arith.constant 0 : index
    %77 = vector.load %arg3[%c0_54, %c0_55] : memref<16x64xbf16, #tpu.memory_space<vmem>>, vector<16x64xbf16>
    %cst_56 = arith.constant dense<0.000000e+00> : vector<16x128xf32>
    %78 = tpu.matmul %77, %1, %cst_56 {dimension_numbers = #tpu.dot_dimension_numbers<[1], [0], [0], [1], [0, 0, 1, 1], [], []>} : vector<16x64xbf16>, vector<64x128xbf16>, vector<16x128xf32> -> vector<16x128xf32>
    %79 = arith.truncf %78 : vector<16x128xf32> to vector<16x128xbf16>
    %c0_57 = arith.constant 0 : index
    %c0_58 = arith.constant 0 : index
    %80 = vector.load %arg10[%c0_57, %c0_58] : memref<128x128xbf16, #tpu.memory_space<vmem>>, vector<128x128xbf16>
    %cst_59 = arith.constant dense<0.000000e+00> : vector<16x128xf32>
    %81 = tpu.matmul %79, %80, %cst_59 {dimension_numbers = #tpu.dot_dimension_numbers<[1], [0], [0], [1], [0, 0, 1, 1], [], []>} : vector<16x128xbf16>, vector<128x128xbf16>, vector<16x128xf32> -> vector<16x128xf32>
    %c0_60 = arith.constant 0 : index
    %c0_61 = arith.constant 0 : index
    %82 = vector.load %arg11[%c0_60, %c0_61] : memref<1x128xf32, #tpu.memory_space<vmem>>, vector<1x128xf32>
    %83 = vector.broadcast %82 : vector<1x128xf32> to vector<16x128xf32>
    %84 = arith.mulf %81, %83 : vector<16x128xf32>
    %c0_62 = arith.constant 0 : index
    %c0_63 = arith.constant 0 : index
    %85 = vector.load %arg12[%c0_62, %c0_63] : memref<1x128xf32, #tpu.memory_space<vmem>>, vector<1x128xf32>
    %86 = vector.broadcast %85 : vector<1x128xf32> to vector<16x128xf32>
    %87 = arith.addf %84, %86 : vector<16x128xf32>
    %88 = arith.extf %76 : vector<16x128xbf16> to vector<16x128xf32>
    %cst_64 = arith.constant dense<0.000000e+00> : vector<128xf32>
    %89 = vector.multi_reduction <add>, %88, %cst_64 [0] : vector<16x128xf32> to vector<128xf32>
    %90 = vector.shape_cast %89 : vector<128xf32> to vector<1x128xf32>
    %cst_65 = arith.constant 6.250000e-02 : f32
    %91 = vector.broadcast %cst_65 : f32 to vector<1x128xf32>
    %92 = arith.mulf %90, %91 : vector<1x128xf32>
    %93 = arith.truncf %92 : vector<1x128xf32> to vector<1x128xbf16>
    %c0_66 = arith.constant 0 : index
    %c0_67 = arith.constant 0 : index
    %94 = vector.load %arg13[%c0_66, %c0_67] : memref<128x128xbf16, #tpu.memory_space<vmem>>, vector<128x128xbf16>
    %cst_68 = arith.constant dense<0.000000e+00> : vector<1x128xf32>
    %95 = tpu.matmul %93, %94, %cst_68 {dimension_numbers = #tpu.dot_dimension_numbers<[1], [0], [0], [1], [0, 0, 1, 1], [], []>} : vector<1x128xbf16>, vector<128x128xbf16>, vector<1x128xf32> -> vector<1x128xf32>
    %c0_69 = arith.constant 0 : index
    %c0_70 = arith.constant 0 : index
    %96 = vector.load %arg14[%c0_69, %c0_70] : memref<1x128xf32, #tpu.memory_space<vmem>>, vector<1x128xf32>
    %97 = arith.addf %95, %96 : vector<1x128xf32>
    %cst_71 = arith.constant 0.000000e+00 : f32
    %98 = vector.broadcast %cst_71 : f32 to vector<1x128xf32>
    %99 = arith.maximumf %97, %98 : vector<1x128xf32>
    %100 = arith.truncf %99 : vector<1x128xf32> to vector<1x128xbf16>
    %c0_72 = arith.constant 0 : index
    %c0_73 = arith.constant 0 : index
    %101 = vector.load %arg15[%c0_72, %c0_73] : memref<128x128xbf16, #tpu.memory_space<vmem>>, vector<128x128xbf16>
    %cst_74 = arith.constant dense<0.000000e+00> : vector<1x128xf32>
    %102 = tpu.matmul %100, %101, %cst_74 {dimension_numbers = #tpu.dot_dimension_numbers<[1], [0], [0], [1], [0, 0, 1, 1], [], []>} : vector<1x128xbf16>, vector<128x128xbf16>, vector<1x128xf32> -> vector<1x128xf32>
    %c0_75 = arith.constant 0 : index
    %c0_76 = arith.constant 0 : index
    %103 = vector.load %arg16[%c0_75, %c0_76] : memref<1x128xf32, #tpu.memory_space<vmem>>, vector<1x128xf32>
    %104 = arith.addf %102, %103 : vector<1x128xf32>
    %105 = arith.negf %104 : vector<1x128xf32>
    %106 = math.exp %105 : vector<1x128xf32>
    %cst_77 = arith.constant 1.000000e+00 : f32
    %107 = vector.broadcast %cst_77 : f32 to vector<1x128xf32>
    %108 = arith.addf %107, %106 : vector<1x128xf32>
    %109 = arith.divf %107, %108 : vector<1x128xf32>
    %110 = arith.extf %76 : vector<16x128xbf16> to vector<16x128xf32>
    %111 = vector.broadcast %109 : vector<1x128xf32> to vector<16x128xf32>
    %112 = arith.mulf %110, %111 : vector<16x128xf32>
    %113 = arith.truncf %112 : vector<16x128xf32> to vector<16x128xbf16>
    %c0_78 = arith.constant 0 : index
    %c0_79 = arith.constant 0 : index
    %114 = vector.load %arg17[%c0_78, %c0_79] : memref<128x128xbf16, #tpu.memory_space<vmem>>, vector<128x128xbf16>
    %cst_80 = arith.constant dense<0.000000e+00> : vector<16x128xf32>
    %115 = tpu.matmul %113, %114, %cst_80 {dimension_numbers = #tpu.dot_dimension_numbers<[1], [0], [0], [1], [0, 0, 1, 1], [], []>} : vector<16x128xbf16>, vector<128x128xbf16>, vector<16x128xf32> -> vector<16x128xf32>
    %c0_81 = arith.constant 0 : index
    %c0_82 = arith.constant 0 : index
    %116 = vector.load %arg18[%c0_81, %c0_82] : memref<1x128xf32, #tpu.memory_space<vmem>>, vector<1x128xf32>
    %117 = vector.broadcast %116 : vector<1x128xf32> to vector<16x128xf32>
    %118 = arith.mulf %115, %117 : vector<16x128xf32>
    %c0_83 = arith.constant 0 : index
    %c0_84 = arith.constant 0 : index
    %119 = vector.load %arg19[%c0_83, %c0_84] : memref<1x128xf32, #tpu.memory_space<vmem>>, vector<1x128xf32>
    %120 = vector.broadcast %119 : vector<1x128xf32> to vector<16x128xf32>
    %121 = arith.addf %118, %120 : vector<16x128xf32>
    %122 = arith.addf %121, %87 : vector<16x128xf32>
    %cst_85 = arith.constant 0.000000e+00 : f32
    %123 = vector.broadcast %cst_85 : f32 to vector<16x128xf32>
    %124 = arith.maximumf %122, %123 : vector<16x128xf32>
    %cst_86 = arith.constant dense<0.000000e+00> : vector<128xf32>
    %125 = vector.multi_reduction <add>, %124, %cst_86 [0] : vector<16x128xf32> to vector<128xf32>
    %126 = vector.shape_cast %125 : vector<128xf32> to vector<1x128xf32>
    %cst_87 = arith.constant 6.250000e-02 : f32
    %127 = vector.broadcast %cst_87 : f32 to vector<1x128xf32>
    %128 = arith.mulf %126, %127 : vector<1x128xf32>
    %129 = arith.truncf %128 : vector<1x128xf32> to vector<1x128xbf16>
    %c0_88 = arith.constant 0 : index
    %c0_89 = arith.constant 0 : index
    %130 = vector.load %arg20[%c0_88, %c0_89] : memref<128x128xbf16, #tpu.memory_space<vmem>>, vector<128x128xbf16>
    %cst_90 = arith.constant dense<0.000000e+00> : vector<1x128xf32>
    %131 = tpu.matmul %129, %130, %cst_90 {dimension_numbers = #tpu.dot_dimension_numbers<[1], [0], [0], [1], [0, 0, 1, 1], [], []>} : vector<1x128xbf16>, vector<128x128xbf16>, vector<1x128xf32> -> vector<1x128xf32>
    %c0_91 = arith.constant 0 : index
    %c0_92 = arith.constant 0 : index
    %132 = vector.load %arg21[%c0_91, %c0_92] : memref<1x128xf32, #tpu.memory_space<vmem>>, vector<1x128xf32>
    %133 = arith.addf %131, %132 : vector<1x128xf32>
    %134 = vector.shape_cast %133 : vector<1x128xf32> to vector<1x1x128xf32>
    %c0_93 = arith.constant 0 : index
    %c0_94 = arith.constant 0 : index
    %c0_95 = arith.constant 0 : index
    %135 = vector.load %arg22[%c0_93, %c0_94, %c0_95] : memref<1x1x128xf32, #tpu.memory_space<vmem>>, vector<1x1x128xf32>
    tpu.vector_store %arg22[%c0_93, %c0_94, %c0_95], %134 {strides = array<i32>} : memref<1x1x128xf32, #tpu.memory_space<vmem>>, vector<1x1x128xf32>,
    return
  }
  func.func @transform_0(%arg0: i32) -> (i32, i32, i32) {
    %c0_i32 = arith.constant 0 : i32
    %c0_i32_0 = arith.constant 0 : i32
    %c0_i32_1 = arith.constant 0 : i32
    return %arg0, %c0_i32, %c0_i32_0 : i32, i32, i32
  }
  func.func @transform_1(%arg0: i32) -> (i32, i32) {
    %c0_i32 = arith.constant 0 : i32
    %c0_i32_0 = arith.constant 0 : i32
    %c0_i32_1 = arith.constant 0 : i32
    return %c0_i32, %c0_i32_0 : i32, i32
  }
  func.func @transform_2(%arg0: i32) -> (i32, i32) {
    %c0_i32 = arith.constant 0 : i32
    %c0_i32_0 = arith.constant 0 : i32
    %c0_i32_1 = arith.constant 0 : i32
    return %c0_i32, %c0_i32_0 : i32, i32
  }
  func.func @transform_3(%arg0: i32) -> (i32, i32) {
    %c0_i32 = arith.constant 0 : i32
    %c0_i32_0 = arith.constant 0 : i32
    %c0_i32_1 = arith.constant 0 : i32
    return %c0_i32, %c0_i32_0 : i32, i32
  }
  func.func @transform_4(%arg0: i32) -> (i32, i32) {
    %c0_i32 = arith.constant 0 : i32
    %c0_i32_0 = arith.constant 0 : i32
    %c0_i32_1 = arith.constant 0 : i32
    return %c0_i32, %c0_i32_0 : i32, i32
  }
  func.func @transform_5(%arg0: i32) -> (i32, i32) {
    %c0_i32 = arith.constant 0 : i32
    %c0_i32_0 = arith.constant 0 : i32
    %c0_i32_1 = arith.constant 0 : i32
    return %c0_i32, %c0_i32_0 : i32, i32
  }
  func.func @transform_6(%arg0: i32) -> (i32, i32) {
    %c0_i32 = arith.constant 0 : i32
    %c0_i32_0 = arith.constant 0 : i32
    %c0_i32_1 = arith.constant 0 : i32
    return %c0_i32, %c0_i32_0 : i32, i32
  }
  func.func @transform_7(%arg0: i32) -> (i32, i32) {
    %c0_i32 = arith.constant 0 : i32
    %c0_i32_0 = arith.constant 0 : i32
    %c0_i32_1 = arith.constant 0 : i32
    return %c0_i32, %c0_i32_0 : i32, i32
  }
  func.func @transform_8(%arg0: i32) -> (i32, i32) {
    %c0_i32 = arith.constant 0 : i32
    %c0_i32_0 = arith.constant 0 : i32
    %c0_i32_1 = arith.constant 0 : i32
    return %c0_i32, %c0_i32_0 : i32, i32
  }
  func.func @transform_9(%arg0: i32) -> (i32, i32) {
    %c0_i32 = arith.constant 0 : i32
    %c0_i32_0 = arith.constant 0 : i32
    %c0_i32_1 = arith.constant 0 : i32
    return %c0_i32, %c0_i32_0 : i32, i32
  }
  func.func @transform_10(%arg0: i32) -> (i32, i32) {
    %c0_i32 = arith.constant 0 : i32
    %c0_i32_0 = arith.constant 0 : i32
    %c0_i32_1 = arith.constant 0 : i32
    return %c0_i32, %c0_i32_0 : i32, i32
  }
  func.func @transform_11(%arg0: i32) -> (i32, i32) {
    %c0_i32 = arith.constant 0 : i32
    %c0_i32_0 = arith.constant 0 : i32
    %c0_i32_1 = arith.constant 0 : i32
    return %c0_i32, %c0_i32_0 : i32, i32
  }
  func.func @transform_12(%arg0: i32) -> (i32, i32) {
    %c0_i32 = arith.constant 0 : i32
    %c0_i32_0 = arith.constant 0 : i32
    %c0_i32_1 = arith.constant 0 : i32
    return %c0_i32, %c0_i32_0 : i32, i32
  }
  func.func @transform_13(%arg0: i32) -> (i32, i32) {
    %c0_i32 = arith.constant 0 : i32
    %c0_i32_0 = arith.constant 0 : i32
    %c0_i32_1 = arith.constant 0 : i32
    return %c0_i32, %c0_i32_0 : i32, i32
  }
  func.func @transform_14(%arg0: i32) -> (i32, i32) {
    %c0_i32 = arith.constant 0 : i32
    %c0_i32_0 = arith.constant 0 : i32
    %c0_i32_1 = arith.constant 0 : i32
    return %c0_i32, %c0_i32_0 : i32, i32
  }
  func.func @transform_15(%arg0: i32) -> (i32, i32) {
    %c0_i32 = arith.constant 0 : i32
    %c0_i32_0 = arith.constant 0 : i32
    %c0_i32_1 = arith.constant 0 : i32
    return %c0_i32, %c0_i32_0 : i32, i32
  }
  func.func @transform_16(%arg0: i32) -> (i32, i32) {
    %c0_i32 = arith.constant 0 : i32
    %c0_i32_0 = arith.constant 0 : i32
    %c0_i32_1 = arith.constant 0 : i32
    return %c0_i32, %c0_i32_0 : i32, i32
  }
  func.func @transform_17(%arg0: i32) -> (i32, i32) {
    %c0_i32 = arith.constant 0 : i32
    %c0_i32_0 = arith.constant 0 : i32
    %c0_i32_1 = arith.constant 0 : i32
    return %c0_i32, %c0_i32_0 : i32, i32
  }
  func.func @transform_18(%arg0: i32) -> (i32, i32) {
    %c0_i32 = arith.constant 0 : i32
    %c0_i32_0 = arith.constant 0 : i32
    %c0_i32_1 = arith.constant 0 : i32
    return %c0_i32, %c0_i32_0 : i32, i32
  }
  func.func @transform_19(%arg0: i32) -> (i32, i32) {
    %c0_i32 = arith.constant 0 : i32
    %c0_i32_0 = arith.constant 0 : i32
    %c0_i32_1 = arith.constant 0 : i32
    return %c0_i32, %c0_i32_0 : i32, i32
  }
  func.func @transform_20(%arg0: i32) -> (i32, i32) {
    %c0_i32 = arith.constant 0 : i32
    %c0_i32_0 = arith.constant 0 : i32
    %c0_i32_1 = arith.constant 0 : i32
    return %c0_i32, %c0_i32_0 : i32, i32
  }
  func.func @transform_21(%arg0: i32) -> (i32, i32, i32) {
    %c0_i32 = arith.constant 0 : i32
    %c0_i32_0 = arith.constant 0 : i32
    %c0_i32_1 = arith.constant 0 : i32
    return %arg0, %c0_i32, %c0_i32_0 : i32, i32, i32
  }
}

</mosaic_0001>

<bundles_post_ra>
// kernel: regnet_forward.3
= control target key start
LH: loop header
LB: loop body
LE: loop exit
PB: predicated region body
PF: predicated region fallthrough
CT: control target
= control target key end

     0   :  { %s1338_s15 = smov 0   ;;  %s1528_s0 = inlined_call_operand.vmem [shape: bf16[512,144], index: 0, kind: input, shape index: {}]   ;;  %s1529_s1 = inlined_call_operand.vmem [shape: bf16[144,128], index: 1, kind: input, shape index: {}]   ;;  %s1530_s2 = inlined_call_operand.vmem [shape: f32[1,128], index: 2, kind: input, shape index: {}]   ;;  %s1531_s3 = inlined_call_operand.vmem [shape: f32[1,128], index: 3, kind: input, shape index: {}]   ;;  %s1532_s4 = inlined_call_operand.vmem [shape: bf16[512,128], index: 4, kind: output, shape index: {}]  }
   0x1 LB: > { %s989_s16 = sadd.s32 4294967295, %s1310_s15   ;;  %p993_p0 = scmp.ge.s32.totalorder %s1310_s15, 1  ;;  %s1310_s15 = sphi %s1338_s15, %s14_s15  }
   0x2   : > { %p164_p1 = scmp.lt.s32.totalorder %s1310_s15, 3 }
   0x4   : > { %p165_p2 = pnand %p993_p0, %p164_p1 }
   0x5   : > { %v1247_v0 = vld [vmem:[%s1529_s1] sm:$0xff] (!%p165_p2)   ;;  %v1312_v1 = vmov (!%p165_p2), 0   ;;  %s994_s19 = sshll.u32 (!%p165_p2), %s989_s16, 5  ;;  %v1248_v2 = vld [vmem:[%s1529_s1 + $0x8] sm:$0xff] (!%p165_p2)   ;;  %v1249_v3 = vld [vmem:[%s1529_s1 + $0x10] sm:$0xff] (!%p165_p2)   ;;  %vm453_vm0 = vcmask (!%p165_p2), 130048  }
   0x6   : > { %168 = sbr.rel (%p165_p2) target bundleno = 322 (0x142), region = 36  ;;  %502 = vmatprep.subr.bf16.mxu0 (!%p165_p2), %v1312_v1  ;;  %1220 = vmatprep.subr.bf16.mxu1 (!%p165_p2), %v1312_v1  ;;  %p192_p3 = scmp.lt.s32.totalorder (!%p165_p2), %s994_s19, 63  ;;  %v1250_v4 = vld [vmem:[%s1529_s1 + $0x18] sm:$0xff] (!%p165_p2)   ;;  %v1251_v7 = vld [vmem:[%s1529_s1 + $0x20] sm:$0xff] (!%p165_p2)   ;;  %v1252_v8 = vld [vmem:[%s1529_s1 + $0x28] sm:$0xff] (!%p165_p2)  }
   0x7   : > { %503 = vmatpush1.bf16.msra.mxu0 (!%p165_p2), %v1247_v0  ;;  %1229 = vmatpush1.bf16.msra.mxu1 (!%p165_p2), %v1247_v0  ;;  %v1253_v9 = vld [vmem:[%s1529_s1 + $0x30] sm:$0xff] (!%p165_p2)   ;;  %v1254_v10 = vld [vmem:[%s1529_s1 + $0x38] sm:$0xff] (!%p165_p2)   ;;  %v1255_v11 = vld [vmem:[%s1529_s1 + $0x40] sm:$0xff] (!%p165_p2)  }
   0x8   : > { %504 = vmatprep.subr.bf16.mxu0 (!%p165_p2), %v1312_v1  ;;  %1221 = vmatprep.subr.bf16.mxu1 (!%p165_p2), %v1312_v1  ;;  %v1432_v42 = vld [vmem:[%s1530_s2] ss:$0 sm:$0xff] (!%p165_p2) }
   0x9   : > { %v1437_v44 = vld [vmem:[%s1531_s3] ss:$0 sm:$0xff] (!%p165_p2) }
   0xb   : > { %505 = vmatpush1.bf16.msra.mxu0 (!%p165_p2), %v1248_v2  ;;  %1230 = vmatpush1.bf16.msra.mxu1 (!%p165_p2), %v1248_v2 }
   0xc   : > { %506 = vmatprep.subr.bf16.mxu0 (!%p165_p2), %v1312_v1  ;;  %1222 = vmatprep.subr.bf16.mxu1 (!%p165_p2), %v1312_v1 }
   0xd   : > { %s1534_s19 = smov (!%p192_p3, %s994_s19), 63 }
   0xe   : > { %s1092_s24 = sshll.u32 %s1534_s19, 3  ;;  %s998_s20 = sshll.u32 %s1534_s19, 2 }
   0xf   : > { %s1361_s27 = scalar_lea.vmem %s1528_s0, %s1092_s24  ;;  %507 = vmatpush1.bf16.msra.mxu0 %v1249_v3  ;;  %1231 = vmatpush1.bf16.msra.mxu1 %v1249_v3  ;;  %s1451_s23 = scalar_lea.vmem %s1532_s4, %s998_s20 }
  0x10   : > { %v1258_v5 = vld [vmem:[%s1361_s27 + $0x4] ss:$8 sps:$4 sm:$0xff]   ;;  %508 = vmatprep.subr.bf16.mxu0 %v1312_v1  ;;  %1223 = vmatprep.subr.bf16.mxu1 %v1312_v1  ;;  %v1256_v12 = vld [vmem:[%s1361_s27] ss:$8 sps:$4 sm:$0xff]   ;;  %v1262_v14 = vld [vmem:[%s1361_s27 + $0x14] ss:$8 sps:$4 sm:$0xff]  }
  0x11   : > { %v1261_v6 = vld [vmem:[%s1361_s27 + $0x84] ss:$8 sps:$4 sm:$0xff]   ;;  %1040 = vmatprep.mubr.msk.bf16.mxu0 %vm453_vm0, %v1258_v5  ;;  %v1259_v13 = vld [vmem:[%s1361_s27 + $0x80] ss:$8 sps:$4 sm:$0xff]   ;;  %v1264_v15 = vld [vmem:[%s1361_s27 + $0x94] ss:$8 sps:$4 sm:$0xff]  }
  0x12   : > { %1048 = vmatprep.mubr.msk.bf16.mxu1 %vm453_vm0, %v1261_v6  ;;  %v1266_v16 = vld [vmem:[%s1361_s27 + $0x10] ss:$8 sps:$4 sm:$0xff]   ;;  %v1268_v18 = vld [vmem:[%s1361_s27 + $0x24] ss:$8 sps:$4 sm:$0xff]   ;;  %v1272_v20 = vld [vmem:[%s1361_s27 + $0x20] ss:$8 sps:$4 sm:$0xff]  }
  0x13   : > { %509 = vmatpush1.bf16.msra.mxu0 %v1250_v4  ;;  %1232 = vmatpush1.bf16.msra.mxu1 %v1250_v4  ;;  %v1267_v17 = vld [vmem:[%s1361_s27 + $0x90] ss:$8 sps:$4 sm:$0xff]   ;;  %v1270_v19 = vld [vmem:[%s1361_s27 + $0xa4] ss:$8 sps:$4 sm:$0xff]   ;;  %v1273_v21 = vld [vmem:[%s1361_s27 + $0xa0] ss:$8 sps:$4 sm:$0xff]  }
  0x14   : > { %510 = vmatprep.subr.bf16.mxu0 %v1312_v1  ;;  %1224 = vmatprep.subr.bf16.mxu1 %v1312_v1  ;;  %v1274_v22 = vld [vmem:[%s1361_s27 + $0x34] ss:$8 sps:$4 sm:$0xff]   ;;  %v1278_v24 = vld [vmem:[%s1361_s27 + $0x30] ss:$8 sps:$4 sm:$0xff]   ;;  %v1280_v26 = vld [vmem:[%s1361_s27 + $0x44] ss:$8 sps:$4 sm:$0xff]  }
  0x15   : > { %v1276_v23 = vld [vmem:[%s1361_s27 + $0xb4] ss:$8 sps:$4 sm:$0xff]   ;;  %v1279_v25 = vld [vmem:[%s1361_s27 + $0xb0] ss:$8 sps:$4 sm:$0xff]   ;;  %v1282_v27 = vld [vmem:[%s1361_s27 + $0xc4] ss:$8 sps:$4 sm:$0xff]  }
  0x16   : > { %v1284_v28 = vld [vmem:[%s1361_s27 + $0x40] ss:$8 sps:$4 sm:$0xff]   ;;  %v1286_v30 = vld [vmem:[%s1361_s27 + $0x54] ss:$8 sps:$4 sm:$0xff]   ;;  %v1290_v32 = vld [vmem:[%s1361_s27 + $0x50] ss:$8 sps:$4 sm:$0xff]  }
  0x17   : > { %511 = vmatpush1.bf16.msra.mxu0 %v1251_v7  ;;  %1233 = vmatpush1.bf16.msra.mxu1 %v1251_v7  ;;  %v1285_v29 = vld [vmem:[%s1361_s27 + $0xc0] ss:$8 sps:$4 sm:$0xff]   ;;  %v1288_v31 = vld [vmem:[%s1361_s27 + $0xd4] ss:$8 sps:$4 sm:$0xff]   ;;  %v1291_v33 = vld [vmem:[%s1361_s27 + $0xd0] ss:$8 sps:$4 sm:$0xff]  }
  0x18   : > { %512 = vmatprep.subr.bf16.mxu0 %v1312_v1  ;;  %1225 = vmatprep.subr.bf16.mxu1 %v1312_v1  ;;  %v1292_v34 = vld [vmem:[%s1361_s27 + $0x64] ss:$8 sps:$4 sm:$0xff]   ;;  %v1296_v36 = vld [vmem:[%s1361_s27 + $0x60] ss:$8 sps:$4 sm:$0xff]   ;;  %v1298_v38 = vld [vmem:[%s1361_s27 + $0x74] ss:$8 sps:$4 sm:$0xff]  }
  0x19   : > { %v1294_v35 = vld [vmem:[%s1361_s27 + $0xe4] ss:$8 sps:$4 sm:$0xff]   ;;  %v1297_v37 = vld [vmem:[%s1361_s27 + $0xe0] ss:$8 sps:$4 sm:$0xff]   ;;  %v1300_v39 = vld [vmem:[%s1361_s27 + $0xf4] ss:$8 sps:$4 sm:$0xff]  }
  0x1a   : > { %v1302_v40 = vld [vmem:[%s1361_s27 + $0x70] ss:$8 sps:$4 sm:$0xff]  }
  0x1b   : > { %513 = vmatpush1.bf16.msra.mxu0 %v1252_v8  ;;  %1234 = vmatpush1.bf16.msra.mxu1 %v1252_v8  ;;  %v1303_v41 = vld [vmem:[%s1361_s27 + $0xf0] ss:$8 sps:$4 sm:$0xff]  }
  0x1c   : > { %514 = vmatprep.subr.bf16.mxu0 %v1312_v1  ;;  %1226 = vmatprep.subr.bf16.mxu1 %v1312_v1 }
  0x1f   : > { %515 = vmatpush1.bf16.msra.mxu0 %v1253_v9  ;;  %1235 = vmatpush1.bf16.msra.mxu1 %v1253_v9 }
  0x20   : > { %516 = vmatprep.subr.bf16.mxu0 %v1312_v1  ;;  %1227 = vmatprep.subr.bf16.mxu1 %v1312_v1 }
  0x23   : > { %517 = vmatpush1.bf16.msra.mxu0 %v1254_v10  ;;  %1236 = vmatpush1.bf16.msra.mxu1 %v1254_v10 }
  0x24   : > { %518 = vmatprep.subr.bf16.mxu0 %v1312_v1  ;;  %1228 = vmatprep.subr.bf16.mxu1 %v1312_v1 }
  0x27   : > { %519 = vmatpush1.bf16.msra.mxu0 %v1255_v11  ;;  %1237 = vmatpush1.bf16.msra.mxu1 %v1255_v11 }
  0x2a   : > { %535 = vmatmul.mubr.bf16.vlgmr.msra.gmra.mrb[0].mxu0 %v1256_v12  ;;  %599 = vmatmul.mubr.bf16.vlgmr.msra.gmra.mrb[0].mxu1 %v1259_v13 }
  0x2b   : > { %1041 = vmatprep.mubr.msk.bf16.mxu0 %vm453_vm0, %v1262_v14  ;;  %1049 = vmatprep.mubr.msk.bf16.mxu1 %vm453_vm0, %v1264_v15 }
  0x32   : > { %543 = vmatmul.mubr.bf16.gmra.mrb[4].mxu0 %v1266_v16  ;;  %607 = vmatmul.mubr.bf16.gmra.mrb[4].mxu1 %v1267_v17 }
  0x33   : > { %1042 = vmatprep.mubr.msk.bf16.mxu0 %vm453_vm0, %v1268_v18  ;;  %1050 = vmatprep.mubr.msk.bf16.mxu1 %vm453_vm0, %v1270_v19 }
  0x3a   : > { %551 = vmatmul.mubr.bf16.gmra.mrb[8].mxu0 %v1272_v20  ;;  %615 = vmatmul.mubr.bf16.gmra.mrb[8].mxu1 %v1273_v21 }
  0x3b   : > { %1043 = vmatprep.mubr.msk.bf16.mxu0 %vm453_vm0, %v1274_v22  ;;  %1051 = vmatprep.mubr.msk.bf16.mxu1 %vm453_vm0, %v1276_v23 }
  0x42   : > { %559 = vmatmul.mubr.bf16.gmra.mrb[12].mxu0 %v1278_v24  ;;  %623 = vmatmul.mubr.bf16.gmra.mrb[12].mxu1 %v1279_v25 }
  0x43   : > { %1044 = vmatprep.mubr.msk.bf16.mxu0 %vm453_vm0, %v1280_v26  ;;  %1052 = vmatprep.mubr.msk.bf16.mxu1 %vm453_vm0, %v1282_v27 }
  0x4a   : > { %567 = vmatmul.mubr.bf16.gmra.mrb[16].mxu0 %v1284_v28  ;;  %631 = vmatmul.mubr.bf16.gmra.mrb[16].mxu1 %v1285_v29 }
  0x4b   : > { %1045 = vmatprep.mubr.msk.bf16.mxu0 %vm453_vm0, %v1286_v30  ;;  %1053 = vmatprep.mubr.msk.bf16.mxu1 %vm453_vm0, %v1288_v31 }
  0x52   : > { %575 = vmatmul.mubr.bf16.gmra.mrb[20].mxu0 %v1290_v32  ;;  %639 = vmatmul.mubr.bf16.gmra.mrb[20].mxu1 %v1291_v33 }
  0x53   : > { %1046 = vmatprep.mubr.msk.bf16.mxu0 %vm453_vm0, %v1292_v34  ;;  %1054 = vmatprep.mubr.msk.bf16.mxu1 %vm453_vm0, %v1294_v35 }
  0x5a   : > { %583 = vmatmul.mubr.bf16.gmra.mrb[24].mxu0 %v1296_v36  ;;  %647 = vmatmul.mubr.bf16.gmra.mrb[24].mxu1 %v1297_v37 }
  0x5b   : > { %1047 = vmatprep.mubr.msk.bf16.mxu0 %vm453_vm0, %v1298_v38  ;;  %1055 = vmatprep.mubr.msk.bf16.mxu1 %vm453_vm0, %v1300_v39 }
  0x62   : > { %591 = vmatmul.mubr.bf16.gmra.mrb[28].mxu0 %v1302_v40  ;;  %655 = vmatmul.mubr.bf16.gmra.mrb[28].mxu1 %v1303_v41 }
  0xfd   : > { %v536_v43 = vpop.f32.mrb[0].mxu0  ;;  %v600_v45 = vpop.f32.mrb[0].mxu1 }
  0xfe   : > { %v670_v46 = vmul.f32 %v1432_v42, %v536_v43  ;;  %v686_v47 = vmul.f32 %v1432_v42, %v600_v45  ;;  %v538_v48 = vpop.f32.mrb[1].mxu0  ;;  %v602_v49 = vpop.f32.mrb[1].mxu1 }
  0xff   : > { %v539_v50 = vpop.f32.mrb[2].mxu0  ;;  %v603_v51 = vpop.f32.mrb[2].mxu1 }
 0x100   : > { %v709_v52 = vadd.f32 %v1437_v44, %v670_v46  ;;  %v725_v53 = vadd.f32 %v1437_v44, %v686_v47  ;;  %v671_v54 = vmul.f32 %v1432_v42, %v539_v50  ;;  %v687_v55 = vmul.f32 %v1432_v42, %v603_v51  ;;  %v541_v56 = vpop.f32.mrb[3].mxu0  ;;  %v605_v57 = vpop.f32.mrb[3].mxu1 }
 0x102   : > { %v710_v58 = vadd.f32 %v1437_v44, %v671_v54  ;;  %v726_v59 = vadd.f32 %v1437_v44, %v687_v55  ;;  %v741_v60 = vmax.f32 %v709_v52, 0.0  ;;  %v757_v61 = vmax.f32 %v725_v53, 0.0 }
 0x104   : > { %v742_v62 = vmax.f32 %v710_v58, 0.0  ;;  %v758_v63 = vmax.f32 %v726_v59, 0.0 }
 0x105   : > { %v544_v0 = vpop.f32.mrb[4].mxu0  ;;  %v608_v1 = vpop.f32.mrb[4].mxu1 }
 0x106   : > { %v1128_v2 = vpack.c.bf16 %v742_v62, %v741_v60  ;;  %v1168_v3 = vpack.c.bf16 %v758_v63, %v757_v61  ;;  %v672_v4 = vmul.f32 %v1432_v42, %v544_v0  ;;  %v688_v5 = vmul.f32 %v1432_v42, %v608_v1  ;;  %v546_v6 = vpop.f32.mrb[5].mxu0  ;;  %v610_v7 = vpop.f32.mrb[5].mxu1 }
 0x107   : > { %v547_v8 = vpop.f32.mrb[6].mxu0  ;;  %v611_v9 = vpop.f32.mrb[6].mxu1 }
 0x108   : > { %1129 = vst [vmem:[%s1451_s23] sm:$0xff] %v1128_v2   ;;  %1212 = vst [vmem:[%s1451_s23 + $0x40] sm:$0xff] %v1168_v3   ;;  %v711_v10 = vadd.f32 %v1437_v44, %v672_v4  ;;  %v727_v11 = vadd.f32 %v1437_v44, %v688_v5  ;;  %v673_v12 = vmul.f32 %v1432_v42, %v547_v8  ;;  %v549_v14 = vpop.f32.mrb[7].mxu0  ;;  %v613_v15 = vpop.f32.mrb[7].mxu1 }
 0x109   : > { %v689_v13 = vmul.f32 %v1432_v42, %v611_v9 }
 0x10a   : > { %v712_v16 = vadd.f32 %v1437_v44, %v673_v12  ;;  %v743_v18 = vmax.f32 %v711_v10, 0.0  ;;  %v759_v19 = vmax.f32 %v727_v11, 0.0 }
 0x10b   : > { %v728_v17 = vadd.f32 %v1437_v44, %v689_v13 }
 0x10c   : > { %v744_v20 = vmax.f32 %v712_v16, 0.0 }
 0x10d   : > { %v760_v21 = vmax.f32 %v728_v17, 0.0  ;;  %v552_v22 = vpop.f32.mrb[8].mxu0  ;;  %v616_v23 = vpop.f32.mrb[8].mxu1 }
 0x10e   : > { %v1133_v24 = vpack.c.bf16 %v744_v20, %v743_v18  ;;  %v674_v26 = vmul.f32 %v1432_v42, %v552_v22  ;;  %v690_v27 = vmul.f32 %v1432_v42, %v616_v23  ;;  %v554_v28 = vpop.f32.mrb[9].mxu0  ;;  %v618_v29 = vpop.f32.mrb[9].mxu1 }
 0x10f   : > { %v1173_v25 = vpack.c.bf16 %v760_v21, %v759_v19  ;;  %v555_v30 = vpop.f32.mrb[10].mxu0  ;;  %v619_v31 = vpop.f32.mrb[10].mxu1 }
 0x110   : > { %1205 = vst [vmem:[%s1451_s23 + $0x8] sm:$0xff] %v1133_v24   ;;  %v713_v32 = vadd.f32 %v1437_v44, %v674_v26  ;;  %v729_v33 = vadd.f32 %v1437_v44, %v690_v27  ;;  %v675_v34 = vmul.f32 %v1432_v42, %v555_v30  ;;  %v691_v35 = vmul.f32 %v1432_v42, %v619_v31  ;;  %v557_v36 = vpop.f32.mrb[11].mxu0  ;;  %v621_v37 = vpop.f32.mrb[11].mxu1 }
 0x111   : > { %1213 = vst [vmem:[%s1451_s23 + $0x48] sm:$0xff] %v1173_v25  }
 0x112   : > { %v714_v38 = vadd.f32 %v1437_v44, %v675_v34  ;;  %v730_v39 = vadd.f32 %v1437_v44, %v691_v35  ;;  %v745_v40 = vmax.f32 %v713_v32, 0.0  ;;  %v761_v41 = vmax.f32 %v729_v33, 0.0 }
 0x114   : > { %v746_v43 = vmax.f32 %v714_v38, 0.0  ;;  %v762_v45 = vmax.f32 %v730_v39, 0.0 }
 0x115   : > { %v560_v46 = vpop.f32.mrb[12].mxu0  ;;  %v624_v47 = vpop.f32.mrb[12].mxu1 }
 0x116   : > { %v1138_v48 = vpack.c.bf16 %v746_v43, %v745_v40  ;;  %v1178_v49 = vpack.c.bf16 %v762_v45, %v761_v41  ;;  %v676_v50 = vmul.f32 %v1432_v42, %v560_v46  ;;  %v692_v51 = vmul.f32 %v1432_v42, %v624_v47  ;;  %v562_v52 = vpop.f32.mrb[13].mxu0  ;;  %v626_v53 = vpop.f32.mrb[13].mxu1 }
 0x117   : > { %v563_v54 = vpop.f32.mrb[14].mxu0  ;;  %v627_v55 = vpop.f32.mrb[14].mxu1 }
 0x118   : > { %1206 = vst [vmem:[%s1451_s23 + $0x10] sm:$0xff] %v1138_v48   ;;  %1214 = vst [vmem:[%s1451_s23 + $0x50] sm:$0xff] %v1178_v49   ;;  %v715_v56 = vadd.f32 %v1437_v44, %v676_v50  ;;  %v731_v57 = vadd.f32 %v1437_v44, %v692_v51  ;;  %v677_v58 = vmul.f32 %v1432_v42, %v563_v54  ;;  %v565_v60 = vpop.f32.mrb[15].mxu0  ;;  %v629_v61 = vpop.f32.mrb[15].mxu1 }
 0x119   : > { %v693_v59 = vmul.f32 %v1432_v42, %v627_v55 }
 0x11a   : > { %v716_v62 = vadd.f32 %v1437_v44, %v677_v58  ;;  %v747_v0 = vmax.f32 %v715_v56, 0.0  ;;  %v763_v1 = vmax.f32 %v731_v57, 0.0 }
 0x11b   : > { %v732_v63 = vadd.f32 %v1437_v44, %v693_v59 }
 0x11c   : > { %v748_v2 = vmax.f32 %v716_v62, 0.0 }
 0x11d   : > { %v764_v3 = vmax.f32 %v732_v63, 0.0  ;;  %v568_v4 = vpop.f32.mrb[16].mxu0  ;;  %v632_v5 = vpop.f32.mrb[16].mxu1 }
 0x11e   : > { %v1143_v6 = vpack.c.bf16 %v748_v2, %v747_v0  ;;  %v678_v8 = vmul.f32 %v1432_v42, %v568_v4  ;;  %v694_v9 = vmul.f32 %v1432_v42, %v632_v5  ;;  %v570_v10 = vpop.f32.mrb[17].mxu0  ;;  %v634_v11 = vpop.f32.mrb[17].mxu1 }
 0x11f   : > { %v1183_v7 = vpack.c.bf16 %v764_v3, %v763_v1  ;;  %v571_v12 = vpop.f32.mrb[18].mxu0  ;;  %v635_v13 = vpop.f32.mrb[18].mxu1 }
 0x120   : > { %1207 = vst [vmem:[%s1451_s23 + $0x18] sm:$0xff] %v1143_v6   ;;  %v717_v14 = vadd.f32 %v1437_v44, %v678_v8  ;;  %v733_v15 = vadd.f32 %v1437_v44, %v694_v9  ;;  %v679_v16 = vmul.f32 %v1432_v42, %v571_v12  ;;  %v695_v17 = vmul.f32 %v1432_v42, %v635_v13  ;;  %v573_v18 = vpop.f32.mrb[19].mxu0  ;;  %v637_v19 = vpop.f32.mrb[19].mxu1 }
 0x121   : > { %1215 = vst [vmem:[%s1451_s23 + $0x58] sm:$0xff] %v1183_v7  }
 0x122   : > { %v718_v20 = vadd.f32 %v1437_v44, %v679_v16  ;;  %v734_v21 = vadd.f32 %v1437_v44, %v695_v17  ;;  %v749_v22 = vmax.f32 %v717_v14, 0.0  ;;  %v765_v23 = vmax.f32 %v733_v15, 0.0 }
 0x124   : > { %v750_v24 = vmax.f32 %v718_v20, 0.0  ;;  %v766_v25 = vmax.f32 %v734_v21, 0.0 }
 0x125   : > { %v576_v26 = vpop.f32.mrb[20].mxu0  ;;  %v640_v27 = vpop.f32.mrb[20].mxu1 }
 0x126   : > { %v1148_v28 = vpack.c.bf16 %v750_v24, %v749_v22  ;;  %v1188_v29 = vpack.c.bf16 %v766_v25, %v765_v23  ;;  %v680_v30 = vmul.f32 %v1432_v42, %v576_v26  ;;  %v696_v31 = vmul.f32 %v1432_v42, %v640_v27  ;;  %v578_v32 = vpop.f32.mrb[21].mxu0  ;;  %v642_v33 = vpop.f32.mrb[21].mxu1 }
 0x127   : > { %v579_v34 = vpop.f32.mrb[22].mxu0  ;;  %v643_v35 = vpop.f32.mrb[22].mxu1 }
 0x128   : > { %1208 = vst [vmem:[%s1451_s23 + $0x20] sm:$0xff] %v1148_v28   ;;  %1216 = vst [vmem:[%s1451_s23 + $0x60] sm:$0xff] %v1188_v29   ;;  %v719_v36 = vadd.f32 %v1437_v44, %v680_v30  ;;  %v735_v37 = vadd.f32 %v1437_v44, %v696_v31  ;;  %v681_v38 = vmul.f32 %v1432_v42, %v579_v34  ;;  %v581_v40 = vpop.f32.mrb[23].mxu0  ;;  %v645_v41 = vpop.f32.mrb[23].mxu1 }
 0x129   : > { %v697_v39 = vmul.f32 %v1432_v42, %v643_v35 }
 0x12a   : > { %v720_v43 = vadd.f32 %v1437_v44, %v681_v38  ;;  %v751_v46 = vmax.f32 %v719_v36, 0.0  ;;  %v767_v47 = vmax.f32 %v735_v37, 0.0 }
 0x12b   : > { %v736_v45 = vadd.f32 %v1437_v44, %v697_v39 }
 0x12c   : > { %v752_v48 = vmax.f32 %v720_v43, 0.0 }
 0x12d   : > { %v768_v49 = vmax.f32 %v736_v45, 0.0  ;;  %v584_v50 = vpop.f32.mrb[24].mxu0  ;;  %v648_v51 = vpop.f32.mrb[24].mxu1 }
 0x12e   : > { %v1153_v52 = vpack.c.bf16 %v752_v48, %v751_v46  ;;  %v682_v54 = vmul.f32 %v1432_v42, %v584_v50  ;;  %v698_v55 = vmul.f32 %v1432_v42, %v648_v51  ;;  %v586_v56 = vpop.f32.mrb[25].mxu0  ;;  %v650_v57 = vpop.f32.mrb[25].mxu1 }
 0x12f   : > { %v1193_v53 = vpack.c.bf16 %v768_v49, %v767_v47  ;;  %v587_v58 = vpop.f32.mrb[26].mxu0  ;;  %v651_v59 = vpop.f32.mrb[26].mxu1 }
 0x130   : > { %1209 = vst [vmem:[%s1451_s23 + $0x28] sm:$0xff] %v1153_v52   ;;  %v721_v60 = vadd.f32 %v1437_v44, %v682_v54  ;;  %v737_v61 = vadd.f32 %v1437_v44, %v698_v55  ;;  %v683_v62 = vmul.f32 %v1432_v42, %v587_v58  ;;  %v699_v63 = vmul.f32 %v1432_v42, %v651_v59  ;;  %v589_v0 = vpop.f32.mrb[27].mxu0  ;;  %v653_v1 = vpop.f32.mrb[27].mxu1 }
 0x131   : > { %1217 = vst [vmem:[%s1451_s23 + $0x68] sm:$0xff] %v1193_v53  }
 0x132   : > { %v722_v2 = vadd.f32 %v1437_v44, %v683_v62  ;;  %v738_v3 = vadd.f32 %v1437_v44, %v699_v63  ;;  %v753_v4 = vmax.f32 %v721_v60, 0.0  ;;  %v769_v5 = vmax.f32 %v737_v61, 0.0 }
 0x134   : > { %v754_v6 = vmax.f32 %v722_v2, 0.0  ;;  %v770_v7 = vmax.f32 %v738_v3, 0.0 }
 0x135   : > { %v592_v8 = vpop.f32.mrb[28].mxu0  ;;  %v656_v9 = vpop.f32.mrb[28].mxu1 }
 0x136   : > { %v1158_v10 = vpack.c.bf16 %v754_v6, %v753_v4  ;;  %v1198_v11 = vpack.c.bf16 %v770_v7, %v769_v5  ;;  %v684_v12 = vmul.f32 %v1432_v42, %v592_v8  ;;  %v700_v13 = vmul.f32 %v1432_v42, %v656_v9  ;;  %v594_v14 = vpop.f32.mrb[29].mxu0  ;;  %v658_v15 = vpop.f32.mrb[29].mxu1 }
 0x137   : > { %v595_v16 = vpop.f32.mrb[30].mxu0  ;;  %v659_v17 = vpop.f32.mrb[30].mxu1 }
 0x138   : > { %1210 = vst [vmem:[%s1451_s23 + $0x30] sm:$0xff] %v1158_v10   ;;  %1218 = vst [vmem:[%s1451_s23 + $0x70] sm:$0xff] %v1198_v11   ;;  %v723_v18 = vadd.f32 %v1437_v44, %v684_v12  ;;  %v739_v19 = vadd.f32 %v1437_v44, %v700_v13  ;;  %v685_v20 = vmul.f32 %v1432_v42, %v595_v16  ;;  %v597_v22 = vpop.f32.mrb[31].mxu0  ;;  %v661_v23 = vpop.f32.mrb[31].mxu1 }
 0x139   : > { %v701_v21 = vmul.f32 %v1432_v42, %v659_v17 }
 0x13a   : > { %v724_v24 = vadd.f32 %v1437_v44, %v685_v20  ;;  %v755_v26 = vmax.f32 %v723_v18, 0.0  ;;  %v771_v27 = vmax.f32 %v739_v19, 0.0 }
 0x13b   : > { %v740_v25 = vadd.f32 %v1437_v44, %v701_v21 }
 0x13c   : > { %v756_v28 = vmax.f32 %v724_v24, 0.0 }
 0x13d   : > { %v772_v29 = vmax.f32 %v740_v25, 0.0 }
 0x13e   : > { %v1163_v30 = vpack.c.bf16 %v756_v28, %v755_v26 }
 0x13f   : > { %v1203_v31 = vpack.c.bf16 %v772_v29, %v771_v27 }
 0x140   : > { %1211 = vst [vmem:[%s1451_s23 + $0x38] sm:$0xff] %v1163_v30  }
 0x141   : > { %1219 = vst [vmem:[%s1451_s23 + $0x78] sm:$0xff] %v1203_v31  }
 0x142 PF: > { %s14_s15 = sadd.s32 1, %s1310_s15  }
 0x143   : > { %p11_p4 = scmp.ge.s32.totalorder %s14_s15, 4  }
 0x145   :  { %13 = sbr.rel (!%p11_p4) target bundleno = 1 (0x1), region = 66 }

// kernel: regnet_forward.4
= control target key start
LH: loop header
LB: loop body
LE: loop exit
PB: predicated region body
PF: predicated region fallthrough
CT: control target
= control target key end

     0   :  { %s6916_s0 = inlined_call_operand.vmem [shape: bf16[2,256,128], index: 0, kind: input, shape index: {}]   ;;  %s6917_s1 = inlined_call_operand.vmem [shape: bf16[576,256], index: 1, kind: input, shape index: {}]   ;;  %s6918_s2 = inlined_call_operand.vmem [shape: bf16[64,256], index: 2, kind: input, shape index: {}]   ;;  %s6919_s3 = inlined_call_operand.vmem [shape: bf16[128,128], index: 3, kind: input, shape index: {}]   ;;  %s6920_s4 = inlined_call_operand.vmem [shape: f32[1,128], index: 4, kind: input, shape index: {}]   ;;  %s6921_s5 = inlined_call_operand.vmem [shape: f32[1,128], index: 5, kind: input, shape index: {}]   ;;  %s6922_s6 = inlined_call_operand.vmem [shape: bf16[1152,128], index: 6, kind: input, shape index: {}]   ;;  %s6923_s7 = inlined_call_operand.vmem [shape: f32[1,128], index: 7, kind: input, shape index: {}]   ;;  %s6924_s8 = inlined_call_operand.vmem [shape: f32[1,128], index: 8, kind: input, shape index: {}]   ;;  %s6925_s9 = inlined_call_operand.vmem [shape: bf16[128,128], index: 9, kind: input, shape index: {}]   ;;  %s6926_s10 = inlined_call_operand.vmem [shape: f32[1,128], index: 10, kind: input, shape index: {}]   ;;  %s6927_s11 = inlined_call_operand.vmem [shape: f32[1,128], index: 11, kind: input, shape index: {}]   ;;  %s6928_s12 = inlined_call_operand.vmem [shape: bf16[128,128], index: 12, kind: input, shape index: {}]   ;;  %s6929_s13 = inlined_call_operand.vmem [shape: f32[1,128], index: 13, kind: input, shape index: {}]   ;;  %s6930_s14 = inlined_call_operand.vmem [shape: bf16[128,128], index: 14, kind: input, shape index: {}]   ;;  %s6931_s15 = inlined_call_operand.vmem [shape: f32[1,128], index: 15, kind: input, shape index: {}]   ;;  %s6932_s16 = inlined_call_operand.vmem [shape: bf16[128,128], index: 16, kind: input, shape index: {}]   ;;  %s6933_s17 = inlined_call_operand.vmem [shape: f32[1,128], index: 17, kind: input, shape index: {}]   ;;  %s6934_s18 = inlined_call_operand.vmem [shape: f32[1,128], index: 18, kind: input, shape index: {}]   ;;  %s6935_s19 = inlined_call_operand.vmem [shape: bf16[2,64,128], index: 19, kind: output, shape index: {}]  }
   0x1   :  { %6939 = sst [smem:[#allocation2_spill]] %s6916_s0  ;;  %s5861_s0 = smov 0  }
   0x2   :  { %6940 = sst [smem:[#allocation3_spill]] %s6917_s1 }
   0x3   :  { %6941 = sst [smem:[#allocation4_spill]] %s6918_s2 }
   0x4   :  { %6942 = sst [smem:[#allocation5_spill]] %s6919_s3 }
   0x5 LB: > { %s4198_s30 = sadd.s32 4294967295, %s5757_s0   ;;  %p4202_p0 = scmp.ge.s32.totalorder %s5757_s0, 1  ;;  %s5757_s0 = sphi %s5861_s0, %s29_s0  }
   0x6   : > { %p537_p1 = scmp.lt.s32.totalorder %s5757_s0, 3 }
   0x8   : > { %p538_p2 = pnand %p4202_p0, %p537_p1 }
   0x9   : > { %s6943_s1 = sld [smem:[#allocation5_spill]] (!%p538_p2)  ;;  %p593_p3 = scmp.lt.s32.totalorder (!%p538_p2), %s4198_s30, 1  ;;  %v5923_v25 = vld [vmem:[%s6920_s4] ss:$0 sm:$0xff] (!%p538_p2)  ;;  %vm5760_vm0 = vmmov (!%p538_p2), 0  }
   0xa   : > { %541 = sbr.rel (%p538_p2) target bundleno = 1774 (0x6ee), region = 96  ;;  %s6944_s27 = sld [smem:[#allocation2_spill]] (!%p538_p2)  ;;  %v5928_v27 = vld [vmem:[%s6921_s5] ss:$0 sm:$0xff] (!%p538_p2) }
   0xb   : > { %s6945_s20 = sld [smem:[#allocation3_spill]] (!%p538_p2) }
   0xf   : > { %v5483_v0 = vld [vmem:[%s6943_s1] sm:$0xff] (!%p538_p2)   ;;  %v5484_v1 = vld [vmem:[%s6943_s1 + $0x8] sm:$0xff] (!%p538_p2)   ;;  %v5485_v2 = vld [vmem:[%s6943_s1 + $0x10] sm:$0xff] (!%p538_p2)  }
  0x10   : > { %5041 = vmatprep.subr.bf16.mxu0 (!%p538_p2), %v5483_v0  ;;  %5393 = vmatprep.subr.bf16.mxu1 (!%p538_p2), %v5483_v0  ;;  %v5486_v3 = vld [vmem:[%s6943_s1 + $0x18] sm:$0xff] (!%p538_p2)   ;;  %v5487_v6 = vld [vmem:[%s6943_s1 + $0x20] sm:$0xff] (!%p538_p2)   ;;  %v5488_v7 = vld [vmem:[%s6943_s1 + $0x28] sm:$0xff] (!%p538_p2)  }
  0x11   : > { %s6948_s30 = smov (!%p593_p3, %s4198_s30), 1  ;;  %5042 = vmatpush3.bf16.msra.mxu0 %v5483_v0  ;;  %5401 = vmatpush3.bf16.msra.mxu1 %v5483_v0  ;;  %v5489_v8 = vld [vmem:[%s6943_s1 + $0x30] sm:$0xff]   ;;  %v5490_v9 = vld [vmem:[%s6943_s1 + $0x38] sm:$0xff]   ;;  %v5509_v24 = vld [vmem:[%s6945_s20 + $0x4] ss:$8 sps:$4 sm:$0xff]  }
  0x12   : > { %5043 = vmatprep.subr.bf16.mxu0 %v5484_v1  ;;  %5394 = vmatprep.subr.bf16.mxu1 %v5484_v1  ;;  %s4434_s25 = sshll.u32 %s6948_s30, 7  ;;  %s4435_s3 = sshll.u32 %s6948_s30, 5 }
  0x13   : > { %s5884_s28 = scalar_lea.vmem %s6944_s27, %s4434_s25  ;;  %s602_s29 = scalar_lea.vmem %s6935_s19, %s4435_s3 }
  0x14   : > { %v5491_v4 = vld [vmem:[%s5884_s28] sm:$0xff]   ;;  %v5493_v10 = vld [vmem:[%s5884_s28 + $0x8] sm:$0xff]   ;;  %v5495_v12 = vld [vmem:[%s5884_s28 + $0x10] sm:$0xff]  }
  0x15   : > { %5044 = vmatpush3.bf16.msra.mxu0 %v5484_v1  ;;  %5402 = vmatpush3.bf16.msra.mxu1 %v5484_v1  ;;  %v5492_v5 = vld [vmem:[%s5884_s28 + $0x40] sm:$0xff]   ;;  %v5494_v11 = vld [vmem:[%s5884_s28 + $0x48] sm:$0xff]   ;;  %v5496_v13 = vld [vmem:[%s5884_s28 + $0x50] sm:$0xff]  }
  0x16   : > { %5045 = vmatprep.subr.bf16.mxu0 %v5485_v2  ;;  %5395 = vmatprep.subr.bf16.mxu1 %v5485_v2  ;;  %v5497_v14 = vld [vmem:[%s5884_s28 + $0x18] sm:$0xff]   ;;  %v5499_v16 = vld [vmem:[%s5884_s28 + $0x20] sm:$0xff]   ;;  %v5501_v18 = vld [vmem:[%s5884_s28 + $0x28] sm:$0xff]  }
  0x17   : > { %5057 = vmatprep.mubr.bf16.mxu0 %v5491_v4  ;;  %5073 = vmatprep.mubr.bf16.mxu1 %v5492_v5  ;;  %v5498_v15 = vld [vmem:[%s5884_s28 + $0x58] sm:$0xff]   ;;  %v5500_v17 = vld [vmem:[%s5884_s28 + $0x60] sm:$0xff]   ;;  %v5502_v19 = vld [vmem:[%s5884_s28 + $0x68] sm:$0xff]  }
  0x18   : > { %v5503_v20 = vld [vmem:[%s5884_s28 + $0x30] sm:$0xff]   ;;  %v5505_v22 = vld [vmem:[%s5884_s28 + $0x38] sm:$0xff]  }
  0x19   : > { %5046 = vmatpush3.bf16.msra.mxu0 %v5485_v2  ;;  %5403 = vmatpush3.bf16.msra.mxu1 %v5485_v2  ;;  %v5504_v21 = vld [vmem:[%s5884_s28 + $0x70] sm:$0xff]   ;;  %v5506_v23 = vld [vmem:[%s5884_s28 + $0x78] sm:$0xff]  }
  0x1a   : > { %5047 = vmatprep.subr.bf16.mxu0 %v5486_v3  ;;  %5396 = vmatprep.subr.bf16.mxu1 %v5486_v3 }
  0x1d   : > { %5048 = vmatpush3.bf16.msra.mxu0 %v5486_v3  ;;  %5404 = vmatpush3.bf16.msra.mxu1 %v5486_v3 }
  0x1e   : > { %5049 = vmatprep.subr.bf16.mxu0 %v5487_v6  ;;  %5397 = vmatprep.subr.bf16.mxu1 %v5487_v6 }
  0x21   : > { %5050 = vmatpush3.bf16.msra.mxu0 %v5487_v6  ;;  %5405 = vmatpush3.bf16.msra.mxu1 %v5487_v6 }
  0x22   : > { %5051 = vmatprep.subr.bf16.mxu0 %v5488_v7  ;;  %5398 = vmatprep.subr.bf16.mxu1 %v5488_v7 }
  0x25   : > { %5052 = vmatpush3.bf16.msra.mxu0 %v5488_v7  ;;  %5406 = vmatpush3.bf16.msra.mxu1 %v5488_v7 }
  0x26   : > { %5053 = vmatprep.subr.bf16.mxu0 %v5489_v8  ;;  %5399 = vmatprep.subr.bf16.mxu1 %v5489_v8 }
  0x29   : > { %5054 = vmatpush3.bf16.msra.mxu0 %v5489_v8  ;;  %5407 = vmatpush3.bf16.msra.mxu1 %v5489_v8 }
  0x2a   : > { %5055 = vmatprep.subr.bf16.mxu0 %v5490_v9  ;;  %5400 = vmatprep.subr.bf16.mxu1 %v5490_v9 }
  0x2d   : > { %5056 = vmatpush3.bf16.msra.mxu0 %v5490_v9  ;;  %5408 = vmatpush3.bf16.msra.mxu1 %v5490_v9 }
  0x30   : > { %5058 = vmatmul.mubr.bf16.vlgmr.msra.gmra.mrb[0].mxu0 %v5493_v10  ;;  %5074 = vmatmul.mubr.bf16.vlgmr.msra.gmra.mrb[0].mxu1 %v5494_v11 }
  0x31   : > { %5061 = vmatprep.mubr.bf16.mxu0 %v5495_v12  ;;  %5077 = vmatprep.mubr.bf16.mxu1 %v5496_v13 }
  0x38   : > { %5062 = vmatmul.mubr.bf16.gmra.mrb[4].mxu0 %v5497_v14  ;;  %5078 = vmatmul.mubr.bf16.gmra.mrb[4].mxu1 %v5498_v15 }
  0x39   : > { %5065 = vmatprep.mubr.bf16.mxu0 %v5499_v16  ;;  %5081 = vmatprep.mubr.bf16.mxu1 %v5500_v17 }
  0x40   : > { %5066 = vmatmul.mubr.bf16.gmra.mrb[8].mxu0 %v5501_v18  ;;  %5082 = vmatmul.mubr.bf16.gmra.mrb[8].mxu1 %v5502_v19 }
  0x41   : > { %5069 = vmatprep.mubr.bf16.mxu0 %v5503_v20  ;;  %5085 = vmatprep.mubr.bf16.mxu1 %v5504_v21 }
  0x48   : > { %5070 = vmatmul.mubr.bf16.gmra.mrb[12].mxu0 %v5505_v22  ;;  %5086 = vmatmul.mubr.bf16.gmra.mrb[12].mxu1 %v5506_v23 }
  0x49   : > { %1163 = vmatprep.mubr.bf16.mxu1 %v5509_v24 }
 0x103   : > { %v5059_v26 = vpop.f32.mrb[0].mxu0  ;;  %v5075_v28 = vpop.f32.mrb[0].mxu1 }
 0x104   : > { %v966_v29 = vmul.f32 %v5059_v26, %v5923_v25  ;;  %v982_v30 = vmul.f32 %v5075_v28, %v5923_v25  ;;  %v830_v31 = vpop.f32.mrb[1].mxu0  ;;  %v894_v32 = vpop.f32.mrb[1].mxu1 }
 0x105   : > { %v964_v33 = vmul.f32 %v5923_v25, %v830_v31  ;;  %v980_v34 = vmul.f32 %v5923_v25, %v894_v32  ;;  %v5060_v35 = vpop.f32.mrb[2].mxu0  ;;  %v5076_v36 = vpop.f32.mrb[2].mxu1 }
 0x106   : > { %v1005_v37 = vadd.f32 %v5928_v27, %v966_v29  ;;  %v1021_v38 = vadd.f32 %v5928_v27, %v982_v30  ;;  %v967_v39 = vmul.f32 %v5060_v35, %v5923_v25  ;;  %v983_v40 = vmul.f32 %v5076_v36, %v5923_v25  ;;  %v833_v41 = vpop.f32.mrb[3].mxu0  ;;  %v897_v42 = vpop.f32.mrb[3].mxu1 }
 0x107   : > { %v1003_v43 = vadd.f32 %v5928_v27, %v964_v33  ;;  %v1019_v44 = vadd.f32 %v5928_v27, %v980_v34  ;;  %v965_v45 = vmul.f32 %v5923_v25, %v833_v41  ;;  %v981_v46 = vmul.f32 %v5923_v25, %v897_v42 }
 0x108   : > { %v1037_v47 = vmax.f32 %v1005_v37, 0.0  ;;  %v1006_v48 = vadd.f32 %v5928_v27, %v967_v39  ;;  %v1022_v49 = vadd.f32 %v5928_v27, %v983_v40  ;;  %v1053_v52 = vmax.f32 %v1021_v38, 0.0 }
 0x109   : > { %v1004_v50 = vadd.f32 %v5928_v27, %v965_v45  ;;  %v1020_v51 = vadd.f32 %v5928_v27, %v981_v46  ;;  %v1035_v55 = vmax.f32 %v1003_v43, 0.0  ;;  %v1051_v56 = vmax.f32 %v1019_v44, 0.0 }
 0x10a   : > { %v1038_v53 = vmax.f32 %v1006_v48, 0.0  ;;  %v1054_v54 = vmax.f32 %v1022_v49, 0.0 }
 0x10b   : > { %v1036_v57 = vmax.f32 %v1004_v50, 0.0  ;;  %v1052_v58 = vmax.f32 %v1020_v51, 0.0  ;;  %v5063_v59 = vpop.f32.mrb[4].mxu0  ;;  %v5079_v60 = vpop.f32.mrb[4].mxu1 }
 0x10c   : > { %v5946_v61 = vpack.c.bf16 %v1038_v53, %v1037_v47  ;;  %v5948_v62 = vpack.c.bf16 %v1054_v54, %v1053_v52  ;;  %v970_v63 = vmul.f32 %v5063_v59, %v5923_v25  ;;  %v986_v0 = vmul.f32 %v5079_v60, %v5923_v25  ;;  %v846_v1 = vpop.f32.mrb[5].mxu0  ;;  %v910_v2 = vpop.f32.mrb[5].mxu1 }
 0x10d   : > { %v5952_v3 = vpack.c.bf16 %v1036_v57, %v1035_v55  ;;  %v5954_v4 = vpack.c.bf16 %v1052_v58, %v1051_v56  ;;  %v968_v5 = vmul.f32 %v5923_v25, %v846_v1  ;;  %v984_v6 = vmul.f32 %v5923_v25, %v910_v2  ;;  %v5064_v7 = vpop.f32.mrb[6].mxu0  ;;  %v5080_v8 = vpop.f32.mrb[6].mxu1 }
 0x10e   : > { %v1009_v9 = vadd.f32 %v5928_v27, %v970_v63  ;;  %v1025_v10 = vadd.f32 %v5928_v27, %v986_v0  ;;  %v971_v11 = vmul.f32 %v5064_v7, %v5923_v25  ;;  %v987_v12 = vmul.f32 %v5080_v8, %v5923_v25  ;;  %v849_v13 = vpop.f32.mrb[7].mxu0  ;;  %v913_v14 = vpop.f32.mrb[7].mxu1 }
 0x10f   : > { %v1007_v15 = vadd.f32 %v5928_v27, %v968_v5  ;;  %v1023_v16 = vadd.f32 %v5928_v27, %v984_v6  ;;  %v969_v17 = vmul.f32 %v5923_v25, %v849_v13  ;;  %v985_v18 = vmul.f32 %v5923_v25, %v913_v14  ;;  %4491 = vmatprep.subr.bf16.mxu1 %v5954_v4 }
 0x110   : > { %v1041_v19 = vmax.f32 %v1009_v9, 0.0  ;;  %v1010_v20 = vadd.f32 %v5928_v27, %v971_v11  ;;  %v1026_v21 = vadd.f32 %v5928_v27, %v987_v12  ;;  %4492 = vmatpush3.bf16.msra.mxu1 %v5952_v3  ;;  %v1057_v24 = vmax.f32 %v1025_v10, 0.0 }
 0x111   : > { %v1008_v22 = vadd.f32 %v5928_v27, %v969_v17  ;;  %v1024_v23 = vadd.f32 %v5928_v27, %v985_v18  ;;  %4493 = vmatprep.subr.bf16.mxu1 %v5948_v62  ;;  %v1039_v29 = vmax.f32 %v1007_v15, 0.0  ;;  %v1055_v30 = vmax.f32 %v1023_v16, 0.0 }
 0x112   : > { %v1042_v26 = vmax.f32 %v1010_v20, 0.0  ;;  %v1058_v28 = vmax.f32 %v1026_v21, 0.0 }
 0x113   : > { %v1040_v31 = vmax.f32 %v1008_v22, 0.0  ;;  %v1056_v32 = vmax.f32 %v1024_v23, 0.0  ;;  %v5067_v33 = vpop.f32.mrb[8].mxu0  ;;  %v5083_v34 = vpop.f32.mrb[8].mxu1 }
 0x114   : > { %v5973_v35 = vpack.c.bf16 %v1042_v26, %v1041_v19  ;;  %v5975_v36 = vpack.c.bf16 %v1058_v28, %v1057_v24  ;;  %v974_v37 = vmul.f32 %v5067_v33, %v5923_v25  ;;  %v990_v38 = vmul.f32 %v5083_v34, %v5923_v25  ;;  %v862_v39 = vpop.f32.mrb[9].mxu0  ;;  %v926_v40 = vpop.f32.mrb[9].mxu1  ;;  %4494 = vmatpush3.bf16.msra.mxu1 %v5946_v61 }
 0x115   : > { %v5980_v41 = vpack.c.bf16 %v1040_v31, %v1039_v29  ;;  %v5982_v42 = vpack.c.bf16 %v1056_v32, %v1055_v30  ;;  %v972_v43 = vmul.f32 %v5923_v25, %v862_v39  ;;  %v988_v44 = vmul.f32 %v5923_v25, %v926_v40  ;;  %v5068_v45 = vpop.f32.mrb[10].mxu0  ;;  %v5084_v46 = vpop.f32.mrb[10].mxu1 }
 0x116   : > { %v1013_v47 = vadd.f32 %v5928_v27, %v974_v37  ;;  %v1029_v48 = vadd.f32 %v5928_v27, %v990_v38  ;;  %v975_v49 = vmul.f32 %v5068_v45, %v5923_v25  ;;  %v991_v50 = vmul.f32 %v5084_v46, %v5923_v25  ;;  %v865_v51 = vpop.f32.mrb[11].mxu0  ;;  %v929_v52 = vpop.f32.mrb[11].mxu1 }
 0x117   : > { %v1011_v53 = vadd.f32 %v5928_v27, %v972_v43  ;;  %v1027_v54 = vadd.f32 %v5928_v27, %v988_v44  ;;  %v973_v55 = vmul.f32 %v5923_v25, %v865_v51  ;;  %v989_v56 = vmul.f32 %v5923_v25, %v929_v52  ;;  %4495 = vmatprep.subr.bf16.mxu1 %v5982_v42 }
 0x118   : > { %v1045_v57 = vmax.f32 %v1013_v47, 0.0  ;;  %v1014_v58 = vadd.f32 %v5928_v27, %v975_v49  ;;  %v1030_v59 = vadd.f32 %v5928_v27, %v991_v50  ;;  %4496 = vmatpush3.bf16.msra.mxu1 %v5980_v41  ;;  %v1061_v0 = vmax.f32 %v1029_v48, 0.0 }
 0x119   : > { %v1012_v60 = vadd.f32 %v5928_v27, %v973_v55  ;;  %v1028_v63 = vadd.f32 %v5928_v27, %v989_v56  ;;  %4497 = vmatprep.subr.bf16.mxu1 %v5975_v36  ;;  %v1043_v5 = vmax.f32 %v1011_v53, 0.0  ;;  %v1059_v6 = vmax.f32 %v1027_v54, 0.0  ;;  %v5510_v54 = vld [vmem:[%s6945_s20 + $0x14] ss:$8 sps:$4 sm:$0xff]   ;;  %v5512_v55 = vld [vmem:[%s6945_s20 + $0x10] ss:$8 sps:$4 sm:$0xff]  }
 0x11a   : > { %v1046_v1 = vmax.f32 %v1014_v58, 0.0  ;;  %v1062_v2 = vmax.f32 %v1030_v59, 0.0  ;;  %v5513_v56 = vld [vmem:[%s6945_s20 + $0x24] ss:$8 sps:$4 sm:$0xff]   ;;  %v5516_v58 = vld [vmem:[%s6945_s20 + $0x34] ss:$8 sps:$4 sm:$0xff]  }
 0x11b   : > { %v1044_v7 = vmax.f32 %v1012_v60, 0.0  ;;  %v1060_v8 = vmax.f32 %v1028_v63, 0.0  ;;  %v5071_v9 = vpop.f32.mrb[12].mxu0  ;;  %v5087_v10 = vpop.f32.mrb[12].mxu1  ;;  %v5518_v59 = vld [vmem:[%s6945_s20 + $0x30] ss:$8 sps:$4 sm:$0xff]  }
 0x11c   : > { %v6001_v11 = vpack.c.bf16 %v1046_v1, %v1045_v57  ;;  %v6003_v12 = vpack.c.bf16 %v1062_v2, %v1061_v0  ;;  %v978_v13 = vmul.f32 %v5071_v9, %v5923_v25  ;;  %v994_v14 = vmul.f32 %v5087_v10, %v5923_v25  ;;  %v878_v15 = vpop.f32.mrb[13].mxu0  ;;  %v942_v16 = vpop.f32.mrb[13].mxu1  ;;  %4498 = vmatpush3.bf16.msra.mxu1 %v5973_v35  ;;  %v5515_v57 = vld [vmem:[%s6945_s20 + $0x20] ss:$8 sps:$4 sm:$0xff]   ;;  %v5521_v60 = vld [vmem:[%s6945_s20 + $0x44] ss:$8 sps:$4 sm:$0xff]  }
 0x11d   : > { %v6008_v17 = vpack.c.bf16 %v1044_v7, %v1043_v5  ;;  %v6010_v18 = vpack.c.bf16 %v1060_v8, %v1059_v6  ;;  %v976_v19 = vmul.f32 %v5923_v25, %v878_v15  ;;  %v992_v20 = vmul.f32 %v5923_v25, %v942_v16  ;;  %v5072_v21 = vpop.f32.mrb[14].mxu0  ;;  %v5088_v22 = vpop.f32.mrb[14].mxu1  ;;  %v5519_v63 = vld [vmem:[%s6945_s20 + $0x40] ss:$8 sps:$4 sm:$0xff]   ;;  %v5522_v0 = vld [vmem:[%s6945_s20 + $0x54] ss:$8 sps:$4 sm:$0xff]  }
 0x11e   : > { %v1017_v23 = vadd.f32 %v5928_v27, %v978_v13  ;;  %v1033_v24 = vadd.f32 %v5928_v27, %v994_v14  ;;  %v979_v26 = vmul.f32 %v5072_v21, %v5923_v25  ;;  %v995_v28 = vmul.f32 %v5088_v22, %v5923_v25  ;;  %v881_v29 = vpop.f32.mrb[15].mxu0  ;;  %v945_v30 = vpop.f32.mrb[15].mxu1  ;;  %v5524_v1 = vld [vmem:[%s6945_s20 + $0x50] ss:$8 sps:$4 sm:$0xff]   ;;  %v5525_v2 = vld [vmem:[%s6945_s20 + $0x64] ss:$8 sps:$4 sm:$0xff]  }
 0x11f   : > { %v1015_v31 = vadd.f32 %v5928_v27, %v976_v19  ;;  %v1031_v32 = vadd.f32 %v5928_v27, %v992_v20  ;;  %v977_v33 = vmul.f32 %v5923_v25, %v881_v29  ;;  %v993_v34 = vmul.f32 %v5923_v25, %v945_v30  ;;  %4499 = vmatprep.subr.bf16.mxu1 %v6010_v18  ;;  %v5527_v5 = vld [vmem:[%s6945_s20 + $0x60] ss:$8 sps:$4 sm:$0xff]   ;;  %v5528_v6 = vld [vmem:[%s6945_s20 + $0x74] ss:$8 sps:$4 sm:$0xff]   ;;  %v5530_v7 = vld [vmem:[%s6945_s20 + $0x70] ss:$8 sps:$4 sm:$0xff]  }
 0x120   : > { %v1049_v37 = vmax.f32 %v1017_v23, 0.0  ;;  %v1018_v38 = vadd.f32 %v5928_v27, %v979_v26  ;;  %v1034_v39 = vadd.f32 %v5928_v27, %v995_v28  ;;  %4500 = vmatpush3.bf16.msra.mxu1 %v6008_v17  ;;  %v1065_v44 = vmax.f32 %v1033_v24, 0.0  ;;  %v5533_v8 = vld [vmem:[%s6945_s20 + $0x84] ss:$8 sps:$4 sm:$0xff]   ;;  %v5531_v9 = vld [vmem:[%s6945_s20 + $0x80] ss:$8 sps:$4 sm:$0xff]  }
 0x121   : > { %v1016_v40 = vadd.f32 %v5928_v27, %v977_v33  ;;  %v1032_v43 = vadd.f32 %v5928_v27, %v993_v34  ;;  %4501 = vmatprep.subr.bf16.mxu1 %v6003_v12  ;;  %v1047_v47 = vmax.f32 %v1015_v31, 0.0  ;;  %v1063_v25 = vmax.f32 %v1031_v32, 0.0  ;;  %v5507_v27 = vld [vmem:[%s6945_s20] ss:$8 sps:$4 sm:$0xff]   ;;  %v5534_v10 = vld [vmem:[%s6945_s20 + $0x94] ss:$8 sps:$4 sm:$0xff]  }
 0x122   : > { %v1050_v45 = vmax.f32 %v1018_v38, 0.0  ;;  %v1066_v46 = vmax.f32 %v1034_v39, 0.0  ;;  %v5536_v13 = vld [vmem:[%s6945_s20 + $0x90] ss:$8 sps:$4 sm:$0xff]   ;;  %v5537_v14 = vld [vmem:[%s6945_s20 + $0xa4] ss:$8 sps:$4 sm:$0xff]  }
 0x123   : > { %v1048_v48 = vmax.f32 %v1016_v40, 0.0  ;;  %v1064_v49 = vmax.f32 %v1032_v43, 0.0  ;;  %v5539_v15 = vld [vmem:[%s6945_s20 + $0xa0] ss:$8 sps:$4 sm:$0xff]   ;;  %v5540_v16 = vld [vmem:[%s6945_s20 + $0xb4] ss:$8 sps:$4 sm:$0xff]  }
 0x124   : > { %v6029_v50 = vpack.c.bf16 %v1050_v45, %v1049_v37  ;;  %v6031_v51 = vpack.c.bf16 %v1066_v46, %v1065_v44  ;;  %4502 = vmatpush3.bf16.msra.mxu1 %v6001_v11  ;;  %v5542_v19 = vld [vmem:[%s6945_s20 + $0xb0] ss:$8 sps:$4 sm:$0xff]   ;;  %v5545_v20 = vld [vmem:[%s6945_s20 + $0xc4] ss:$8 sps:$4 sm:$0xff]   ;;  %v5543_v21 = vld [vmem:[%s6945_s20 + $0xc0] ss:$8 sps:$4 sm:$0xff]  }
 0x125   : > { %v6034_v52 = vpack.c.bf16 %v1048_v48, %v1047_v47  ;;  %v6036_v53 = vpack.c.bf16 %v1064_v49, %v1063_v25  ;;  %v5546_v22 = vld [vmem:[%s6945_s20 + $0xd4] ss:$8 sps:$4 sm:$0xff]   ;;  %v5594_v23 = vld [vmem:[%s6922_s6 + $0x40] sm:$0xff]   ;;  %v5548_v24 = vld [vmem:[%s6945_s20 + $0xd0] ss:$8 sps:$4 sm:$0xff]  }
 0x126   : > { %5089 = vmatprep.subr.bf16.mxu0 %v5594_v23  ;;  %v5595_v26 = vld [vmem:[%s6922_s6 + $0x48] sm:$0xff]   ;;  %v5596_v29 = vld [vmem:[%s6922_s6 + $0x50] sm:$0xff]   ;;  %v5597_v31 = vld [vmem:[%s6922_s6 + $0x58] sm:$0xff]  }
 0x127   : > { %4503 = vmatprep.subr.bf16.mxu1 %v6036_v53  ;;  %5090 = vmatpush3.bf16.msra.mxu0 %v5594_v23  ;;  %v5549_v28 = vld [vmem:[%s6945_s20 + $0xe4] ss:$8 sps:$4 sm:$0xff]   ;;  %v5551_v30 = vld [vmem:[%s6945_s20 + $0xe0] ss:$8 sps:$4 sm:$0xff]   ;;  %v5552_v32 = vld [vmem:[%s6945_s20 + $0xf4] ss:$8 sps:$4 sm:$0xff]  }
 0x128   : > { %4504 = vmatpush3.bf16.msra.mxu1 %v6034_v52  ;;  %5091 = vmatprep.subr.bf16.mxu0 %v5595_v26  ;;  %v5598_v33 = vld [vmem:[%s6922_s6 + $0x60] sm:$0xff]   ;;  %v5554_v34 = vld [vmem:[%s6945_s20 + $0xf0] ss:$8 sps:$4 sm:$0xff]   ;;  %v5599_v37 = vld [vmem:[%s6922_s6 + $0x68] sm:$0xff]  }
 0x129   : > { %4505 = vmatprep.subr.bf16.mxu1 %v6031_v51  ;;  %v5557_v38 = vld [vmem:[%s6945_s20 + $0x104] ss:$8 sps:$4 sm:$0xff]   ;;  %v5600_v39 = vld [vmem:[%s6922_s6 + $0x70] sm:$0xff]   ;;  %v5555_v40 = vld [vmem:[%s6945_s20 + $0x100] ss:$8 sps:$4 sm:$0xff]  }
 0x12a   : > { %v5604_v43 = vld [vmem:[%s6922_s6 + $0x78] sm:$0xff]   ;;  %v6236_v45 = vld [vmem:[%s6922_s6] sm:$0xff]  }
 0x12b   : > { %5092 = vmatpush3.bf16.msra.mxu0 %v5595_v26  ;;  %v5558_v44 = vld [vmem:[%s6945_s20 + $0x114] ss:$8 sps:$4 sm:$0xff]   ;;  %v5560_v46 = vld [vmem:[%s6945_s20 + $0x110] ss:$8 sps:$4 sm:$0xff]   ;;  %v5561_v47 = vld [vmem:[%s6945_s20 + $0x124] ss:$8 sps:$4 sm:$0xff]  }
 0x12c   : > { %4506 = vmatpush3.bf16.msra.mxu1 %v6029_v50  ;;  %5093 = vmatprep.subr.bf16.mxu0 %v5596_v29  ;;  %v5563_v25 = vld [vmem:[%s6945_s20 + $0x120] ss:$8 sps:$4 sm:$0xff]   ;;  %v5564_v48 = vld [vmem:[%s6945_s20 + $0x134] ss:$8 sps:$4 sm:$0xff]   ;;  %v5566_v49 = vld [vmem:[%s6945_s20 + $0x130] ss:$8 sps:$4 sm:$0xff]  }
 0x12d   : > { %4531 = vmatprep.subr.bf16.mxu1 %v5954_v4  ;;  %v5591_v23 = vld [vmem:[%s6945_s20 + $0x1c0] ss:$8 sps:$4 sm:$0xff]  }
 0x12f   : > { %1164 = vmatmul.mubr.bf16.vlgmr.msra.gmra.mrb[16].mxu1 %v5507_v27  ;;  %5094 = vmatpush3.bf16.msra.mxu0 %v5596_v29  ;;  %v5569_v27 = vld [vmem:[%s6945_s20 + $0x144] ss:$8 sps:$4 sm:$0xff]  }
 0x130   : > { %4532 = vmatpush3.bf16.msra.mxu1 %v5952_v3  ;;  %1171 = vmatprep.mubr.bf16.mxu1 %v5510_v54  ;;  %v5567_v54 = vld [vmem:[%s6945_s20 + $0x140] ss:$8 sps:$4 sm:$0xff]  }
 0x131   : > { %4533 = vmatprep.subr.bf16.mxu1 %v5948_v62  ;;  %5095 = vmatprep.subr.bf16.mxu0 %v5597_v31 }
 0x133   : > { %5096 = vmatpush3.bf16.msra.mxu0 %v5597_v31 }
 0x134   : > { %4534 = vmatpush3.bf16.msra.mxu1 %v5946_v61  ;;  %5097 = vmatprep.subr.bf16.mxu0 %v5598_v33 }
 0x135   : > { %4535 = vmatprep.subr.bf16.mxu1 %v5982_v42 }
 0x137   : > { %1172 = vmatmul.mubr.bf16.gmra.mrb[20].mxu1 %v5512_v55  ;;  %5098 = vmatpush3.bf16.msra.mxu0 %v5598_v33  ;;  %v5570_v55 = vld [vmem:[%s6945_s20 + $0x154] ss:$8 sps:$4 sm:$0xff]  }
 0x138   : > { %4536 = vmatpush3.bf16.msra.mxu1 %v5980_v41  ;;  %1179 = vmatprep.mubr.bf16.mxu1 %v5513_v56  ;;  %v5572_v56 = vld [vmem:[%s6945_s20 + $0x150] ss:$8 sps:$4 sm:$0xff]  }
 0x139   : > { %4537 = vmatprep.subr.bf16.mxu1 %v5975_v36  ;;  %5099 = vmatprep.subr.bf16.mxu0 %v5599_v37 }
 0x13b   : > { %5100 = vmatpush3.bf16.msra.mxu0 %v5599_v37 }
 0x13c   : > { %4538 = vmatpush3.bf16.msra.mxu1 %v5973_v35  ;;  %5101 = vmatprep.subr.bf16.mxu0 %v5600_v39 }
 0x13d   : > { %4539 = vmatprep.subr.bf16.mxu1 %v6010_v18 }
 0x13f   : > { %1180 = vmatmul.mubr.bf16.gmra.mrb[24].mxu1 %v5515_v57  ;;  %5102 = vmatpush3.bf16.msra.mxu0 %v5600_v39  ;;  %v5573_v57 = vld [vmem:[%s6945_s20 + $0x164] ss:$8 sps:$4 sm:$0xff]  }
 0x140   : > { %4540 = vmatpush3.bf16.msra.mxu1 %v6008_v17  ;;  %1187 = vmatprep.mubr.bf16.mxu1 %v5516_v58  ;;  %v5575_v58 = vld [vmem:[%s6945_s20 + $0x160] ss:$8 sps:$4 sm:$0xff]  }
 0x141   : > { %4541 = vmatprep.subr.bf16.mxu1 %v6003_v12  ;;  %5103 = vmatprep.subr.bf16.mxu0 %v5604_v43 }
 0x143   : > { %5104 = vmatpush3.bf16.msra.mxu0 %v5604_v43  ;;  %v5608_v43 = vld [vmem:[%s6945_s20 + $0x1e0] ss:$8 sps:$4 sm:$0xff]  }
 0x144   : > { %4542 = vmatpush3.bf16.msra.mxu1 %v6001_v11  ;;  %5113 = vmatprep.subr.bf16.mxu0 %v6236_v45 }
 0x145   : > { %4543 = vmatprep.subr.bf16.mxu1 %v6036_v53 }
 0x147   : > { %1188 = vmatmul.mubr.bf16.gmra.mrb[28].mxu1 %v5518_v59  ;;  %v5576_v59 = vld [vmem:[%s6945_s20 + $0x174] ss:$8 sps:$4 sm:$0xff]  }
 0x148   : > { %4544 = vmatpush3.bf16.msra.mxu1 %v6034_v52  ;;  %1296 = vmatprep.mubr.bf16.mxu1 %v5521_v60  ;;  %v5578_v60 = vld [vmem:[%s6945_s20 + $0x170] ss:$8 sps:$4 sm:$0xff]  }
 0x149   : > { %4545 = vmatprep.subr.bf16.mxu1 %v6031_v51 }
 0x14c   : > { %4546 = vmatpush3.bf16.msra.mxu1 %v6029_v50 }
 0x14d   : > { %4595 = vmatprep.subr.bf16.mxu1 %v5954_v4 }
 0x14f   : > { %1297 = vmatmul.mubr.bf16.vlgmr.msra.gmra.mrb[32].mxu1 %v5519_v63  ;;  %v5581_v63 = vld [vmem:[%s6945_s20 + $0x184] ss:$8 sps:$4 sm:$0xff]  }
 0x150   : > { %4596 = vmatpush3.bf16.msra.mxu1 %v5952_v3  ;;  %1304 = vmatprep.mubr.bf16.mxu1 %v5522_v0  ;;  %v5579_v0 = vld [vmem:[%s6945_s20 + $0x180] ss:$8 sps:$4 sm:$0xff]  }
 0x151   : > { %4597 = vmatprep.subr.bf16.mxu1 %v5948_v62 }
 0x154   : > { %4598 = vmatpush3.bf16.msra.mxu1 %v5946_v61 }
 0x155   : > { %4599 = vmatprep.subr.bf16.mxu1 %v5982_v42 }
 0x157   : > { %1305 = vmatmul.mubr.bf16.gmra.mrb[36].mxu1 %v5524_v1  ;;  %v5582_v1 = vld [vmem:[%s6945_s20 + $0x194] ss:$8 sps:$4 sm:$0xff]  }
 0x158   : > { %4600 = vmatpush3.bf16.msra.mxu1 %v5980_v41  ;;  %1312 = vmatprep.mubr.bf16.mxu1 %v5525_v2  ;;  %v5584_v2 = vld [vmem:[%s6945_s20 + $0x190] ss:$8 sps:$4 sm:$0xff]  }
 0x159   : > { %4601 = vmatprep.subr.bf16.mxu1 %v5975_v36 }
 0x15c   : > { %4602 = vmatpush3.bf16.msra.mxu1 %v5973_v35 }
 0x15d   : > { %4603 = vmatprep.subr.bf16.mxu1 %v6010_v18 }
 0x15f   : > { %1313 = vmatmul.mubr.bf16.gmra.mrb[40].mxu1 %v5527_v5  ;;  %v5585_v5 = vld [vmem:[%s6945_s20 + $0x1a4] ss:$8 sps:$4 sm:$0xff]  }
 0x160   : > { %4604 = vmatpush3.bf16.msra.mxu1 %v6008_v17  ;;  %1320 = vmatprep.mubr.bf16.mxu1 %v5528_v6  ;;  %v5587_v6 = vld [vmem:[%s6945_s20 + $0x1a0] ss:$8 sps:$4 sm:$0xff]  }
 0x161   : > { %4605 = vmatprep.subr.bf16.mxu1 %v6003_v12 }
 0x164   : > { %4606 = vmatpush3.bf16.msra.mxu1 %v6001_v11 }
 0x165   : > { %4607 = vmatprep.subr.bf16.mxu1 %v6036_v53 }
 0x167   : > { %1321 = vmatmul.mubr.bf16.gmra.mrb[44].mxu1 %v5530_v7  ;;  %v5588_v7 = vld [vmem:[%s6945_s20 + $0x1b4] ss:$8 sps:$4 sm:$0xff]  }
 0x168   : > { %4608 = vmatpush3.bf16.msra.mxu1 %v6034_v52  ;;  %1655 = vmatprep.mubr.bf16.mxu1 %v5533_v8 }
 0x169   : > { %4609 = vmatprep.subr.bf16.mxu1 %v6031_v51 }
 0x16c   : > { %4610 = vmatpush3.bf16.msra.mxu1 %v6029_v50 }
 0x16d   : > { %4647 = vmatprep.subr.bf16.mxu1 %v5954_v4 }
 0x16f   : > { %1656 = vmatmul.mubr.bf16.vlgmr.msra.gmra.mrb[48].mxu1 %v5531_v9 }
 0x170   : > { %4648 = vmatpush3.bf16.msra.mxu1 %v5952_v3  ;;  %1663 = vmatprep.mubr.bf16.mxu1 %v5534_v10  ;;  %v5590_v10 = vld [vmem:[%s6945_s20 + $0x1b0] ss:$8 sps:$4 sm:$0xff]  }
 0x171   : > { %4649 = vmatprep.subr.bf16.mxu1 %v5948_v62 }
 0x174   : > { %4650 = vmatpush3.bf16.msra.mxu1 %v5946_v61 }
 0x175   : > { %4651 = vmatprep.subr.bf16.mxu1 %v5982_v42 }
 0x177   : > { %1664 = vmatmul.mubr.bf16.gmra.mrb[52].mxu1 %v5536_v13 }
 0x178   : > { %4652 = vmatpush3.bf16.msra.mxu1 %v5980_v41  ;;  %1671 = vmatprep.mubr.bf16.mxu1 %v5537_v14 }
 0x179   : > { %4653 = vmatprep.subr.bf16.mxu1 %v5975_v36 }
 0x17c   : > { %4654 = vmatpush3.bf16.msra.mxu1 %v5973_v35 }
 0x17d   : > { %4655 = vmatprep.subr.bf16.mxu1 %v6010_v18 }
 0x17f   : > { %1672 = vmatmul.mubr.bf16.gmra.mrb[56].mxu1 %v5539_v15  ;;  %v5593_v15 = vld [vmem:[%s6945_s20 + $0x1c4] ss:$8 sps:$4 sm:$0xff]  }
 0x180   : > { %4656 = vmatpush3.bf16.msra.mxu1 %v6008_v17  ;;  %1679 = vmatprep.mubr.bf16.mxu1 %v5540_v16 }
 0x181   : > { %4657 = vmatprep.subr.bf16.mxu1 %v6003_v12 }
 0x184   : > { %4658 = vmatpush3.bf16.msra.mxu1 %v6001_v11 }
 0x185   : > { %4659 = vmatprep.subr.bf16.mxu1 %v6036_v53 }
 0x187   : > { %1680 = vmatmul.mubr.bf16.gmra.mrb[60].mxu1 %v5542_v19 }
 0x188   : > { %4660 = vmatpush3.bf16.msra.mxu1 %v6034_v52  ;;  %1909 = vmatprep.mubr.bf16.mxu1 %v5545_v20 }
 0x189   : > { %4661 = vmatprep.subr.bf16.mxu1 %v6031_v51 }
 0x18c   : > { %4662 = vmatpush3.bf16.msra.mxu1 %v6029_v50 }
 0x18d   : > { %4699 = vmatprep.subr.bf16.mxu1 %v5954_v4 }
 0x18f   : > { %1910 = vmatmul.mubr.bf16.vlgmr.msra.gmra.mrb[64].mxu1 %v5543_v21 }
 0x190   : > { %4700 = vmatpush3.bf16.msra.mxu1 %v5952_v3  ;;  %1917 = vmatprep.mubr.bf16.mxu1 %v5546_v22 }
 0x191   : > { %4701 = vmatprep.subr.bf16.mxu1 %v5948_v62 }
 0x194   : > { %4702 = vmatpush3.bf16.msra.mxu1 %v5946_v61 }
 0x195   : > { %4703 = vmatprep.subr.bf16.mxu1 %v5982_v42 }
 0x197   : > { %1918 = vmatmul.mubr.bf16.gmra.mrb[68].mxu1 %v5548_v24 }
 0x198   : > { %4704 = vmatpush3.bf16.msra.mxu1 %v5980_v41  ;;  %1925 = vmatprep.mubr.bf16.mxu1 %v5549_v28  ;;  %v5601_v28 = vld [vmem:[%s6945_s20 + $0x1d4] ss:$8 sps:$4 sm:$0xff]  }
 0x199   : > { %4705 = vmatprep.subr.bf16.mxu1 %v5975_v36 }
 0x19c   : > { %4706 = vmatpush3.bf16.msra.mxu1 %v5973_v35 }
 0x19d   : > { %4707 = vmatprep.subr.bf16.mxu1 %v6010_v18 }
 0x19f   : > { %1926 = vmatmul.mubr.bf16.gmra.mrb[72].mxu1 %v5551_v30 }
 0x1a0   : > { %4708 = vmatpush3.bf16.msra.mxu1 %v6008_v17  ;;  %1933 = vmatprep.mubr.bf16.mxu1 %v5552_v32 }
 0x1a1   : > { %4709 = vmatprep.subr.bf16.mxu1 %v6003_v12 }
 0x1a4   : > { %4710 = vmatpush3.bf16.msra.mxu1 %v6001_v11 }
 0x1a5   : > { %4711 = vmatprep.subr.bf16.mxu1 %v6036_v53 }
 0x1a7   : > { %1934 = vmatmul.mubr.bf16.gmra.mrb[76].mxu1 %v5554_v34  ;;  %v5603_v34 = vld [vmem:[%s6945_s20 + $0x1d0] ss:$8 sps:$4 sm:$0xff]  }
 0x1a8   : > { %4712 = vmatpush3.bf16.msra.mxu1 %v6034_v52  ;;  %2163 = vmatprep.mubr.bf16.mxu1 %v5557_v38  ;;  %v5606_v38 = vld [vmem:[%s6945_s20 + $0x1e4] ss:$8 sps:$4 sm:$0xff]  }
 0x1a9   : > { %4713 = vmatprep.subr.bf16.mxu1 %v6031_v51 }
 0x1ac   : > { %4714 = vmatpush3.bf16.msra.mxu1 %v6029_v50 }
 0x1ad   : > { %4751 = vmatprep.subr.bf16.mxu1 %v5954_v4 }
 0x1af   : > { %2164 = vmatmul.mubr.bf16.vlgmr.msra.gmra.mrb[80].mxu1 %v5555_v40 }
 0x1b0   : > { %4752 = vmatpush3.bf16.msra.mxu1 %v5952_v3  ;;  %2171 = vmatprep.mubr.bf16.mxu1 %v5558_v44 }
 0x1b1   : > { %4753 = vmatprep.subr.bf16.mxu1 %v5948_v62 }
 0x1b4   : > { %4754 = vmatpush3.bf16.msra.mxu1 %v5946_v61 }
 0x1b5   : > { %4755 = vmatprep.subr.bf16.mxu1 %v5982_v42 }
 0x1b7   : > { %2172 = vmatmul.mubr.bf16.gmra.mrb[84].mxu1 %v5560_v46  ;;  %v5611_v46 = vld [vmem:[%s6945_s20 + $0x1f4] ss:$8 sps:$4 sm:$0xff]  }
 0x1b8   : > { %4756 = vmatpush3.bf16.msra.mxu1 %v5980_v41  ;;  %2179 = vmatprep.mubr.bf16.mxu1 %v5561_v47 }
 0x1b9   : > { %4757 = vmatprep.subr.bf16.mxu1 %v5975_v36 }
 0x1bc   : > { %4758 = vmatpush3.bf16.msra.mxu1 %v5973_v35 }
 0x1bd   : > { %4759 = vmatprep.subr.bf16.mxu1 %v6010_v18 }
 0x1bf   : > { %2180 = vmatmul.mubr.bf16.gmra.mrb[88].mxu1 %v5563_v25 }
 0x1c0   : > { %4760 = vmatpush3.bf16.msra.mxu1 %v6008_v17  ;;  %2187 = vmatprep.mubr.bf16.mxu1 %v5564_v48  ;;  %v5613_v48 = vld [vmem:[%s6945_s20 + $0x1f0] ss:$8 sps:$4 sm:$0xff]  }
 0x1c1   : > { %4761 = vmatprep.subr.bf16.mxu1 %v6003_v12 }
 0x1c4   : > { %4762 = vmatpush3.bf16.msra.mxu1 %v6001_v11 }
 0x1c5   : > { %4763 = vmatprep.subr.bf16.mxu1 %v6036_v53 }
 0x1c7   : > { %2188 = vmatmul.mubr.bf16.gmra.mrb[92].mxu1 %v5566_v49 }
 0x1c8   : > { %4764 = vmatpush3.bf16.msra.mxu1 %v6034_v52  ;;  %2417 = vmatprep.mubr.bf16.mxu1 %v5569_v27 }
 0x1c9   : > { %4765 = vmatprep.subr.bf16.mxu1 %v6031_v51 }
 0x1cc   : > { %4766 = vmatpush3.bf16.msra.mxu1 %v6029_v50 }
 0x1cd   : > { %4803 = vmatprep.subr.bf16.mxu1 %v5954_v4 }
 0x1cf   : > { %2418 = vmatmul.mubr.bf16.vlgmr.msra.gmra.mrb[96].mxu1 %v5567_v54 }
 0x1d0   : > { %4804 = vmatpush3.bf16.msra.mxu1 %v5952_v3  ;;  %2425 = vmatprep.mubr.bf16.mxu1 %v5570_v55 }
 0x1d1   : > { %4805 = vmatprep.subr.bf16.mxu1 %v5948_v62 }
 0x1d4   : > { %4806 = vmatpush3.bf16.msra.mxu1 %v5946_v61 }
 0x1d5   : > { %4807 = vmatprep.subr.bf16.mxu1 %v5982_v42 }
 0x1d7   : > { %2426 = vmatmul.mubr.bf16.gmra.mrb[100].mxu1 %v5572_v56  ;;  %v5616_v56 = vld [vmem:[%s6945_s20 + $0x200] ss:$8 sps:$4 sm:$0xff]  }
 0x1d8   : > { %4808 = vmatpush3.bf16.msra.mxu1 %v5980_v41  ;;  %2433 = vmatprep.mubr.bf16.mxu1 %v5573_v57 }
 0x1d9   : > { %4809 = vmatprep.subr.bf16.mxu1 %v5975_v36 }
 0x1dc   : > { %4810 = vmatpush3.bf16.msra.mxu1 %v5973_v35 }
 0x1dd   : > { %4811 = vmatprep.subr.bf16.mxu1 %v6010_v18 }
 0x1df   : > { %2434 = vmatmul.mubr.bf16.gmra.mrb[104].mxu1 %v5575_v58 }
 0x1e0   : > { %4812 = vmatpush3.bf16.msra.mxu1 %v6008_v17  ;;  %2441 = vmatprep.mubr.bf16.mxu1 %v5576_v59  ;;  %v5735_v59 = vld [vmem:[%s5884_s28 + $0x40] sm:$0xff]  }
 0x1e1   : > { %4813 = vmatprep.subr.bf16.mxu1 %v6003_v12 }
 0x1e4   : > { %4814 = vmatpush3.bf16.msra.mxu1 %v6001_v11 }
 0x1e5   : > { %4815 = vmatprep.subr.bf16.mxu1 %v6036_v53 }
 0x1e7   : > { %2442 = vmatmul.mubr.bf16.gmra.mrb[108].mxu1 %v5578_v60 }
 0x1e8   : > { %4816 = vmatpush3.bf16.msra.mxu1 %v6034_v52  ;;  %2671 = vmatprep.mubr.bf16.mxu1 %v5581_v63  ;;  %v5609_v63 = vld [vmem:[%s6922_s6 + $0x8] sm:$0xff]  }
 0x1e9   : > { %4817 = vmatprep.subr.bf16.mxu1 %v6031_v51 }
 0x1ec   : > { %4818 = vmatpush3.bf16.msra.mxu1 %v6029_v50 }
 0x1ed   : > { %4855 = vmatprep.subr.bf16.mxu1 %v5954_v4 }
 0x1ef   : > { %2672 = vmatmul.mubr.bf16.vlgmr.msra.gmra.mrb[112].mxu1 %v5579_v0  ;;  %v5736_v0 = vld [vmem:[%s5884_s28] sm:$0xff]  }
 0x1f0   : > { %4856 = vmatpush3.bf16.msra.mxu1 %v5952_v3  ;;  %2679 = vmatprep.mubr.bf16.mxu1 %v5582_v1 }
 0x1f1   : > { %4857 = vmatprep.subr.bf16.mxu1 %v5948_v62 }
 0x1f4   : > { %4858 = vmatpush3.bf16.msra.mxu1 %v5946_v61 }
 0x1f5   : > { %4859 = vmatprep.subr.bf16.mxu1 %v5982_v42 }
 0x1f7   : > { %2680 = vmatmul.mubr.bf16.gmra.mrb[116].mxu1 %v5584_v2 }
 0x1f8   : > { %4860 = vmatpush3.bf16.msra.mxu1 %v5980_v41  ;;  %2687 = vmatprep.mubr.bf16.mxu1 %v5585_v5  ;;  %v5623_v5 = vld [vmem:[%s6945_s20 + $0x210] ss:$8 sps:$4 sm:$0xff]  }
 0x1f9   : > { %4861 = vmatprep.subr.bf16.mxu1 %v5975_v36 }
 0x1fc   : > { %4862 = vmatpush3.bf16.msra.mxu1 %v5973_v35 }
 0x1fd   : > { %4863 = vmatprep.subr.bf16.mxu1 %v6010_v18 }
 0x1ff   : > { %2688 = vmatmul.mubr.bf16.gmra.mrb[120].mxu1 %v5587_v6 }
 0x200   : > { %4864 = vmatpush3.bf16.msra.mxu1 %v6008_v17  ;;  %2695 = vmatprep.mubr.bf16.mxu1 %v5588_v7 }
 0x201   : > { %4865 = vmatprep.subr.bf16.mxu1 %v6003_v12 }
 0x202   : > { %v4507_v8 = vpop.f32.mrb[16].mxu1 }
 0x203   : > { %v4508_v9 = vpop.f32.mrb[17].mxu1 }
 0x204   : > { %v6344_v13 = vadd.f32 %v4508_v9, %v4507_v8  ;;  %v4510_v14 = vpop.f32.mrb[18].mxu1  ;;  %4866 = vmatpush3.bf16.msra.mxu1 %v6001_v11  ;;  %v5610_v8 = vld [vmem:[%s6922_s6 + $0x10] sm:$0xff]   ;;  %v5626_v9 = vld [vmem:[%s6945_s20 + $0x224] ss:$8 sps:$4 sm:$0xff]  }
 0x205   : > { %v4511_v16 = vpop.f32.mrb[19].mxu1  ;;  %4867 = vmatprep.subr.bf16.mxu1 %v6036_v53 }
 0x206   : > { %v6351_v19 = vadd.f32 %v4511_v16, %v4510_v14  ;;  %v5739_v14 = vld [vmem:[%s5884_s28 + $0x50] sm:$0xff]  }
 0x207   : > { %2696 = vmatmul.mubr.bf16.gmra.mrb[124].mxu1 %v5590_v10  ;;  %v5738_v10 = vld [vmem:[%s5884_s28 + $0x8] sm:$0xff]  }
 0x208   : > { %v1196_v20 = vpack.c.bf16 %v6351_v19, %v6344_v13  ;;  %4868 = vmatpush3.bf16.msra.mxu1 %v6034_v52  ;;  %2925 = vmatprep.mubr.bf16.mxu1 %v5593_v15  ;;  %v5747_v13 = vld [vmem:[%s5884_s28 + $0x70] sm:$0xff]   ;;  %v5624_v19 = vld [vmem:[%s6922_s6 + $0x38] sm:$0xff]  }
 0x209   : > { %4869 = vmatprep.subr.bf16.mxu1 %v6031_v51 }
 0x20a   : > { %v4513_v21 = vpop.f32.mrb[20].mxu1 }
 0x20b   : > { %v4514_v22 = vpop.f32.mrb[21].mxu1 }
 0x20c   : > { %v6360_v24 = vadd.f32 %v4514_v22, %v4513_v21  ;;  %v4516_v26 = vpop.f32.mrb[22].mxu1  ;;  %4870 = vmatpush3.bf16.msra.mxu1 %v6029_v50  ;;  %v5614_v21 = vld [vmem:[%s6922_s6 + $0x18] sm:$0xff]   ;;  %v5740_v22 = vld [vmem:[%s5884_s28 + $0x10] sm:$0xff]  }
 0x20d   : > { %v4517_v29 = vpop.f32.mrb[23].mxu1  ;;  %4907 = vmatprep.subr.bf16.mxu1 %v5954_v4 }
 0x20e   : > { %v6367_v30 = vadd.f32 %v4517_v29, %v4516_v26  ;;  %v5741_v26 = vld [vmem:[%s5884_s28 + $0x58] sm:$0xff]   ;;  %v5628_v29 = vld [vmem:[%s6945_s20 + $0x220] ss:$8 sps:$4 sm:$0xff]  }
 0x20f   : > { %2926 = vmatmul.mubr.bf16.vlgmr.msra.gmra.mrb[128].mxu1 %v5591_v23 }
 0x210   : > { %v1197_v31 = vpack.c.bf16 %v6367_v30, %v6360_v24  ;;  %4908 = vmatpush3.bf16.msra.mxu1 %v5952_v3  ;;  %2933 = vmatprep.mubr.bf16.mxu1 %v5601_v28  ;;  %v5634_v24 = vld [vmem:[%s6922_s6 + $0x98] sm:$0xff]  }
 0x211   : > { %4909 = vmatprep.subr.bf16.mxu1 %v5948_v62 }
 0x212   : > { %v4519_v32 = vpop.f32.mrb[24].mxu1 }
 0x213   : > { %v4520_v33 = vpop.f32.mrb[25].mxu1 }
 0x214   : > { %v6376_v37 = vadd.f32 %v4520_v33, %v4519_v32  ;;  %v4522_v4 = vpop.f32.mrb[26].mxu1  ;;  %4910 = vmatpush3.bf16.msra.mxu1 %v5946_v61 }
 0x215   : > { %v4523_v39 = vpop.f32.mrb[27].mxu1  ;;  %4911 = vmatprep.subr.bf16.mxu1 %v5982_v42 }
 0x216   : > { %v6383_v3 = vadd.f32 %v4523_v39, %v4522_v4  ;;  %v5631_v4 = vld [vmem:[%s6945_s20 + $0x234] ss:$8 sps:$4 sm:$0xff]  }
 0x217   : > { %2934 = vmatmul.mubr.bf16.gmra.mrb[132].mxu1 %v5603_v34  ;;  %v5615_v34 = vld [vmem:[%s6922_s6 + $0x20] sm:$0xff]   ;;  %v5742_v39 = vld [vmem:[%s5884_s28 + $0x18] sm:$0xff]  }
 0x218   : > { %v1198_v62 = vpack.c.bf16 %v6383_v3, %v6376_v37  ;;  %4912 = vmatpush3.bf16.msra.mxu1 %v5980_v41  ;;  %2941 = vmatprep.mubr.bf16.mxu1 %v5606_v38  ;;  %v5635_v3 = vld [vmem:[%s6922_s6 + $0xa0] sm:$0xff]  }
 0x219   : > { %4913 = vmatprep.subr.bf16.mxu1 %v5975_v36 }
 0x21a   : > { %v4525_v40 = vpop.f32.mrb[28].mxu1 }
 0x21b   : > { %v4526_v61 = vpop.f32.mrb[29].mxu1 }
 0x21c   : > { %v6392_v44 = vadd.f32 %v4526_v61, %v4525_v40  ;;  %v4528_v42 = vpop.f32.mrb[30].mxu1  ;;  %4914 = vmatpush3.bf16.msra.mxu1 %v5973_v35  ;;  %v5743_v61 = vld [vmem:[%s5884_s28 + $0x60] sm:$0xff]  }
 0x21d   : > { %v4529_v47 = vpop.f32.mrb[31].mxu1  ;;  %4915 = vmatprep.subr.bf16.mxu1 %v6010_v18  ;;  %v5618_v18 = vld [vmem:[%s6945_s20 + $0x204] ss:$8 sps:$4 sm:$0xff]  }
 0x21e   : > { %v6399_v41 = vadd.f32 %v4529_v47, %v4528_v42  ;;  %v5619_v42 = vld [vmem:[%s6922_s6 + $0x28] sm:$0xff]  }
 0x21f   : > { %2942 = vmatmul.mubr.bf16.gmra.mrb[136].mxu1 %v5608_v43 }
 0x220   : > { %v1199_v36 = vpack.c.bf16 %v6399_v41, %v6392_v44  ;;  %4916 = vmatpush3.bf16.msra.mxu1 %v6008_v17  ;;  %2949 = vmatprep.mubr.bf16.mxu1 %v5611_v46  ;;  %v5744_v46 = vld [vmem:[%s5884_s28 + $0x20] sm:$0xff]   ;;  %v5636_v44 = vld [vmem:[%s6922_s6 + $0xa8] sm:$0xff]  }
 0x221   : > { %4917 = vmatprep.subr.bf16.mxu1 %v6003_v12 }
 0x222   : > { %v4547_v25 = vpop.f32.mrb[32].mxu1 }
 0x223   : > { %v4548_v35 = vpop.f32.mrb[33].mxu1 }
 0x224   : > { %v4549_v49 = vadd.f32 %v4548_v35, %v4547_v25  ;;  %v4550_v27 = vpop.f32.mrb[34].mxu1  ;;  %4918 = vmatpush3.bf16.msra.mxu1 %v6001_v11  ;;  %v5745_v25 = vld [vmem:[%s5884_s28 + $0x68] sm:$0xff]  }
 0x225   : > { %v4551_v54 = vpop.f32.mrb[35].mxu1  ;;  %4919 = vmatprep.subr.bf16.mxu1 %v6036_v53 }
 0x226   : > { %v4552_v17 = vadd.f32 %v4551_v54, %v4550_v27 }
 0x227   : > { %2950 = vmatmul.mubr.bf16.gmra.mrb[140].mxu1 %v5613_v48  ;;  %v5633_v48 = vld [vmem:[%s6945_s20 + $0x230] ss:$8 sps:$4 sm:$0xff]  }
 0x228   : > { %v1329_v12 = vpack.c.bf16 %v4552_v17, %v4549_v49  ;;  %4920 = vmatpush3.bf16.msra.mxu1 %v6034_v52  ;;  %3179 = vmatprep.mubr.bf16.mxu1 %v5618_v18  ;;  %v5621_v52 = vld [vmem:[%s6945_s20 + $0x214] ss:$8 sps:$4 sm:$0xff]   ;;  %v5746_v17 = vld [vmem:[%s5884_s28 + $0x28] sm:$0xff]  }
 0x229   : > { %4921 = vmatprep.subr.bf16.mxu1 %v6031_v51  ;;  %v5620_v49 = vld [vmem:[%s6922_s6 + $0x30] sm:$0xff]  }
 0x22a   : > { %v4553_v55 = vpop.f32.mrb[36].mxu1  ;;  %5105 = vmatprep.mubr.bf16.mxu0 %v1329_v12 }
 0x22b   : > { %v4554_v11 = vpop.f32.mrb[37].mxu1 }
 0x22c   : > { %v4555_v57 = vadd.f32 %v4554_v11, %v4553_v55  ;;  %v4556_v53 = vpop.f32.mrb[38].mxu1  ;;  %4922 = vmatpush3.bf16.msra.mxu1 %v6029_v50  ;;  %v5737_v50 = vld [vmem:[%s5884_s28 + $0x48] sm:$0xff]   ;;  %v5748_v55 = vld [vmem:[%s5884_s28 + $0x30] sm:$0xff]  }
 0x22d   : > { %v4557_v58 = vpop.f32.mrb[39].mxu1  ;;  %4959 = vmatprep.subr.bf16.mxu1 %v5735_v59 }
 0x22e   : > { %v4558_v51 = vadd.f32 %v4557_v58, %v4556_v53  ;;  %v5625_v53 = vld [vmem:[%s6922_s6 + $0x80] sm:$0xff]  }
 0x22f   : > { %3180 = vmatmul.mubr.bf16.vlgmr.msra.gmra.mrb[144].mxu1 %v5616_v56  ;;  %v5749_v56 = vld [vmem:[%s5884_s28 + $0x78] sm:$0xff]  }
 0x230   : > { %v1330_v60 = vpack.c.bf16 %v4558_v51, %v4555_v57  ;;  %3187 = vmatprep.mubr.bf16.mxu1 %v5621_v52  ;;  %4960 = vmatpush3.bf16.msra.mxu1 %v5736_v0  ;;  %v5750_v51 = vld [vmem:[%s5884_s28 + $0x38] sm:$0xff]   ;;  %s6946_s28 = sld [smem:[#allocation4_spill]] }
 0x231   : > { %4961 = vmatprep.subr.bf16.mxu1 %v5737_v50 }
 0x232   : > { %5106 = vmatmul.mubr.bf16.vlgmr.msra.gmra.mrb[16].mxu0 %v1330_v60  ;;  %v4559_v1 = vpop.f32.mrb[40].mxu1 }
 0x233   : > { %5114 = vmatpush3.bf16.msra.mxu0 %v6236_v45  ;;  %v4560_v2 = vpop.f32.mrb[41].mxu1 }
 0x234   : > { %5115 = vmatprep.subr.bf16.mxu0 %v5609_v63  ;;  %v4561_v6 = vadd.f32 %v4560_v2, %v4559_v1  ;;  %v4562_v7 = vpop.f32.mrb[42].mxu1  ;;  %4962 = vmatpush3.bf16.msra.mxu1 %v5738_v10  ;;  %v5630_v2 = vld [vmem:[%s6922_s6 + $0x90] sm:$0xff]  }
 0x235   : > { %v4563_v45 = vpop.f32.mrb[43].mxu1  ;;  %4963 = vmatprep.subr.bf16.mxu1 %v5739_v14 }
 0x236   : > { %v4564_v15 = vadd.f32 %v4563_v45, %v4562_v7 }
 0x237   : > { %5116 = vmatpush3.bf16.msra.mxu0 %v5609_v63  ;;  %3188 = vmatmul.mubr.bf16.gmra.mrb[148].mxu1 %v5623_v5  ;;  %v5629_v63 = vld [vmem:[%s6922_s6 + $0x88] sm:$0xff]  }
 0x238   : > { %v1331_v16 = vpack.c.bf16 %v4564_v15, %v4561_v6  ;;  %5117 = vmatprep.subr.bf16.mxu0 %v5610_v8  ;;  %3195 = vmatprep.mubr.bf16.mxu1 %v5626_v9  ;;  %v5637_v15 = vld [vmem:[%s6922_s6 + $0xb0] sm:$0xff]  }
 0x239   : > { %4964 = vmatpush3.bf16.msra.mxu1 %v5740_v22 }
 0x23a   : > { %v4565_v23 = vpop.f32.mrb[44].mxu1  ;;  %5109 = vmatprep.mubr.bf16.mxu0 %v1331_v16  ;;  %4965 = vmatprep.subr.bf16.mxu1 %v5741_v26  ;;  %v5638_v26 = vld [vmem:[%s6922_s6 + $0xb8] sm:$0xff]  }
 0x23b   : > { %5118 = vmatpush3.bf16.msra.mxu0 %v5610_v8  ;;  %v4566_v28 = vpop.f32.mrb[45].mxu1 }
 0x23c   : > { %v4567_v32 = vadd.f32 %v4566_v28, %v4565_v23  ;;  %v4568_v33 = vpop.f32.mrb[46].mxu1  ;;  %5119 = vmatprep.subr.bf16.mxu0 %v5614_v21 }
 0x23d   : > { %v4569_v38 = vpop.f32.mrb[47].mxu1  ;;  %4966 = vmatpush3.bf16.msra.mxu1 %v5742_v39 }
 0x23e   : > { %v4570_v40 = vadd.f32 %v4569_v38, %v4568_v33  ;;  %4967 = vmatprep.subr.bf16.mxu1 %v5743_v61  ;;  %v5639_v33 = vld [vmem:[%s6922_s6 + $0xc0] sm:$0xff]  }
 0x23f   : > { %5120 = vmatpush3.bf16.msra.mxu0 %v5614_v21  ;;  %3196 = vmatmul.mubr.bf16.gmra.mrb[152].mxu1 %v5628_v29 }
 0x240   : > { %v1332_v43 = vpack.c.bf16 %v4570_v40, %v4567_v32  ;;  %5121 = vmatprep.subr.bf16.mxu0 %v5615_v34  ;;  %3203 = vmatprep.mubr.bf16.mxu1 %v5631_v4  ;;  %v5640_v40 = vld [vmem:[%s6922_s6 + $0xc8] sm:$0xff]  }
 0x241   : > { %4968 = vmatpush3.bf16.msra.mxu1 %v5744_v46  ;;  %v5641_v46 = vld [vmem:[%s6922_s6 + $0xd0] sm:$0xff]  }
 0x242   : > { %5110 = vmatmul.mubr.bf16.gmra.mrb[20].mxu0 %v1332_v43  ;;  %v4611_v47 = vpop.f32.mrb[48].mxu1  ;;  %4969 = vmatprep.subr.bf16.mxu1 %v5745_v25 }
 0x243   : > { %5122 = vmatpush3.bf16.msra.mxu0 %v5615_v34  ;;  %5129 = vmatprep.mubr.bf16.mxu0 %v1196_v20  ;;  %v4612_v35 = vpop.f32.mrb[49].mxu1 }
 0x244   : > { %5123 = vmatprep.subr.bf16.mxu0 %v5619_v42  ;;  %v4613_v27 = vadd.f32 %v4612_v35, %v4611_v47  ;;  %v4614_v18 = vpop.f32.mrb[50].mxu1 }
 0x245   : > { %v4615_v54 = vpop.f32.mrb[51].mxu1  ;;  %4970 = vmatpush3.bf16.msra.mxu1 %v5746_v17  ;;  %v5643_v17 = vld [vmem:[%s6922_s6 + $0xe0] sm:$0xff]  }
 0x246   : > { %v4616_v12 = vadd.f32 %v4615_v54, %v4614_v18  ;;  %4971 = vmatprep.subr.bf16.mxu1 %v5747_v13 }
 0x247   : > { %5124 = vmatpush3.bf16.msra.mxu0 %v5619_v42  ;;  %3204 = vmatmul.mubr.bf16.gmra.mrb[156].mxu1 %v5633_v48 }
 0x248   : > { %5125 = vmatprep.subr.bf16.mxu0 %v5620_v49  ;;  %v1688_v20 = vpack.c.bf16 %v4616_v12, %v4613_v27 }
 0x249   : > { %4972 = vmatpush3.bf16.msra.mxu1 %v5748_v55  ;;  %v5644_v55 = vld [vmem:[%s6922_s6 + $0xe8] sm:$0xff]  }
 0x24a   : > { %v4617_v11 = vpop.f32.mrb[52].mxu1  ;;  %4973 = vmatprep.subr.bf16.mxu1 %v5749_v56 }
 0x24b   : > { %5126 = vmatpush3.bf16.msra.mxu0 %v5620_v49  ;;  %v4618_v57 = vpop.f32.mrb[53].mxu1  ;;  %v5642_v49 = vld [vmem:[%s6922_s6 + $0xd8] sm:$0xff]  }
 0x24c   : > { %5127 = vmatprep.subr.bf16.mxu0 %v5624_v19  ;;  %v6480_v52 = vadd.f32 %v4618_v57, %v4617_v11  ;;  %v4620_v58 = vpop.f32.mrb[54].mxu1 }
 0x24d   : > { %v4621_v59 = vpop.f32.mrb[55].mxu1  ;;  %4974 = vmatpush3.bf16.msra.mxu1 %v5750_v51 }
 0x24e   : > { %v4622_v60 = vadd.f32 %v4621_v59, %v4620_v58 }
 0x24f   : > { %5128 = vmatpush3.bf16.msra.mxu0 %v5624_v19 }
 0x250   : > { %5137 = vmatprep.subr.bf16.mxu0 %v5625_v53  ;;  %v1689_v0 = vpack.c.bf16 %v4622_v60, %v6480_v52  ;;  %v5646_v60 = vld [vmem:[%s6922_s6 + $0xf8] sm:$0xff]  }
 0x252   : > { %5130 = vmatmul.mubr.bf16.vlgmr.msra.gmra.mrb[16].mxu0 %v1197_v31  ;;  %v4623_v50 = vpop.f32.mrb[56].mxu1 }
 0x253   : > { %5133 = vmatprep.mubr.bf16.mxu0 %v1198_v62  ;;  %5138 = vmatpush3.bf16.msra.mxu0 %v5625_v53  ;;  %v4624_v1 = vpop.f32.mrb[57].mxu1  ;;  %v5645_v53 = vld [vmem:[%s6922_s6 + $0xf0] sm:$0xff]  }
 0x254   : > { %5139 = vmatprep.subr.bf16.mxu0 %v5629_v63  ;;  %v4625_v5 = vadd.f32 %v4624_v1, %v4623_v50  ;;  %v4626_v6 = vpop.f32.mrb[58].mxu1  ;;  %v5647_v1 = vld [vmem:[%s6922_s6 + $0x100] sm:$0xff]  }
 0x255   : > { %v4627_v7 = vpop.f32.mrb[59].mxu1 }
 0x256   : > { %v4628_v8 = vadd.f32 %v4627_v7, %v4626_v6 }
 0x257   : > { %5140 = vmatpush3.bf16.msra.mxu0 %v5629_v63 }
 0x258   : > { %5141 = vmatprep.subr.bf16.mxu0 %v5630_v2  ;;  %v1690_v30 = vpack.c.bf16 %v4628_v8, %v4625_v5  ;;  %v5648_v8 = vld [vmem:[%s6922_s6 + $0x108] sm:$0xff]  }
 0x25a   : > { %5134 = vmatmul.mubr.bf16.gmra.mrb[20].mxu0 %v1199_v36  ;;  %v4629_v31 = vpop.f32.mrb[60].mxu1 }
 0x25b   : > { %5142 = vmatpush3.bf16.msra.mxu0 %v5630_v2  ;;  %5153 = vmatprep.mubr.bf16.mxu0 %v1688_v20  ;;  %v4630_v37 = vpop.f32.mrb[61].mxu1 }
 0x25c   : > { %5143 = vmatprep.subr.bf16.mxu0 %v5634_v24  ;;  %v4631_v62 = vadd.f32 %v4630_v37, %v4629_v31  ;;  %v4632_v9 = vpop.f32.mrb[62].mxu1  ;;  %v5649_v37 = vld [vmem:[%s6922_s6 + $0x110] sm:$0xff]  }
 0x25d   : > { %v4633_v10 = vpop.f32.mrb[63].mxu1 }
 0x25e   : > { %v4634_v45 = vadd.f32 %v4633_v10, %v4632_v9 }
 0x25f   : > { %5144 = vmatpush3.bf16.msra.mxu0 %v5634_v24 }
 0x260   : > { %5145 = vmatprep.subr.bf16.mxu0 %v5635_v3  ;;  %v1691_v41 = vpack.c.bf16 %v4634_v45, %v4631_v62  ;;  %v5650_v45 = vld [vmem:[%s6922_s6 + $0x118] sm:$0xff]  }
 0x262   : > { %v4663_v36 = vpop.f32.mrb[64].mxu1 }
 0x263   : > { %5146 = vmatpush3.bf16.msra.mxu0 %v5635_v3  ;;  %v4664_v14 = vpop.f32.mrb[65].mxu1 }
 0x264   : > { %5147 = vmatprep.subr.bf16.mxu0 %v5636_v44  ;;  %v4665_v16 = vadd.f32 %v4664_v14, %v4663_v36  ;;  %v4666_v21 = vpop.f32.mrb[66].mxu1  ;;  %v5651_v14 = vld [vmem:[%s6922_s6 + $0x120] sm:$0xff]  }
 0x265   : > { %v4667_v22 = vpop.f32.mrb[67].mxu1 }
 0x266   : > { %v4668_v23 = vadd.f32 %v4667_v22, %v4666_v21 }
 0x267   : > { %5148 = vmatpush3.bf16.msra.mxu0 %v5636_v44 }
 0x268   : > { %5149 = vmatprep.subr.bf16.mxu0 %v5637_v15  ;;  %v1942_v28 = vpack.c.bf16 %v4668_v23, %v4665_v16  ;;  %v5652_v23 = vld [vmem:[%s6922_s6 + $0x128] sm:$0xff]  }
 0x26a   : > { %v4669_v29 = vpop.f32.mrb[68].mxu1 }
 0x26b   : > { %5150 = vmatpush3.bf16.msra.mxu0 %v5637_v15  ;;  %v4670_v32 = vpop.f32.mrb[69].mxu1 }
 0x26c   : > { %5151 = vmatprep.subr.bf16.mxu0 %v5638_v26  ;;  %v6517_v34 = vadd.f32 %v4670_v32, %v4669_v29  ;;  %v4672_v4 = vpop.f32.mrb[70].mxu1  ;;  %v5653_v32 = vld [vmem:[%s6922_s6 + $0x130] sm:$0xff]  }
 0x26d   : > { %v4673_v38 = vpop.f32.mrb[71].mxu1 }
 0x26e   : > { %v4674_v39 = vadd.f32 %v4673_v38, %v4672_v4 }
 0x26f   : > { %5152 = vmatpush3.bf16.msra.mxu0 %v5638_v26 }
 0x270   : > { %5161 = vmatprep.subr.bf16.mxu0 %v5639_v33  ;;  %v1943_v61 = vpack.c.bf16 %v4674_v39, %v6517_v34  ;;  %v5654_v39 = vld [vmem:[%s6922_s6 + $0x138] sm:$0xff]  }
 0x272   : > { %5154 = vmatmul.mubr.bf16.vlgmr.msra.gmra.mrb[16].mxu0 %v1689_v0  ;;  %v4675_v43 = vpop.f32.mrb[72].mxu1 }
 0x273   : > { %5157 = vmatprep.mubr.bf16.mxu0 %v1690_v30  ;;  %5162 = vmatpush3.bf16.msra.mxu0 %v5639_v33  ;;  %v4676_v42 = vpop.f32.mrb[73].mxu1 }
 0x274   : > { %5163 = vmatprep.subr.bf16.mxu0 %v5640_v40  ;;  %v4677_v47 = vadd.f32 %v4676_v42, %v4675_v43  ;;  %v4678_v25 = vpop.f32.mrb[74].mxu1  ;;  %v5655_v42 = vld [vmem:[%s6922_s6 + $0x140] sm:$0xff]  }
 0x275   : > { %v4679_v35 = vpop.f32.mrb[75].mxu1 }
 0x276   : > { %v4680_v48 = vadd.f32 %v4679_v35, %v4678_v25 }
 0x277   : > { %5164 = vmatpush3.bf16.msra.mxu0 %v5640_v40 }
 0x278   : > { %5165 = vmatprep.subr.bf16.mxu0 %v5641_v46  ;;  %v1944_v27 = vpack.c.bf16 %v4680_v48, %v4677_v47  ;;  %v5656_v48 = vld [vmem:[%s6922_s6 + $0x148] sm:$0xff]  }
 0x27a   : > { %5158 = vmatmul.mubr.bf16.gmra.mrb[20].mxu0 %v1691_v41  ;;  %v4681_v18 = vpop.f32.mrb[76].mxu1 }
 0x27b   : > { %5166 = vmatpush3.bf16.msra.mxu0 %v5641_v46  ;;  %5177 = vmatprep.mubr.bf16.mxu0 %v1942_v28  ;;  %v4682_v54 = vpop.f32.mrb[77].mxu1 }
 0x27c   : > { %5167 = vmatprep.subr.bf16.mxu0 %v5642_v49  ;;  %v4683_v12 = vadd.f32 %v4682_v54, %v4681_v18  ;;  %v4684_v13 = vpop.f32.mrb[78].mxu1  ;;  %v5657_v54 = vld [vmem:[%s6922_s6 + $0x150] sm:$0xff]  }
 0x27d   : > { %v4685_v19 = vpop.f32.mrb[79].mxu1 }
 0x27e   : > { %v4686_v20 = vadd.f32 %v4685_v19, %v4684_v13 }
 0x27f   : > { %5168 = vmatpush3.bf16.msra.mxu0 %v5642_v49 }
 0x280   : > { %5169 = vmatprep.subr.bf16.mxu0 %v5643_v17  ;;  %v1945_v11 = vpack.c.bf16 %v4686_v20, %v4683_v12  ;;  %v5658_v20 = vld [vmem:[%s6922_s6 + $0x158] sm:$0xff]  }
 0x282   : > { %v4715_v56 = vpop.f32.mrb[80].mxu1 }
 0x283   : > { %5170 = vmatpush3.bf16.msra.mxu0 %v5643_v17  ;;  %v4716_v57 = vpop.f32.mrb[81].mxu1 }
 0x284   : > { %5171 = vmatprep.subr.bf16.mxu0 %v5644_v55  ;;  %v4717_v52 = vadd.f32 %v4716_v57, %v4715_v56  ;;  %v4718_v58 = vpop.f32.mrb[82].mxu1  ;;  %v5659_v57 = vld [vmem:[%s6922_s6 + $0x160] sm:$0xff]  }
 0x285   : > { %v4719_v59 = vpop.f32.mrb[83].mxu1 }
 0x286   : > { %v4720_v51 = vadd.f32 %v4719_v59, %v4718_v58 }
 0x287   : > { %5172 = vmatpush3.bf16.msra.mxu0 %v5644_v55 }
 0x288   : > { %5173 = vmatprep.subr.bf16.mxu0 %v5645_v53  ;;  %v2196_v63 = vpack.c.bf16 %v4720_v51, %v4717_v52  ;;  %v5660_v51 = vld [vmem:[%s6922_s6 + $0x168] sm:$0xff]  }
 0x28a   : > { %v4721_v0 = vpop.f32.mrb[84].mxu1 }
 0x28b   : > { %5174 = vmatpush3.bf16.msra.mxu0 %v5645_v53  ;;  %v4722_v50 = vpop.f32.mrb[85].mxu1 }
 0x28c   : > { %5175 = vmatprep.subr.bf16.mxu0 %v5646_v60  ;;  %v6544_v2 = vadd.f32 %v4722_v50, %v4721_v0  ;;  %v4724_v5 = vpop.f32.mrb[86].mxu1  ;;  %v5661_v50 = vld [vmem:[%s6922_s6 + $0x170] sm:$0xff]  }
 0x28d   : > { %v4725_v6 = vpop.f32.mrb[87].mxu1 }
 0x28e   : > { %v4726_v7 = vadd.f32 %v4725_v6, %v4724_v5 }
 0x28f   : > { %5176 = vmatpush3.bf16.msra.mxu0 %v5646_v60 }
 0x290   : > { %5185 = vmatprep.subr.bf16.mxu0 %v5647_v1  ;;  %v2197_v24 = vpack.c.bf16 %v4726_v7, %v6544_v2  ;;  %v5662_v7 = vld [vmem:[%s6922_s6 + $0x178] sm:$0xff]  }
 0x292   : > { %5178 = vmatmul.mubr.bf16.vlgmr.msra.gmra.mrb[16].mxu0 %v1943_v61  ;;  %v4727_v30 = vpop.f32.mrb[88].mxu1 }
 0x293   : > { %5181 = vmatprep.mubr.bf16.mxu0 %v1944_v27  ;;  %5186 = vmatpush3.bf16.msra.mxu0 %v5647_v1  ;;  %v4728_v31 = vpop.f32.mrb[89].mxu1 }
 0x294   : > { %5187 = vmatprep.subr.bf16.mxu0 %v5648_v8  ;;  %v4729_v3 = vadd.f32 %v4728_v31, %v4727_v30  ;;  %v4730_v62 = vpop.f32.mrb[90].mxu1  ;;  %v5663_v31 = vld [vmem:[%s6922_s6 + $0x180] sm:$0xff]  }
 0x295   : > { %v4731_v9 = vpop.f32.mrb[91].mxu1 }
 0x296   : > { %v4732_v10 = vadd.f32 %v4731_v9, %v4730_v62 }
 0x297   : > { %5188 = vmatpush3.bf16.msra.mxu0 %v5648_v8 }
 0x298   : > { %5189 = vmatprep.subr.bf16.mxu0 %v5649_v37  ;;  %v2198_v44 = vpack.c.bf16 %v4732_v10, %v4729_v3  ;;  %v5664_v10 = vld [vmem:[%s6922_s6 + $0x188] sm:$0xff]  }
 0x29a   : > { %5182 = vmatmul.mubr.bf16.gmra.mrb[20].mxu0 %v1945_v11  ;;  %v4733_v41 = vpop.f32.mrb[92].mxu1 }
 0x29b   : > { %5190 = vmatpush3.bf16.msra.mxu0 %v5649_v37  ;;  %5201 = vmatprep.mubr.bf16.mxu0 %v2196_v63  ;;  %v4734_v36 = vpop.f32.mrb[93].mxu1 }
 0x29c   : > { %5191 = vmatprep.subr.bf16.mxu0 %v5650_v45  ;;  %v4735_v15 = vadd.f32 %v4734_v36, %v4733_v41  ;;  %v4736_v16 = vpop.f32.mrb[94].mxu1  ;;  %v5665_v36 = vld [vmem:[%s6922_s6 + $0x190] sm:$0xff]  }
 0x29d   : > { %v4737_v21 = vpop.f32.mrb[95].mxu1 }
 0x29e   : > { %v4738_v22 = vadd.f32 %v4737_v21, %v4736_v16 }
 0x29f   : > { %5192 = vmatpush3.bf16.msra.mxu0 %v5650_v45 }
 0x2a0   : > { %5193 = vmatprep.subr.bf16.mxu0 %v5651_v14  ;;  %v2199_v26 = vpack.c.bf16 %v4738_v22, %v4735_v15  ;;  %v5666_v22 = vld [vmem:[%s6922_s6 + $0x198] sm:$0xff]  }
 0x2a2   : > { %v4767_v28 = vpop.f32.mrb[96].mxu1 }
 0x2a3   : > { %5194 = vmatpush3.bf16.msra.mxu0 %v5651_v14  ;;  %v4768_v29 = vpop.f32.mrb[97].mxu1 }
 0x2a4   : > { %5195 = vmatprep.subr.bf16.mxu0 %v5652_v23  ;;  %v4769_v33 = vadd.f32 %v4768_v29, %v4767_v28  ;;  %v4770_v34 = vpop.f32.mrb[98].mxu1  ;;  %v5667_v29 = vld [vmem:[%s6922_s6 + $0x1a0] sm:$0xff]  }
 0x2a5   : > { %v4771_v4 = vpop.f32.mrb[99].mxu1 }
 0x2a6   : > { %v4772_v38 = vadd.f32 %v4771_v4, %v4770_v34 }
 0x2a7   : > { %5196 = vmatpush3.bf16.msra.mxu0 %v5652_v23 }
 0x2a8   : > { %5197 = vmatprep.subr.bf16.mxu0 %v5653_v32  ;;  %v2450_v40 = vpack.c.bf16 %v4772_v38, %v4769_v33  ;;  %v5668_v38 = vld [vmem:[%s6922_s6 + $0x1a8] sm:$0xff]  }
 0x2aa   : > { %v4773_v61 = vpop.f32.mrb[100].mxu1 }
 0x2ab   : > { %5198 = vmatpush3.bf16.msra.mxu0 %v5653_v32  ;;  %v4774_v43 = vpop.f32.mrb[101].mxu1 }
 0x2ac   : > { %5199 = vmatprep.subr.bf16.mxu0 %v5654_v39  ;;  %v6571_v46 = vadd.f32 %v4774_v43, %v4773_v61  ;;  %v4776_v47 = vpop.f32.mrb[102].mxu1  ;;  %v5669_v43 = vld [vmem:[%s6922_s6 + $0x1b0] sm:$0xff]  }
 0x2ad   : > { %v4777_v25 = vpop.f32.mrb[103].mxu1 }
 0x2ae   : > { %v4778_v35 = vadd.f32 %v4777_v25, %v4776_v47 }
 0x2af   : > { %5200 = vmatpush3.bf16.msra.mxu0 %v5654_v39 }
 0x2b0   : > { %5209 = vmatprep.subr.bf16.mxu0 %v5655_v42  ;;  %v2451_v49 = vpack.c.bf16 %v4778_v35, %v6571_v46  ;;  %v5670_v35 = vld [vmem:[%s6922_s6 + $0x1b8] sm:$0xff]  }
 0x2b2   : > { %5202 = vmatmul.mubr.bf16.vlgmr.msra.gmra.mrb[16].mxu0 %v2197_v24  ;;  %v4779_v27 = vpop.f32.mrb[104].mxu1 }
 0x2b3   : > { %5205 = vmatprep.mubr.bf16.mxu0 %v2198_v44  ;;  %5210 = vmatpush3.bf16.msra.mxu0 %v5655_v42  ;;  %v4780_v18 = vpop.f32.mrb[105].mxu1 }
 0x2b4   : > { %5211 = vmatprep.subr.bf16.mxu0 %v5656_v48  ;;  %v4781_v17 = vadd.f32 %v4780_v18, %v4779_v27  ;;  %v4782_v12 = vpop.f32.mrb[106].mxu1  ;;  %v5671_v18 = vld [vmem:[%s6922_s6 + $0x1c0] sm:$0xff]  }
 0x2b5   : > { %v4783_v13 = vpop.f32.mrb[107].mxu1 }
 0x2b6   : > { %v4784_v19 = vadd.f32 %v4783_v13, %v4782_v12 }
 0x2b7   : > { %5212 = vmatpush3.bf16.msra.mxu0 %v5656_v48 }
 0x2b8   : > { %5213 = vmatprep.subr.bf16.mxu0 %v5657_v54  ;;  %v2452_v55 = vpack.c.bf16 %v4784_v19, %v4781_v17  ;;  %v5672_v19 = vld [vmem:[%s6922_s6 + $0x1c8] sm:$0xff]  }
 0x2ba   : > { %5206 = vmatmul.mubr.bf16.gmra.mrb[20].mxu0 %v2199_v26  ;;  %v4785_v11 = vpop.f32.mrb[108].mxu1 }
 0x2bb   : > { %5214 = vmatpush3.bf16.msra.mxu0 %v5657_v54  ;;  %5225 = vmatprep.mubr.bf16.mxu0 %v2450_v40  ;;  %v4786_v56 = vpop.f32.mrb[109].mxu1 }
 0x2bc   : > { %5215 = vmatprep.subr.bf16.mxu0 %v5658_v20  ;;  %v4787_v53 = vadd.f32 %v4786_v56, %v4785_v11  ;;  %v4788_v52 = vpop.f32.mrb[110].mxu1  ;;  %v5673_v56 = vld [vmem:[%s6922_s6 + $0x1d0] sm:$0xff]  }
 0x2bd   : > { %v4789_v58 = vpop.f32.mrb[111].mxu1 }
 0x2be   : > { %v4790_v59 = vadd.f32 %v4789_v58, %v4788_v52 }
 0x2bf   : > { %5216 = vmatpush3.bf16.msra.mxu0 %v5658_v20 }
 0x2c0   : > { %5217 = vmatprep.subr.bf16.mxu0 %v5659_v57  ;;  %v2453_v60 = vpack.c.bf16 %v4790_v59, %v4787_v53  ;;  %v5674_v59 = vld [vmem:[%s6922_s6 + $0x1d8] sm:$0xff]  }
 0x2c2   : > { %v4819_v63 = vpop.f32.mrb[112].mxu1 }
 0x2c3   : > { %5218 = vmatpush3.bf16.msra.mxu0 %v5659_v57  ;;  %v4820_v0 = vpop.f32.mrb[113].mxu1 }
 0x2c4   : > { %5219 = vmatprep.subr.bf16.mxu0 %v5660_v51  ;;  %v4821_v1 = vadd.f32 %v4820_v0, %v4819_v63  ;;  %v4822_v2 = vpop.f32.mrb[114].mxu1  ;;  %v5675_v0 = vld [vmem:[%s6922_s6 + $0x1e0] sm:$0xff]  }
 0x2c5   : > { %v4823_v5 = vpop.f32.mrb[115].mxu1 }
 0x2c6   : > { %v4824_v6 = vadd.f32 %v4823_v5, %v4822_v2 }
 0x2c7   : > { %5220 = vmatpush3.bf16.msra.mxu0 %v5660_v51 }
 0x2c8   : > { %5221 = vmatprep.subr.bf16.mxu0 %v5661_v50  ;;  %v2704_v8 = vpack.c.bf16 %v4824_v6, %v4821_v1  ;;  %v5676_v6 = vld [vmem:[%s6922_s6 + $0x1e8] sm:$0xff]  }
 0x2ca   : > { %v4825_v24 = vpop.f32.mrb[116].mxu1 }
 0x2cb   : > { %5222 = vmatpush3.bf16.msra.mxu0 %v5661_v50  ;;  %v4826_v30 = vpop.f32.mrb[117].mxu1 }
 0x2cc   : > { %5223 = vmatprep.subr.bf16.mxu0 %v5662_v7  ;;  %v6598_v37 = vadd.f32 %v4826_v30, %v4825_v24  ;;  %v4828_v3 = vpop.f32.mrb[118].mxu1  ;;  %v5677_v30 = vld [vmem:[%s6922_s6 + $0x1f0] sm:$0xff]  }
 0x2cd   : > { %v4829_v62 = vpop.f32.mrb[119].mxu1 }
 0x2ce   : > { %v4830_v9 = vadd.f32 %v4829_v62, %v4828_v3 }
 0x2cf   : > { %5224 = vmatpush3.bf16.msra.mxu0 %v5662_v7 }
 0x2d0   : > { %5233 = vmatprep.subr.bf16.mxu0 %v5663_v31  ;;  %v2705_v45 = vpack.c.bf16 %v4830_v9, %v6598_v37  ;;  %v5678_v9 = vld [vmem:[%s6922_s6 + $0x1f8] sm:$0xff]  }
 0x2d2   : > { %5226 = vmatmul.mubr.bf16.vlgmr.msra.gmra.mrb[16].mxu0 %v2451_v49  ;;  %v4831_v44 = vpop.f32.mrb[120].mxu1 }
 0x2d3   : > { %5229 = vmatprep.mubr.bf16.mxu0 %v2452_v55  ;;  %5234 = vmatpush3.bf16.msra.mxu0 %v5663_v31  ;;  %v4832_v41 = vpop.f32.mrb[121].mxu1 }
 0x2d4   : > { %5235 = vmatprep.subr.bf16.mxu0 %v5664_v10  ;;  %v4833_v14 = vadd.f32 %v4832_v41, %v4831_v44  ;;  %v4834_v15 = vpop.f32.mrb[122].mxu1  ;;  %v5679_v41 = vld [vmem:[%s6922_s6 + $0x200] sm:$0xff]  }
 0x2d5   : > { %v4835_v16 = vpop.f32.mrb[123].mxu1 }
 0x2d6   : > { %v4836_v21 = vadd.f32 %v4835_v16, %v4834_v15 }
 0x2d7   : > { %5236 = vmatpush3.bf16.msra.mxu0 %v5664_v10 }
 0x2d8   : > { %5237 = vmatprep.subr.bf16.mxu0 %v5665_v36  ;;  %v2706_v23 = vpack.c.bf16 %v4836_v21, %v4833_v14  ;;  %v5680_v21 = vld [vmem:[%s6922_s6 + $0x208] sm:$0xff]  }
 0x2da   : > { %5230 = vmatmul.mubr.bf16.gmra.mrb[20].mxu0 %v2453_v60  ;;  %v4837_v26 = vpop.f32.mrb[124].mxu1 }
 0x2db   : > { %5238 = vmatpush3.bf16.msra.mxu0 %v5665_v36  ;;  %5249 = vmatprep.mubr.bf16.mxu0 %v2704_v8  ;;  %v4838_v28 = vpop.f32.mrb[125].mxu1 }
 0x2dc   : > { %5239 = vmatprep.subr.bf16.mxu0 %v5666_v22  ;;  %v4839_v32 = vadd.f32 %v4838_v28, %v4837_v26  ;;  %v4840_v33 = vpop.f32.mrb[126].mxu1  ;;  %v5681_v28 = vld [vmem:[%s6922_s6 + $0x210] sm:$0xff]  }
 0x2dd   : > { %v4841_v34 = vpop.f32.mrb[127].mxu1 }
 0x2de   : > { %v4842_v4 = vadd.f32 %v4841_v34, %v4840_v33 }
 0x2df   : > { %5240 = vmatpush3.bf16.msra.mxu0 %v5666_v22 }
 0x2e0   : > { %5241 = vmatprep.subr.bf16.mxu0 %v5667_v29  ;;  %v2707_v39 = vpack.c.bf16 %v4842_v4, %v4839_v32  ;;  %v5682_v4 = vld [vmem:[%s6922_s6 + $0x218] sm:$0xff]  }
 0x2e2   : > { %v4871_v40 = vpop.f32.mrb[128].mxu1 }
 0x2e3   : > { %5242 = vmatpush3.bf16.msra.mxu0 %v5667_v29  ;;  %v4872_v61 = vpop.f32.mrb[129].mxu1 }
 0x2e4   : > { %5243 = vmatprep.subr.bf16.mxu0 %v5668_v38  ;;  %v4873_v42 = vadd.f32 %v4872_v61, %v4871_v40  ;;  %v4874_v46 = vpop.f32.mrb[130].mxu1  ;;  %v5683_v61 = vld [vmem:[%s6922_s6 + $0x220] sm:$0xff]  }
 0x2e5   : > { %v4875_v47 = vpop.f32.mrb[131].mxu1 }
 0x2e6   : > { %v4876_v25 = vadd.f32 %v4875_v47, %v4874_v46 }
 0x2e7   : > { %5244 = vmatpush3.bf16.msra.mxu0 %v5668_v38 }
 0x2e8   : > { %5245 = vmatprep.subr.bf16.mxu0 %v5669_v43  ;;  %v2958_v48 = vpack.c.bf16 %v4876_v25, %v4873_v42  ;;  %v5684_v25 = vld [vmem:[%s6922_s6 + $0x228] sm:$0xff]  }
 0x2ea   : > { %v4877_v49 = vpop.f32.mrb[132].mxu1 }
 0x2eb   : > { %5246 = vmatpush3.bf16.msra.mxu0 %v5669_v43  ;;  %v4878_v27 = vpop.f32.mrb[133].mxu1 }
 0x2ec   : > { %5247 = vmatprep.subr.bf16.mxu0 %v5670_v35  ;;  %v6625_v54 = vadd.f32 %v4878_v27, %v4877_v49  ;;  %v4880_v17 = vpop.f32.mrb[134].mxu1  ;;  %v5686_v49 = vld [vmem:[%s6922_s6 + $0x238] sm:$0xff]   ;;  %v5689_v27 = vld [vmem:[%s6946_s28 + $0x4] ss:$8 sps:$4 sm:$0xff]  }
 0x2ed   : > { %v4881_v12 = vpop.f32.mrb[135].mxu1  ;;  %3475 = vmatprep.mubr.bf16.mxu1 %v5689_v27 }
 0x2ee   : > { %v4882_v13 = vadd.f32 %v4881_v12, %v4880_v17  ;;  %v5692_v17 = vld [vmem:[%s6946_s28 + $0x10] ss:$8 sps:$4 sm:$0xff]   ;;  %v5693_v12 = vld [vmem:[%s6928_s12] sm:$0xff]  }
 0x2ef   : > { %5248 = vmatpush3.bf16.msra.mxu0 %v5670_v35 }
 0x2f0   : > { %5257 = vmatprep.subr.bf16.mxu0 %v5671_v18  ;;  %v2959_v20 = vpack.c.bf16 %v4882_v13, %v6625_v54  ;;  %v5690_v54 = vld [vmem:[%s6946_s28 + $0x14] ss:$8 sps:$4 sm:$0xff]   ;;  %v5759_v13 = vmov 0.0  }
 0x2f2   : > { %5250 = vmatmul.mubr.bf16.vlgmr.msra.gmra.mrb[16].mxu0 %v2705_v45  ;;  %v4883_v55 = vpop.f32.mrb[136].mxu1 }
 0x2f3   : > { %5253 = vmatprep.mubr.bf16.mxu0 %v2706_v23  ;;  %5258 = vmatpush3.bf16.msra.mxu0 %v5671_v18  ;;  %v4884_v11 = vpop.f32.mrb[137].mxu1  ;;  %v5687_v18 = vld [vmem:[%s6946_s28] ss:$8 sps:$4 sm:$0xff]  }
 0x2f4   : > { %5259 = vmatprep.subr.bf16.mxu0 %v5672_v19  ;;  %v4885_v57 = vadd.f32 %v4884_v11, %v4883_v55  ;;  %v4886_v53 = vpop.f32.mrb[138].mxu1  ;;  %3476 = vmatmul.mubr.bf16.vlgmr.msra.gmra.mrb[160].mxu1 %v5687_v18  ;;  %v5697_v55 = vld [vmem:[%s6928_s12 + $0x10] sm:$0xff]   ;;  %v5698_v11 = vld [vmem:[%s6946_s28 + $0x20] ss:$8 sps:$4 sm:$0xff]  }
 0x2f5   : > { %v4887_v52 = vpop.f32.mrb[139].mxu1  ;;  %3483 = vmatprep.mubr.bf16.mxu1 %v5690_v54 }
 0x2f6   : > { %v4888_v58 = vadd.f32 %v4887_v52, %v4886_v53  ;;  %v5702_v53 = vld [vmem:[%s6928_s12 + $0x20] sm:$0xff]   ;;  %v5703_v52 = vld [vmem:[%s6946_s28 + $0x30] ss:$8 sps:$4 sm:$0xff]  }
 0x2f7   : > { %5260 = vmatpush3.bf16.msra.mxu0 %v5672_v19  ;;  %v5694_v19 = vld [vmem:[%s6928_s12 + $0x8] sm:$0xff]  }
 0x2f8   : > { %5261 = vmatprep.subr.bf16.mxu0 %v5673_v56  ;;  %v2960_v51 = vpack.c.bf16 %v4888_v58, %v4885_v57  ;;  %v5700_v57 = vld [vmem:[%s6946_s28 + $0x34] ss:$8 sps:$4 sm:$0xff]   ;;  %v5704_v58 = vld [vmem:[%s6928_s12 + $0x28] sm:$0xff]  }
 0x2fa   : > { %5254 = vmatmul.mubr.bf16.gmra.mrb[20].mxu0 %v2707_v39  ;;  %v4889_v60 = vpop.f32.mrb[140].mxu1 }
 0x2fb   : > { %5262 = vmatpush3.bf16.msra.mxu0 %v5673_v56  ;;  %5273 = vmatprep.mubr.bf16.mxu0 %v2958_v48  ;;  %v4890_v63 = vpop.f32.mrb[141].mxu1  ;;  %v5685_v48 = vld [vmem:[%s6922_s6 + $0x230] sm:$0xff]   ;;  %v5699_v56 = vld [vmem:[%s6928_s12 + $0x18] sm:$0xff]  }
 0x2fc   : > { %5263 = vmatprep.subr.bf16.mxu0 %v5674_v59  ;;  %v4891_v50 = vadd.f32 %v4890_v63, %v4889_v60  ;;  %v4892_v1 = vpop.f32.mrb[142].mxu1  ;;  %3484 = vmatmul.mubr.bf16.gmra.mrb[164].mxu1 %v5692_v17  ;;  %v5707_v60 = vld [vmem:[%s6925_s9] sm:$0xff]   ;;  %v5708_v63 = vld [vmem:[%s6925_s9 + $0x8] sm:$0xff]  }
 0x2fd   : > { %v4893_v2 = vpop.f32.mrb[143].mxu1  ;;  %5305 = vmatprep.subr.bf16.mxu1 %v5707_v60 }
 0x2fe   : > { %v4894_v5 = vadd.f32 %v4893_v2, %v4892_v1  ;;  %5306 = vmatpush3.bf16.msra.mxu1 %v5707_v60  ;;  %v5711_v1 = vld [vmem:[%s6925_s9 + $0x20] sm:$0xff]   ;;  %v5712_v2 = vld [vmem:[%s6925_s9 + $0x28] sm:$0xff]  }
 0x2ff   : > { %5264 = vmatpush3.bf16.msra.mxu0 %v5674_v59  ;;  %v5705_v59 = vld [vmem:[%s6928_s12 + $0x30] sm:$0xff]   ;;  %5307 = vmatprep.subr.bf16.mxu1 %v5708_v63 }
 0x300   : > { %5265 = vmatprep.subr.bf16.mxu0 %v5675_v0  ;;  %v2961_v7 = vpack.c.bf16 %v4894_v5, %v4891_v50  ;;  %v5710_v50 = vld [vmem:[%s6925_s9 + $0x18] sm:$0xff]   ;;  %v5713_v5 = vld [vmem:[%s6925_s9 + $0x30] sm:$0xff]  }
 0x302   : > { %v4923_v8 = vpop.f32.mrb[144].mxu1  ;;  %5308 = vmatpush3.bf16.msra.mxu1 %v5708_v63 }
 0x303   : > { %5266 = vmatpush3.bf16.msra.mxu0 %v5675_v0  ;;  %v4924_v24 = vpop.f32.mrb[145].mxu1  ;;  %v5709_v0 = vld [vmem:[%s6925_s9 + $0x10] sm:$0xff]  }
 0x304   : > { %5267 = vmatprep.subr.bf16.mxu0 %v5676_v6  ;;  %v4925_v31 = vadd.f32 %v4924_v24, %v4923_v8  ;;  %v4926_v37 = vpop.f32.mrb[146].mxu1  ;;  %5309 = vmatprep.subr.bf16.mxu1 %v5709_v0  ;;  %v4378_v24 = vld [vmem:[%s6924_s8] ss:$0 sm:$0xff] }
 0x305   : > { %v4927_v3 = vpop.f32.mrb[147].mxu1 }
 0x306   : > { %v4928_v62 = vadd.f32 %v4927_v3, %v4926_v37  ;;  %5310 = vmatpush3.bf16.msra.mxu1 %v5709_v0 }
 0x307   : > { %5268 = vmatpush3.bf16.msra.mxu0 %v5676_v6  ;;  %5311 = vmatprep.subr.bf16.mxu1 %v5710_v50  ;;  %v5714_v6 = vld [vmem:[%s6925_s9 + $0x38] sm:$0xff]  }
 0x308   : > { %5269 = vmatprep.subr.bf16.mxu0 %v5677_v30  ;;  %v3212_v10 = vpack.c.bf16 %v4928_v62, %v4925_v31 }
 0x30a   : > { %v4929_v45 = vpop.f32.mrb[148].mxu1  ;;  %5312 = vmatpush3.bf16.msra.mxu1 %v5710_v50 }
 0x30b   : > { %5270 = vmatpush3.bf16.msra.mxu0 %v5677_v30  ;;  %v4930_v44 = vpop.f32.mrb[149].mxu1  ;;  %5313 = vmatprep.subr.bf16.mxu1 %v5711_v1 }
 0x30c   : > { %5271 = vmatprep.subr.bf16.mxu0 %v5678_v9  ;;  %v4931_v36 = vadd.f32 %v4930_v44, %v4929_v45  ;;  %v4932_v14 = vpop.f32.mrb[150].mxu1 }
 0x30d   : > { %v4933_v15 = vpop.f32.mrb[151].mxu1 }
 0x30e   : > { %v4934_v16 = vadd.f32 %v4933_v15, %v4932_v14  ;;  %5314 = vmatpush3.bf16.msra.mxu1 %v5711_v1 }
 0x30f   : > { %5272 = vmatpush3.bf16.msra.mxu0 %v5678_v9  ;;  %5315 = vmatprep.subr.bf16.mxu1 %v5712_v2 }
 0x310   : > { %5281 = vmatprep.subr.bf16.mxu0 %v5679_v41  ;;  %v3213_v22 = vpack.c.bf16 %v4934_v16, %v4931_v36 }
 0x312   : > { %5274 = vmatmul.mubr.bf16.vlgmr.msra.gmra.mrb[16].mxu0 %v2959_v20  ;;  %v4935_v23 = vpop.f32.mrb[152].mxu1  ;;  %v5695_v20 = vld [vmem:[%s6946_s28 + $0x24] ss:$8 sps:$4 sm:$0xff]   ;;  %5316 = vmatpush3.bf16.msra.mxu1 %v5712_v2 }
 0x313   : > { %5277 = vmatprep.mubr.bf16.mxu0 %v2960_v51  ;;  %5282 = vmatpush3.bf16.msra.mxu0 %v5679_v41  ;;  %v4936_v26 = vpop.f32.mrb[153].mxu1  ;;  %v5706_v51 = vld [vmem:[%s6928_s12 + $0x38] sm:$0xff]  }
 0x314   : > { %5283 = vmatprep.subr.bf16.mxu0 %v5680_v21  ;;  %v4937_v29 = vadd.f32 %v4936_v26, %v4935_v23  ;;  %v4938_v32 = vpop.f32.mrb[154].mxu1  ;;  %3491 = vmatprep.mubr.bf16.mxu1 %v5695_v20 }
 0x315   : > { %v4939_v33 = vpop.f32.mrb[155].mxu1  ;;  %3492 = vmatmul.mubr.bf16.gmra.mrb[168].mxu1 %v5698_v11  ;;  %5317 = vmatprep.subr.bf16.mxu1 %v5713_v5 }
 0x316   : > { %v4940_v34 = vadd.f32 %v4939_v33, %v4938_v32  ;;  %3499 = vmatprep.mubr.bf16.mxu1 %v5700_v57  ;;  %5318 = vmatpush3.bf16.msra.mxu1 %v5713_v5 }
 0x317   : > { %5284 = vmatpush3.bf16.msra.mxu0 %v5680_v21  ;;  %5319 = vmatprep.subr.bf16.mxu1 %v5714_v6 }
 0x318   : > { %5285 = vmatprep.subr.bf16.mxu0 %v5681_v28  ;;  %v3214_v38 = vpack.c.bf16 %v4940_v34, %v4937_v29 }
 0x31a   : > { %5278 = vmatmul.mubr.bf16.gmra.mrb[20].mxu0 %v2961_v7  ;;  %v4941_v39 = vpop.f32.mrb[156].mxu1  ;;  %5320 = vmatpush3.bf16.msra.mxu1 %v5714_v6  ;;  %v4377_v7 = vld [vmem:[%s6923_s7] ss:$0 sm:$0xff] }
 0x31b   : > { %5286 = vmatpush3.bf16.msra.mxu0 %v5681_v28  ;;  %5297 = vmatprep.mubr.bf16.mxu0 %v3212_v10  ;;  %v4942_v40 = vpop.f32.mrb[157].mxu1 }
 0x31c   : > { %5287 = vmatprep.subr.bf16.mxu0 %v5682_v4  ;;  %v4943_v43 = vadd.f32 %v4942_v40, %v4941_v39  ;;  %v4944_v42 = vpop.f32.mrb[158].mxu1  ;;  %5349 = vmatprep.subr.bf16.mxu1 %v5759_v13 }
 0x31d   : > { %v4945_v46 = vpop.f32.mrb[159].mxu1  ;;  %3500 = vmatmul.mubr.bf16.gmra.mrb[172].mxu1 %v5703_v52 }
 0x31e   : > { %v4946_v47 = vadd.f32 %v4945_v46, %v4944_v42 }
 0x31f   : > { %5288 = vmatpush3.bf16.msra.mxu0 %v5682_v4 }
 0x320   : > { %5289 = vmatprep.subr.bf16.mxu0 %v5683_v61  ;;  %v3215_v35 = vpack.c.bf16 %v4946_v47, %v4943_v43 }
 0x323   : > { %5290 = vmatpush3.bf16.msra.mxu0 %v5683_v61 }
 0x324   : > { %5291 = vmatprep.subr.bf16.mxu0 %v5684_v25 }
 0x327   : > { %5292 = vmatpush3.bf16.msra.mxu0 %v5684_v25 }
 0x328   : > { %5293 = vmatprep.subr.bf16.mxu0 %v5685_v48 }
 0x32b   : > { %5294 = vmatpush3.bf16.msra.mxu0 %v5685_v48 }
 0x32c   : > { %5295 = vmatprep.subr.bf16.mxu0 %v5686_v49 }
 0x32f   : > { %5296 = vmatpush3.bf16.msra.mxu0 %v5686_v49 }
 0x330   : > { %5329 = vmatprep.subr.bf16.mxu0 %v5759_v13 }
 0x332   : > { %5298 = vmatmul.mubr.bf16.vlgmr.msra.gmra.mrb[16].mxu0 %v3213_v22 }
 0x333   : > { %5301 = vmatprep.mubr.bf16.mxu0 %v3214_v38  ;;  %5330 = vmatpush3.bf16.msra.mxu0 %v5693_v12 }
 0x334   : > { %5331 = vmatprep.subr.bf16.mxu0 %v5759_v13 }
 0x337   : > { %5332 = vmatpush3.bf16.msra.mxu0 %v5694_v19 }
 0x338   : > { %5333 = vmatprep.subr.bf16.mxu0 %v5759_v13 }
 0x33a   : > { %5302 = vmatmul.mubr.bf16.gmra.mrb[20].mxu0 %v3215_v35 }
 0x33b   : > { %5334 = vmatpush3.bf16.msra.mxu0 %v5697_v55  ;;  %5345 = vmatprep.mubr.msk.bf16.mxu0 %vm5760_vm0, %v5759_v13 }
 0x33c   : > { %5335 = vmatprep.subr.bf16.mxu0 %v5759_v13 }
 0x33f   : > { %5336 = vmatpush3.bf16.msra.mxu0 %v5699_v56 }
 0x340   : > { %5337 = vmatprep.subr.bf16.mxu0 %v5759_v13 }
 0x343   : > { %5338 = vmatpush3.bf16.msra.mxu0 %v5702_v53 }
 0x344   : > { %5339 = vmatprep.subr.bf16.mxu0 %v5759_v13 }
 0x347   : > { %5340 = vmatpush3.bf16.msra.mxu0 %v5704_v58 }
 0x348   : > { %5341 = vmatprep.subr.bf16.mxu0 %v5759_v13 }
 0x34b   : > { %5342 = vmatpush3.bf16.msra.mxu0 %v5705_v59 }
 0x34c   : > { %5343 = vmatprep.subr.bf16.mxu0 %v5759_v13 }
 0x34f   : > { %5344 = vmatpush3.bf16.msra.mxu0 %v5706_v51 }
 0x3c7   : > { %v4975_v5 = vpop.f32.mrb[160].mxu1 }
 0x3c8   : > { %v4976_v6 = vpop.f32.mrb[161].mxu1 }
 0x405   : > { %v5299_v8 = vpop.f32.mrb[16].mxu0 }
 0x406   : > { %v3362_v30 = vmul.f32 %v5299_v8, %v4377_v7  ;;  %v3314_v31 = vpop.f32.mrb[17].mxu0  ;;  %v4978_v8 = vpop.f32.mrb[162].mxu1 }
 0x407   : > { %v3360_v37 = vmul.f32 %v4377_v7, %v3314_v31  ;;  %v5300_v3 = vpop.f32.mrb[18].mxu0 }
 0x408   : > { %v3377_v62 = vadd.f32 %v4378_v24, %v3362_v30  ;;  %v3363_v9 = vmul.f32 %v5300_v3, %v4377_v7  ;;  %v3317_v10 = vpop.f32.mrb[19].mxu0 }
 0x409   : > { %v3375_v45 = vadd.f32 %v4378_v24, %v3360_v37  ;;  %v3361_v44 = vmul.f32 %v4377_v7, %v3317_v10 }
 0x40a   : > { %v3378_v41 = vadd.f32 %v4378_v24, %v3363_v9  ;;  %v3385_v14 = vmax.f32 %v3377_v62, 0.0 }
 0x40b   : > { %v3376_v36 = vadd.f32 %v4378_v24, %v3361_v44  ;;  %v3383_v16 = vmax.f32 %v3375_v45, 0.0  ;;  %v5715_v44 = vld [vmem:[%s6930_s14] sm:$0xff]  }
 0x40c   : > { %v3386_v15 = vmax.f32 %v3378_v41, 0.0 }
 0x40d   : > { %v3384_v21 = vmax.f32 %v3376_v36, 0.0  ;;  %v5303_v22 = vpop.f32.mrb[20].mxu0  ;;  %v5716_v36 = vld [vmem:[%s6930_s14 + $0x8] sm:$0xff]  }
 0x40e   : > { %v6762_v23 = vpack.c.bf16 %v3386_v15, %v3385_v14  ;;  %v3366_v26 = vmul.f32 %v5303_v22, %v4377_v7  ;;  %v3330_v28 = vpop.f32.mrb[21].mxu0  ;;  %v5717_v14 = vld [vmem:[%s6930_s14 + $0x10] sm:$0xff]  }
 0x40f   : > { %v6764_v29 = vpack.c.bf16 %v3384_v21, %v3383_v16  ;;  %v3364_v32 = vmul.f32 %v4377_v7, %v3330_v28  ;;  %v5304_v33 = vpop.f32.mrb[22].mxu0 }
 0x410   : > { %v3381_v34 = vadd.f32 %v4378_v24, %v3366_v26  ;;  %v3367_v4 = vmul.f32 %v5304_v33, %v4377_v7  ;;  %v3333_v38 = vpop.f32.mrb[23].mxu0  ;;  %v3673_v46 = vunpack.c.l.bf16 %v6762_v23  ;;  %v3674_v17 = vunpack.c.h.bf16 %v6762_v23  ;;  %v5718_v26 = vld [vmem:[%s6930_s14 + $0x18] sm:$0xff]  }
 0x411   : > { %v3671_v39 = vunpack.c.l.bf16 %v6764_v29  ;;  %v3672_v40 = vunpack.c.h.bf16 %v6764_v29  ;;  %v3379_v61 = vadd.f32 %v4378_v24, %v3364_v32  ;;  %v3365_v43 = vmul.f32 %v4377_v7, %v3333_v38 }
 0x412   : > { %v3382_v42 = vadd.f32 %v4378_v24, %v3367_v4  ;;  %v3389_v35 = vmax.f32 %v3381_v34, 0.0  ;;  %v4977_v7 = vadd.f32 %v4976_v6, %v4975_v5  ;;  %v5719_v34 = vld [vmem:[%s6930_s14 + $0x20] sm:$0xff]   ;;  %v5724_v6 = vld [vmem:[%s6932_s16 + $0x8] sm:$0xff]  }
 0x413   : > { %v3679_v47 = vadd.f32 %v3672_v40, %v3671_v39  ;;  %v3380_v25 = vadd.f32 %v4378_v24, %v3365_v43  ;;  %v3387_v27 = vmax.f32 %v3379_v61, 0.0  ;;  %v4979_v24 = vpop.f32.mrb[163].mxu1  ;;  %v5723_v5 = vld [vmem:[%s6932_s16] sm:$0xff]  }
 0x414   : > { %v3390_v48 = vmax.f32 %v3382_v42, 0.0  ;;  %v4980_v30 = vadd.f32 %v4979_v24, %v4978_v8  ;;  %v4981_v37 = vpop.f32.mrb[164].mxu1  ;;  %v5720_v42 = vld [vmem:[%s6930_s14 + $0x28] sm:$0xff]   ;;  %5369 = vmatprep.subr.bf16.mxu0 %v5723_v5  ;;  %v5726_v8 = vld [vmem:[%s6932_s16 + $0x18] sm:$0xff]   ;;  %v5727_v24 = vld [vmem:[%s6932_s16 + $0x20] sm:$0xff]  }
 0x415   : > { %v3680_v49 = vadd.f32 %v3679_v47, %v3673_v46  ;;  %v3388_v18 = vmax.f32 %v3380_v25, 0.0  ;;  %v4982_v3 = vpop.f32.mrb[165].mxu1 }
 0x416   : > { %v6775_v54 = vpack.c.bf16 %v3390_v48, %v3389_v35  ;;  %v3508_v31 = vpack.c.bf16 %v4980_v30, %v4977_v7  ;;  %v4983_v62 = vadd.f32 %v4982_v3, %v4981_v37  ;;  %v4984_v9 = vpop.f32.mrb[166].mxu1  ;;  %v5721_v48 = vld [vmem:[%s6930_s14 + $0x30] sm:$0xff]   ;;  %v5728_v30 = vld [vmem:[%s6932_s16 + $0x28] sm:$0xff]   ;;  %v5730_v37 = vld [vmem:[%s6932_s16 + $0x38] sm:$0xff]  }
 0x417   : > { %v6778_v12 = vpack.c.bf16 %v3388_v18, %v3387_v27  ;;  %v3681_v20 = vadd.f32 %v3680_v49, %v3674_v17  ;;  %v4985_v10 = vpop.f32.mrb[167].mxu1  ;;  %v5722_v49 = vld [vmem:[%s6930_s14 + $0x38] sm:$0xff]   ;;  %v3710_v27 = vld [vmem:[%s6929_s13] sm:$0x1]  ;;  %v5725_v7 = vld [vmem:[%s6932_s16 + $0x10] sm:$0xff]  }
 0x418   : > { %v3677_v56 = vunpack.c.l.bf16 %v6775_v54  ;;  %v3678_v53 = vunpack.c.h.bf16 %v6775_v54  ;;  %5321 = vmatprep.mubr.bf16.mxu1 %v3508_v31  ;;  %v4986_v45 = vadd.f32 %v4985_v10, %v4984_v9  ;;  %v4987_v15 = vpop.f32.mrb[168].mxu1  ;;  %v5729_v31 = vld [vmem:[%s6932_s16 + $0x30] sm:$0xff]   ;;  %v3817_v3 = vld [vmem:[%s6931_s15] sm:$0x1] }
 0x419   : > { %v3675_v19 = vunpack.c.l.bf16 %v6778_v12  ;;  %v3676_v55 = vunpack.c.h.bf16 %v6778_v12  ;;  %v4988_v16 = vpop.f32.mrb[169].mxu1  ;;  %v4396_v12 = vld [vmem:[%s6927_s11] ss:$0 sm:$0xff] }
 0x41a   : > { %v3509_v41 = vpack.c.bf16 %v4986_v45, %v4983_v62  ;;  %v4989_v21 = vadd.f32 %v4988_v16, %v4987_v15  ;;  %v4990_v22 = vpop.f32.mrb[170].mxu1  ;;  %v3912_v15 = vlaneseq }
 0x41b   : > { %v3682_v11 = vadd.f32 %v3681_v20, %v3675_v19  ;;  %v4991_v28 = vpop.f32.mrb[171].mxu1 }
 0x41c   : > { %5322 = vmatmul.mubr.bf16.vlgmr.msra.gmra.mrb[176].mxu1 %v3509_v41  ;;  %v4992_v32 = vadd.f32 %v4991_v28, %v4990_v22  ;;  %v4993_v4 = vpop.f32.mrb[172].mxu1  ;;  %v3913_v16 = vshrl.u32 %v3912_v15, 7 }
 0x41d   : > { %v3683_v57 = vadd.f32 %v3682_v11, %v3676_v55  ;;  %5350 = vmatpush3.bf16.msra.mxu1 %v5715_v44  ;;  %v4994_v38 = vpop.f32.mrb[173].mxu1 }
 0x41e   : > { %5351 = vmatprep.subr.bf16.mxu1 %v5759_v13  ;;  %v3510_v33 = vpack.c.bf16 %v4992_v32, %v4989_v21  ;;  %v4995_v61 = vadd.f32 %v4994_v38, %v4993_v4  ;;  %v4996_v43 = vpop.f32.mrb[174].mxu1  ;;  %v3914_v21 = vsub.s32 0, %v3913_v16 }
 0x41f   : > { %v3684_v52 = vadd.f32 %v3683_v57, %v3677_v56  ;;  %v4997_v47 = vpop.f32.mrb[175].mxu1 }
 0x420   : > { %5325 = vmatprep.mubr.bf16.mxu1 %v3510_v33  ;;  %v4998_v25 = vadd.f32 %v4997_v47, %v4996_v43 }
 0x421   : > { %v3685_v58 = vadd.f32 %v3684_v52, %v3678_v53  ;;  %5352 = vmatpush3.bf16.msra.mxu1 %v5716_v36 }
 0x422   : > { %5353 = vmatprep.subr.bf16.mxu1 %v5759_v13  ;;  %v3511_v35 = vpack.c.bf16 %v4998_v25, %v4995_v61 }
 0x423   : > { %v3686_v59 = vrot.slane %v3685_v58, 4 }
 0x424   : > { %5326 = vmatmul.mubr.bf16.gmra.mrb[180].mxu1 %v3511_v35 }
 0x425   : > { %v3687_v51 = vadd.f32 %v3686_v59, %v3685_v58  ;;  %5354 = vmatpush3.bf16.msra.mxu1 %v5717_v14  ;;  %5365 = vmatprep.mubr.msk.bf16.mxu1 %vm5760_vm0, %v5759_v13 }
 0x426   : > { %5355 = vmatprep.subr.bf16.mxu1 %v5759_v13 }
 0x427   : > { %v3688_v60 = vrot.slane %v3687_v51, 2 }
 0x429   : > { %v3689_v63 = vadd.f32 %v3688_v60, %v3687_v51  ;;  %5356 = vmatpush3.bf16.msra.mxu1 %v5718_v26 }
 0x42a   : > { %5357 = vmatprep.subr.bf16.mxu1 %v5759_v13 }
 0x42b   : > { %v3690_v0 = vrot.slane %v3689_v63, 1 }
 0x42d   : > { %v3691_v50 = vadd.f32 %v3690_v0, %v3689_v63  ;;  %5358 = vmatpush3.bf16.msra.mxu1 %v5719_v34 }
 0x42e   : > { %5359 = vmatprep.subr.bf16.mxu1 %v5759_v13 }
 0x42f   : > { %v3692_v1 = vmul.f32 0.015625, %v3691_v50 }
 0x431   : > { %v3693_v2 = vpack.c.bf16 %v3692_v1, %v3692_v1  ;;  %5360 = vmatpush3.bf16.msra.mxu1 %v5720_v42 }
 0x432   : > { %5361 = vmatprep.subr.bf16.mxu1 %v5759_v13 }
 0x433   : > { %5346 = vmatmul.mubr.bf16.vlgmr.msra.gmra.mrb[24].mxu0 %v3693_v2 }
 0x434   : > { %5370 = vmatpush3.bf16.msra.mxu0 %v5723_v5 }
 0x435   : > { %5362 = vmatpush3.bf16.msra.mxu1 %v5721_v48  ;;  %5371 = vmatprep.subr.bf16.mxu0 %v5724_v6 }
 0x436   : > { %5363 = vmatprep.subr.bf16.mxu1 %v5759_v13 }
 0x438   : > { %5372 = vmatpush3.bf16.msra.mxu0 %v5724_v6 }
 0x439   : > { %5364 = vmatpush3.bf16.msra.mxu1 %v5722_v49  ;;  %5373 = vmatprep.subr.bf16.mxu0 %v5725_v7 }
 0x43c   : > { %5374 = vmatpush3.bf16.msra.mxu0 %v5725_v7 }
 0x43d   : > { %5375 = vmatprep.subr.bf16.mxu0 %v5726_v8 }
 0x440   : > { %5376 = vmatpush3.bf16.msra.mxu0 %v5726_v8 }
 0x441   : > { %5377 = vmatprep.subr.bf16.mxu0 %v5727_v24 }
 0x444   : > { %5378 = vmatpush3.bf16.msra.mxu0 %v5727_v24 }
 0x445   : > { %5379 = vmatprep.subr.bf16.mxu0 %v5728_v30 }
 0x448   : > { %5380 = vmatpush3.bf16.msra.mxu0 %v5728_v30 }
 0x449   : > { %5381 = vmatprep.subr.bf16.mxu0 %v5729_v31 }
 0x44c   : > { %5382 = vmatpush3.bf16.msra.mxu0 %v5729_v31 }
 0x44d   : > { %5383 = vmatprep.subr.bf16.mxu0 %v5730_v37 }
 0x450   : > { %5384 = vmatpush3.bf16.msra.mxu0 %v5730_v37 }
 0x4ef   : > { %v6830_v51 = vpop.f32.mrb[176].mxu1 }
 0x4f0   : > { %v6832_v13 = vpop.f32.mrb[177].mxu1 }
 0x4f1   : > { %v6834_v60 = vpop.f32.mrb[178].mxu1 }
 0x4f2   : > { %v6836_v63 = vpop.f32.mrb[179].mxu1 }
 0x4f7   : > { %v6838_v0 = vpop.f32.mrb[180].mxu1 }
 0x4f8   : > { %v6840_v50 = vpop.f32.mrb[181].mxu1 }
 0x4f9   : > { %v6842_v1 = vpop.f32.mrb[182].mxu1 }
 0x4fa   : > { %v6844_v2 = vpop.f32.mrb[183].mxu1 }
 0x506   : > { %v3793_v18 = vpop.f32.mrb[24].mxu0 }
 0x507   : > { %v3794_v20 = vadd.f32 %v3793_v18, %v3710_v27  ;;  %v5347_v11 = vpop.f32.mrb[25].mxu0 }
 0x508   : > { %v3796_v57 = vpop.f32.mrb[26].mxu0 }
 0x509   : > { %v3799_v52 = vmax.f32 %v3794_v20, 0.0  ;;  %v5348_v58 = vpop.f32.mrb[27].mxu0 }
 0x50b   : > { %v3800_v59 = vpack.c.bf16 %v3799_v52, %v3799_v52 }
 0x50d   : > { %5366 = vmatmul.mubr.bf16.vlgmr.msra.gmra.mrb[184].mxu1 %v3800_v59 }
 0x5e0   : > { %v3900_v62 = vpop.f32.mrb[184].mxu1 }
 0x5e1   : > { %v3901_v9 = vadd.f32 %v3900_v62, %v3817_v3  ;;  %v5367_v10 = vpop.f32.mrb[185].mxu1 }
 0x5e2   : > { %v3903_v45 = vpop.f32.mrb[186].mxu1 }
 0x5e3   : > { %v4413_v44 = vmul.f32 -1.442695, %v3901_v9  ;;  %v5368_v41 = vpop.f32.mrb[187].mxu1 }
 0x5e5   : > { %5731 = vpow2.f32 %v4413_v44 }
 0x5ef   : > { %v5732_v36 = vpop.eup %5731 }
 0x5f0   : > { %v3909_v14 = vadd.f32 1.0, %v5732_v36 }
 0x5f2   : > { %5733 = vrcp.f32 %v3909_v14 }
 0x5fc   : > { %v5734_v22 = vpop.eup %5733 }
 0x5fd   : > { %v3915_v26 = vrot.slane %v5734_v22, %v3914_v21 }
 0x5ff   : > { %v3916_v28 = vmul.f32 %v3915_v26, %v3671_v39  ;;  %v3917_v32 = vmul.f32 %v3915_v26, %v3672_v40  ;;  %v3918_v33 = vmul.f32 %v3915_v26, %v3673_v46  ;;  %v3919_v34 = vmul.f32 %v3915_v26, %v3674_v17  ;;  %v4395_v40 = vld [vmem:[%s6926_s10] ss:$0 sm:$0xff] }
 0x600   : > { %v3920_v4 = vmul.f32 %v3915_v26, %v3675_v19  ;;  %v3921_v38 = vmul.f32 %v3915_v26, %v3676_v55  ;;  %v3922_v29 = vmul.f32 %v3915_v26, %v3677_v56  ;;  %v3923_v39 = vmul.f32 %v3915_v26, %v3678_v53  ;;  %v4422_v46 = vld [vmem:[%s6933_s17] ss:$0 sm:$0xff] }
 0x601   : > { %v3924_v61 = vpack.c.bf16 %v3917_v32, %v3916_v28  ;;  %v3925_v43 = vpack.c.bf16 %v3919_v34, %v3918_v33  ;;  %v3650_v17 = vmul.f32 %v6830_v51, %v4395_v40  ;;  %v3648_v19 = vmul.f32 %v4395_v40, %v6832_v13  ;;  %v4423_v55 = vld [vmem:[%s6934_s18] ss:$0 sm:$0xff] }
 0x602   : > { %v3926_v42 = vpack.c.bf16 %v3921_v38, %v3920_v4  ;;  %v3927_v23 = vpack.c.bf16 %v3923_v39, %v3922_v29  ;;  %v3651_v56 = vmul.f32 %v6834_v60, %v4395_v40  ;;  %v3649_v25 = vmul.f32 %v4395_v40, %v6836_v63 }
 0x603   : > { %5385 = vmatprep.mubr.bf16.mxu0 %v3924_v61  ;;  %v3665_v49 = vadd.f32 %v4396_v12, %v3650_v17  ;;  %v3663_v11 = vadd.f32 %v4396_v12, %v3648_v19  ;;  %v3654_v6 = vmul.f32 %v6838_v0, %v4395_v40  ;;  %v3652_v7 = vmul.f32 %v4395_v40, %v6840_v50 }
 0x604   : > { %5386 = vmatmul.mubr.bf16.vlgmr.msra.gmra.mrb[28].mxu0 %v3925_v43  ;;  %v3666_v58 = vadd.f32 %v4396_v12, %v3651_v56  ;;  %v3664_v13 = vadd.f32 %v4396_v12, %v3649_v25  ;;  %v3655_v30 = vmul.f32 %v6842_v1, %v4395_v40  ;;  %v3653_v9 = vmul.f32 %v4395_v40, %v6844_v2 }
 0x605   : > { %5389 = vmatprep.mubr.bf16.mxu0 %v3926_v42  ;;  %v3669_v41 = vadd.f32 %v4396_v12, %v3654_v6  ;;  %v3667_v1 = vadd.f32 %v4396_v12, %v3652_v7 }
 0x606   : > { %v3670_v26 = vadd.f32 %v4396_v12, %v3655_v30  ;;  %v3668_v32 = vadd.f32 %v4396_v12, %v3653_v9 }
 0x60c   : > { %5390 = vmatmul.mubr.bf16.gmra.mrb[32].mxu0 %v3927_v23 }
 0x6d7   : > { %v5387_v54 = vpop.f32.mrb[28].mxu0 }
 0x6d8   : > { %v4066_v53 = vmul.f32 %v5387_v54, %v4422_v46  ;;  %v4026_v47 = vpop.f32.mrb[29].mxu0 }
 0x6d9   : > { %v4064_v35 = vmul.f32 %v4422_v46, %v4026_v47  ;;  %v5388_v48 = vpop.f32.mrb[30].mxu0 }
 0x6da   : > { %v4081_v27 = vadd.f32 %v4423_v55, %v4066_v53  ;;  %v4067_v18 = vmul.f32 %v5388_v48, %v4422_v46  ;;  %v4029_v20 = vpop.f32.mrb[31].mxu0 }
 0x6db   : > { %v4079_v57 = vadd.f32 %v4423_v55, %v4064_v35  ;;  %v4065_v52 = vmul.f32 %v4422_v46, %v4029_v20 }
 0x6dc   : > { %v4089_v59 = vadd.f32 %v4081_v27, %v3665_v49  ;;  %v4082_v51 = vadd.f32 %v4423_v55, %v4067_v18 }
 0x6dd   : > { %v4087_v5 = vadd.f32 %v4079_v57, %v3663_v11  ;;  %v4080_v60 = vadd.f32 %v4423_v55, %v4065_v52 }
 0x6de   : > { %v4090_v63 = vadd.f32 %v4082_v51, %v3666_v58  ;;  %v4097_v31 = vmax.f32 %v4089_v59, 0.0 }
 0x6df   : > { %v4088_v8 = vadd.f32 %v4080_v60, %v3664_v13  ;;  %v5391_v24 = vpop.f32.mrb[32].mxu0  ;;  %v4095_v10 = vmax.f32 %v4087_v5, 0.0 }
 0x6e0   : > { %v4098_v37 = vmax.f32 %v4090_v63, 0.0  ;;  %v4070_v3 = vmul.f32 %v5391_v24, %v4422_v46  ;;  %v4042_v62 = vpop.f32.mrb[33].mxu0 }
 0x6e1   : > { %v4096_v0 = vmax.f32 %v4088_v8, 0.0  ;;  %v4068_v45 = vmul.f32 %v4422_v46, %v4042_v62  ;;  %v5392_v44 = vpop.f32.mrb[34].mxu0 }
 0x6e2   : > { %v4452_v50 = vpack.c.bf16 %v4098_v37, %v4097_v31  ;;  %v4085_v36 = vadd.f32 %v4423_v55, %v4070_v3  ;;  %v4071_v14 = vmul.f32 %v5392_v44, %v4422_v46  ;;  %v4045_v15 = vpop.f32.mrb[35].mxu0 }
 0x6e3   : > { %v4447_v16 = vpack.c.bf16 %v4096_v0, %v4095_v10  ;;  %v4083_v21 = vadd.f32 %v4423_v55, %v4068_v45  ;;  %v4069_v22 = vmul.f32 %v4422_v46, %v4045_v15 }
 0x6e4   : > { %4464 = vst [vmem:[%s602_s29 + $0x8] sm:$0xff] %v4452_v50   ;;  %v4093_v2 = vadd.f32 %v4085_v36, %v3669_v41  ;;  %v4086_v28 = vadd.f32 %v4423_v55, %v4071_v14 }
 0x6e5   : > { %4448 = vst [vmem:[%s602_s29] sm:$0xff] %v4447_v16   ;;  %v4091_v33 = vadd.f32 %v4083_v21, %v3667_v1  ;;  %v4084_v34 = vadd.f32 %v4423_v55, %v4069_v22 }
 0x6e6   : > { %v4094_v4 = vadd.f32 %v4086_v28, %v3670_v26  ;;  %v4101_v61 = vmax.f32 %v4093_v2, 0.0 }
 0x6e7   : > { %v4092_v38 = vadd.f32 %v4084_v34, %v3668_v32  ;;  %v4099_v42 = vmax.f32 %v4091_v33, 0.0 }
 0x6e8   : > { %v4102_v43 = vmax.f32 %v4094_v4, 0.0 }
 0x6e9   : > { %v4100_v29 = vmax.f32 %v4092_v38, 0.0 }
 0x6ea   : > { %v4462_v39 = vpack.c.bf16 %v4102_v43, %v4101_v61 }
 0x6eb   : > { %v4457_v23 = vpack.c.bf16 %v4100_v29, %v4099_v42 }
 0x6ec   : > { %4466 = vst [vmem:[%s602_s29 + $0x18] sm:$0xff] %v4462_v39  }
 0x6ed   : > { %4465 = vst [vmem:[%s602_s29 + $0x10] sm:$0xff] %v4457_v23  }
 0x6ee PF: > { %s29_s0 = sadd.s32 1, %s5757_s0  }
 0x6ef   : > { %p26_p4 = scmp.ge.s32.totalorder %s29_s0, 4  }
 0x6f1   :  { %28 = sbr.rel (!%p26_p4) target bundleno = 5 (0x5), region = 126 }

// kernel: regnet_forward.5
= control target key start
LH: loop header
LB: loop body
LE: loop exit
PB: predicated region body
PF: predicated region fallthrough
CT: control target
= control target key end

     0   :  { %s5056_s0 = inlined_call_operand.vmem [shape: bf16[2,64,128], index: 0, kind: input, shape index: {}]   ;;  %s5057_s1 = inlined_call_operand.vmem [shape: bf16[144,64], index: 1, kind: input, shape index: {}]   ;;  %s5058_s2 = inlined_call_operand.vmem [shape: bf16[16,64], index: 2, kind: input, shape index: {}]   ;;  %s5059_s3 = inlined_call_operand.vmem [shape: bf16[128,128], index: 3, kind: input, shape index: {}]   ;;  %s5060_s4 = inlined_call_operand.vmem [shape: f32[1,128], index: 4, kind: input, shape index: {}]   ;;  %s5061_s5 = inlined_call_operand.vmem [shape: f32[1,128], index: 5, kind: input, shape index: {}]   ;;  %s5062_s6 = inlined_call_operand.vmem [shape: bf16[1152,128], index: 6, kind: input, shape index: {}]   ;;  %s5063_s7 = inlined_call_operand.vmem [shape: f32[1,128], index: 7, kind: input, shape index: {}]   ;;  %s5064_s8 = inlined_call_operand.vmem [shape: f32[1,128], index: 8, kind: input, shape index: {}]   ;;  %s5065_s9 = inlined_call_operand.vmem [shape: bf16[128,128], index: 9, kind: input, shape index: {}]   ;;  %s5066_s10 = inlined_call_operand.vmem [shape: f32[1,128], index: 10, kind: input, shape index: {}]   ;;  %s5067_s11 = inlined_call_operand.vmem [shape: f32[1,128], index: 11, kind: input, shape index: {}]   ;;  %s5068_s12 = inlined_call_operand.vmem [shape: bf16[128,128], index: 12, kind: input, shape index: {}]   ;;  %s5069_s13 = inlined_call_operand.vmem [shape: f32[1,128], index: 13, kind: input, shape index: {}]   ;;  %s5070_s14 = inlined_call_operand.vmem [shape: bf16[128,128], index: 14, kind: input, shape index: {}]   ;;  %s5071_s15 = inlined_call_operand.vmem [shape: f32[1,128], index: 15, kind: input, shape index: {}]   ;;  %s5072_s16 = inlined_call_operand.vmem [shape: bf16[128,128], index: 16, kind: input, shape index: {}]   ;;  %s5073_s17 = inlined_call_operand.vmem [shape: f32[1,128], index: 17, kind: input, shape index: {}]   ;;  %s5074_s18 = inlined_call_operand.vmem [shape: f32[1,128], index: 18, kind: input, shape index: {}]   ;;  %s5075_s19 = inlined_call_operand.vmem [shape: bf16[128,128], index: 19, kind: input, shape index: {}]   ;;  %s5076_s20 = inlined_call_operand.vmem [shape: f32[1,128], index: 20, kind: input, shape index: {}]   ;;  %s5077_s21 = inlined_call_operand.hbm [shape: f32[2,1,128], index: 21, kind: output, shape index: {}]  }
   0x1   :  { %5087 = sst [smem:[#allocation11_spill]] %s5056_s0 }
   0x2   :  { %5088 = sst [smem:[#allocation12_spill]] %s5057_s1 }
   0x3   :  { %5089 = sst [smem:[#allocation13_spill]] %s5058_s2 }
   0x4   :  { %5090 = sst [smem:[#allocation14_spill]] %s5059_s3 }
   0x5   :  { %5091 = sst [smem:[#allocation15_spill]] %s5060_s4 }
   0x6   :  { %5092 = sst [smem:[#allocation16_spill]] %s5061_s5 }
   0x7   :  { %5093 = sst [smem:[#allocation17_spill]] %s5077_s21 }
   0x8   :  { %26 = vsyncpa [#allocation3], 0 }
   0x9   :  { %28 = vsyncpa [#allocation3 + $0x1], 0  ;;  %s4191_s2 = smov 0   ;;  %s4193_s25 = smov 0  }
   0xa   :  { %s4195_s26 = smov 0   ;;  %s4197_s27 = smov 0  }
   0xb LB: > { %5094 = sst [smem:[#allocation5_spill]] %s4064_s2  ;;  %s4212_s3 = sadd.s32 4294967295, %s4076_s27   ;;  %s4076_s27 = sphi %s4197_s27, %s5113_s27   ;;  %s4072_s26 = sphi %s4195_s26, %s5115_s26   ;;  %s4068_s25 = sphi %s4193_s25, %s5117_s25   ;;  %s4064_s2 = sphi %s4191_s2, %s5116_s2  }
   0xc   : > { %5095 = sst [smem:[#allocation6_spill]] %s4072_s26  ;;  %s3028_s28 = sadd.s32 4294967294, %s4076_s27  }
   0xd   : > { %5096 = sst [smem:[#allocation7_spill]] %s4076_s27  ;;  %s4216_s29 = sadd.s32 1, %s4076_s27  }
   0xe   : > { %5097 = sst [smem:[#allocation8_spill]] %s4216_s29  ;;  %s487_s0 = sadd.s32 1, %s4072_s26 }
   0xf   : > { %s484_s4 = ssub.s32 %s4076_s27, %s4216_s29  ;;  %p497_p0 = scmp.ne.s32.totalorder %s4072_s26, %s4068_s25 }
  0x10   : > { %p485_p1 = scmp.eq.s32.totalorder %s484_s4, 0  ;;  %p498_p2 = scmp.eq.s32.totalorder %s4212_s3, 1 }
  0x11   : > { %p503_p3 = scmp.ne.s32.totalorder %s4068_s25, %s4064_s2  ;;  %p504_p4 = scmp.eq.s32.totalorder %s3028_s28, 1 }
  0x12   : > { %s4227_s30 = scalar_select %p485_p1, %s4072_s26, %s487_s0  }
  0x13   : > { %p4229_p5 = por %p498_p2, %p497_p0  ;;  %p4233_p6 = por %p504_p4, %p503_p3 }
  0x14   : > { %5098 = sst [smem:[#allocation9_spill]] %s4227_s30  ;;  %p3031_p7 = scmp.ge.s32.totalorder %s4076_s27, 1 }
  0x15   : > { %s5100_s22 = scalar_select %p4233_p6, 1, 0 }
  0x16   : > { %p590_p8 = scmp.lt.s32.totalorder %s4076_s27, 3 }
  0x17   : > { %5101 = sst [smem:[#allocation10_spill]] %s5100_s22 }
  0x18   : > { %p591_p9 = pnand %p3031_p7, %p590_p8 }
  0x19   : > { %s5102_s24 = sld [smem:[#allocation14_spill]] (!%p591_p9)  ;;  %p649_p10 = scmp.lt.s32.totalorder (!%p591_p9), %s4212_s3, 1  ;;  %v4078_v12 = vmov (!%p591_p9), 0.0   ;;  %vm4079_vm0 = vmmov (!%p591_p9), 0   ;;  %vm865_vm1 = vcmask (!%p591_p9), 523264   ;;  %v3896_v52 = vld [vmem:[%s5062_s6 + $0x40] sm:$0xff] (!%p591_p9)  }
  0x1a   : > { %594 = sbr.rel (%p591_p9) target bundleno = 1964 (0x7ac), region = 104  ;;  %s5103_s23 = sld [smem:[#allocation11_spill]] (!%p591_p9)  ;;  %3403 = vmatprep.subr.bf16.mxu1 (!%p591_p9), %v4078_v12  ;;  %3411 = vmatprep.mubr.msk.bf16.mxu1 (!%p591_p9), %vm4079_vm0, %v4078_v12  ;;  %v3897_v53 = vld [vmem:[%s5062_s6 + $0x48] sm:$0xff] (!%p591_p9)   ;;  %v3898_v54 = vld [vmem:[%s5062_s6 + $0x50] sm:$0xff] (!%p591_p9)   ;;  %v3899_v60 = vld [vmem:[%s5062_s6 + $0x58] sm:$0xff] (!%p591_p9)  }
  0x1b   : > { %s5105_s0 = sld [smem:[#allocation16_spill]] (!%p591_p9)  ;;  %s5106_s2 = sld [smem:[#allocation12_spill]] (!%p591_p9)  ;;  %v3900_v61 = vld [vmem:[%s5062_s6 + $0x60] sm:$0xff] (!%p591_p9)   ;;  %v3901_v62 = vld [vmem:[%s5062_s6 + $0x68] sm:$0xff] (!%p591_p9)  }
  0x1c   : > { %s5108_s28 = sld [smem:[#allocation13_spill]] (!%p591_p9)  ;;  %s3187_s30 = sshll.u32 (!%p591_p9), %s4212_s3, 4 }
  0x1f   : > { %v3876_v0 = vld [vmem:[%s5102_s24] sm:$0xff] (!%p591_p9)   ;;  %v3877_v1 = vld [vmem:[%s5102_s24 + $0x8] sm:$0xff] (!%p591_p9)   ;;  %v3878_v2 = vld [vmem:[%s5102_s24 + $0x10] sm:$0xff] (!%p591_p9)  }
  0x20   : > { %3379 = vmatprep.subr.bf16.mxu0 (!%p591_p9), %v3876_v0  ;;  %v3879_v3 = vld [vmem:[%s5102_s24 + $0x18] sm:$0xff] (!%p591_p9)   ;;  %v3880_v5 = vld [vmem:[%s5102_s24 + $0x20] sm:$0xff] (!%p591_p9)   ;;  %v3881_v6 = vld [vmem:[%s5102_s24 + $0x28] sm:$0xff] (!%p591_p9)  }
  0x21   : > { %s650_s4 = scalar_select %p649_p10, %s4212_s3, 1  ;;  %3380 = vmatpush3.bf16.msra.mxu0 %v3876_v0  ;;  %v3882_v7 = vld [vmem:[%s5102_s24 + $0x30] sm:$0xff]   ;;  %v3883_v8 = vld [vmem:[%s5102_s24 + $0x38] sm:$0xff]   ;;  %v3047_v15 = vld [vmem:[%s5105_s0] ss:$0 sm:$0xff] }
  0x22   : > { %3381 = vmatprep.subr.bf16.mxu0 %v3877_v1  ;;  %s5107_s21 = smov %s5106_s2  ;;  %v3888_v51 = vld [vmem:[%s5106_s2] sm:$0xff]   ;;  %v3902_v0 = vld [vmem:[%s5062_s6 + $0x70] sm:$0xff]   ;;  %s4080_s0 = smov [#allocation2]  }
  0x23   : > { %s3190_s29 = sshll.u32 %s650_s4, 5  ;;  %v3889_v55 = vld [vmem:[%s5107_s21 + $0x8] sm:$0xff]   ;;  %v3890_v56 = vld [vmem:[%s5107_s21 + $0x10] sm:$0xff]   ;;  %v3891_v57 = vld [vmem:[%s5107_s21 + $0x18] sm:$0xff]   ;;  %s5109_s4 = sld [smem:[#allocation17_spill]] }
  0x24   : > { %s653_s1 = scalar_lea.vmem %s5103_s23, %s3190_s29  ;;  %s5104_s23 = sld [smem:[#allocation15_spill]]  ;;  %v3892_v58 = vld [vmem:[%s5107_s21 + $0x20] sm:$0xff]   ;;  %v3893_v59 = vld [vmem:[%s5107_s21 + $0x28] sm:$0xff]   ;;  %v3894_v63 = vld [vmem:[%s5107_s21 + $0x30] sm:$0xff]  }
  0x25   : > { %3382 = vmatpush3.bf16.msra.mxu0 %v3877_v1  ;;  %v4256_v4 = vld [vmem:[%s653_s1] sm:$0xff]   ;;  %v4271_v9 = vld [vmem:[%s653_s1 + $0x8] sm:$0xff]   ;;  %v4273_v10 = vld [vmem:[%s653_s1 + $0x10] sm:$0xff]   ;;  %s4018_s26 = sshll.u32 %s4080_s0, 4  ;;  %s4019_s26 = int_to_ptr.vmem [resolvable:$false] %s4018_s26 }
  0x26   : > { %3383 = vmatprep.subr.bf16.mxu0 %v3878_v2  ;;  %3395 = vmatprep.mubr.bf16.mxu0 %v4256_v4  ;;  %v4277_v11 = vld [vmem:[%s653_s1 + $0x18] sm:$0xff]   ;;  %s4020_s29 = scalar_lea.vmem %s4019_s26, 32 }
  0x27   : > { %v3903_v1 = vld [vmem:[%s5062_s6 + $0x78] sm:$0xff]  }
  0x29   : > { %3384 = vmatpush3.bf16.msra.mxu0 %v3878_v2  ;;  %v3895_v2 = vld [vmem:[%s5107_s21 + $0x38] sm:$0xff]  }
  0x2a   : > { %3385 = vmatprep.subr.bf16.mxu0 %v3879_v3  ;;  %v3046_v13 = vld [vmem:[%s5104_s23] ss:$0 sm:$0xff]  ;;  %s5014_s23 = scalar_lea.hbm %s5109_s4, %s3187_s30 }
  0x2d   : > { %3386 = vmatpush3.bf16.msra.mxu0 %v3879_v3  ;;  %v3914_v3 = vld [vmem:[%s5107_s21 + $0x40] sm:$0xff]  }
  0x2e   : > { %3387 = vmatprep.subr.bf16.mxu0 %v3880_v5 }
  0x31   : > { %3388 = vmatpush3.bf16.msra.mxu0 %v3880_v5 }
  0x32   : > { %3389 = vmatprep.subr.bf16.mxu0 %v3881_v6 }
  0x35   : > { %3390 = vmatpush3.bf16.msra.mxu0 %v3881_v6 }
  0x36   : > { %3391 = vmatprep.subr.bf16.mxu0 %v3882_v7 }
  0x39   : > { %3392 = vmatpush3.bf16.msra.mxu0 %v3882_v7 }
  0x3a   : > { %3393 = vmatprep.subr.bf16.mxu0 %v3883_v8 }
  0x3d   : > { %3394 = vmatpush3.bf16.msra.mxu0 %v3883_v8 }
  0x3e   : > { %3427 = vmatprep.subr.bf16.mxu0 %v4078_v12 }
  0x40   : > { %3396 = vmatmul.mubr.bf16.vlgmr.msra.gmra.mrb[0].mxu0 %v4271_v9 }
  0x41   : > { %3399 = vmatprep.mubr.bf16.mxu0 %v4273_v10  ;;  %3428 = vmatpush3.bf16.msra.mxu0 %v3896_v52  ;;  %v3922_v52 = vld [vmem:[%s5062_s6 + $0xc8] sm:$0xff]  }
  0x42   : > { %3429 = vmatprep.subr.bf16.mxu0 %v4078_v12 }
  0x45   : > { %3430 = vmatpush3.bf16.msra.mxu0 %v3897_v53  ;;  %v3923_v53 = vld [vmem:[%s5062_s6 + $0xd0] sm:$0xff]  }
  0x46   : > { %3431 = vmatprep.subr.bf16.mxu0 %v4078_v12 }
  0x48   : > { %3400 = vmatmul.mubr.bf16.gmra.mrb[4].mxu0 %v4277_v11 }
  0x49   : > { %3443 = vmatprep.mubr.msk.bf16.mxu0 %vm4079_vm0, %v4078_v12  ;;  %3432 = vmatpush3.bf16.msra.mxu0 %v3898_v54  ;;  %v3924_v54 = vld [vmem:[%s5062_s6 + $0xd8] sm:$0xff]  }
  0x4a   : > { %3433 = vmatprep.subr.bf16.mxu0 %v4078_v12 }
  0x4d   : > { %3434 = vmatpush3.bf16.msra.mxu0 %v3899_v60 }
  0x4e   : > { %3435 = vmatprep.subr.bf16.mxu0 %v4078_v12 }
  0x51   : > { %3436 = vmatpush3.bf16.msra.mxu0 %v3900_v61  ;;  %v3926_v61 = vld [vmem:[%s5062_s6 + $0xe8] sm:$0xff]  }
  0x52   : > { %3437 = vmatprep.subr.bf16.mxu0 %v4078_v12 }
  0x55   : > { %3438 = vmatpush3.bf16.msra.mxu0 %v3901_v62  ;;  %v3927_v62 = vld [vmem:[%s5062_s6 + $0xf0] sm:$0xff]  }
  0x56   : > { %3439 = vmatprep.subr.bf16.mxu0 %v4078_v12 }
  0x59   : > { %3440 = vmatpush3.bf16.msra.mxu0 %v3902_v0 }
  0x5a   : > { %3441 = vmatprep.subr.bf16.mxu0 %v4078_v12 }
  0x5d   : > { %3442 = vmatpush3.bf16.msra.mxu0 %v3903_v1 }
  0x5e   : > { %3447 = vmatprep.subr.bf16.mxu0 %v4078_v12 }
 0x113   : > { %v3397_v14 = vpop.f32.mrb[0].mxu0 }
 0x114   : > { %v825_v16 = vmul.f32 %v3397_v14, %v3046_v13  ;;  %v785_v17 = vpop.f32.mrb[1].mxu0 }
 0x115   : > { %v823_v18 = vmul.f32 %v3046_v13, %v785_v17  ;;  %v3398_v19 = vpop.f32.mrb[2].mxu0  ;;  %v3906_v17 = vld [vmem:[%s5062_s6 + $0x10] sm:$0xff]  }
 0x116   : > { %v840_v20 = vadd.f32 %v3047_v15, %v825_v16  ;;  %v826_v21 = vmul.f32 %v3398_v19, %v3046_v13  ;;  %v788_v22 = vpop.f32.mrb[3].mxu0 }
 0x117   : > { %v838_v23 = vadd.f32 %v3047_v15, %v823_v18  ;;  %v824_v24 = vmul.f32 %v3046_v13, %v788_v22  ;;  %v3907_v18 = vld [vmem:[%s5062_s6 + $0x18] sm:$0xff]  }
 0x118   : > { %v841_v25 = vadd.f32 %v3047_v15, %v826_v21  ;;  %v848_v27 = vmax.f32 %v840_v20, 0.0  ;;  %v3908_v21 = vld [vmem:[%s5062_s6 + $0x20] sm:$0xff]  }
 0x119   : > { %v839_v26 = vadd.f32 %v3047_v15, %v824_v24  ;;  %v846_v29 = vmax.f32 %v838_v23, 0.0 }
 0x11a   : > { %v849_v28 = vmax.f32 %v841_v25, 0.0  ;;  %v3909_v25 = vld [vmem:[%s5062_s6 + $0x28] sm:$0xff]  }
 0x11b   : > { %v847_v30 = vmax.f32 %v839_v26, 0.0  ;;  %v3401_v31 = vpop.f32.mrb[4].mxu0  ;;  %v3910_v26 = vld [vmem:[%s5062_s6 + $0x30] sm:$0xff]  }
 0x11c   : > { %v4292_v32 = vpack.c.bf16 %v849_v28, %v848_v27  ;;  %v829_v33 = vmul.f32 %v3401_v31, %v3046_v13  ;;  %v801_v34 = vpop.f32.mrb[5].mxu0  ;;  %v3911_v27 = vld [vmem:[%s5062_s6 + $0x38] sm:$0xff]  }
 0x11d   : > { %v4294_v35 = vpack.c.bf16 %v847_v30, %v846_v29  ;;  %v827_v36 = vmul.f32 %v3046_v13, %v801_v34  ;;  %v3402_v37 = vpop.f32.mrb[6].mxu0  ;;  %v3912_v30 = vld [vmem:[%s5062_s6 + $0x80] sm:$0xff]   ;;  %v3913_v34 = vld [vmem:[%s5062_s6 + $0x88] sm:$0xff]  }
 0x11e   : > { %v844_v38 = vadd.f32 %v3047_v15, %v829_v33  ;;  %v830_v39 = vmul.f32 %v3402_v37, %v3046_v13  ;;  %v804_v40 = vpop.f32.mrb[7].mxu0 }
 0x11f   : > { %v842_v41 = vadd.f32 %v3047_v15, %v827_v36  ;;  %v828_v42 = vmul.f32 %v3046_v13, %v804_v40  ;;  %3404 = vmatpush3.bf16.msra.mxu1 %v4294_v35  ;;  %v3916_v36 = vld [vmem:[%s5062_s6 + $0x98] sm:$0xff]  }
 0x120   : > { %v845_v43 = vadd.f32 %v3047_v15, %v830_v39  ;;  %3405 = vmatprep.subr.bf16.mxu1 %v4078_v12  ;;  %v852_v45 = vmax.f32 %v844_v38, 0.0  ;;  %v3917_v39 = vld [vmem:[%s5062_s6 + $0xa0] sm:$0xff]  }
 0x121   : > { %v843_v44 = vadd.f32 %v3047_v15, %v828_v42  ;;  %v850_v47 = vmax.f32 %v842_v41, 0.0 }
 0x122   : > { %v853_v46 = vmax.f32 %v845_v43, 0.0  ;;  %v3918_v43 = vld [vmem:[%s5062_s6 + $0xa8] sm:$0xff]  }
 0x123   : > { %v851_v48 = vmax.f32 %v843_v44, 0.0  ;;  %3406 = vmatpush3.bf16.msra.mxu1 %v4292_v32  ;;  %v3919_v44 = vld [vmem:[%s5062_s6 + $0xb0] sm:$0xff]  }
 0x124   : > { %v4299_v49 = vpack.c.bf16 %v853_v46, %v852_v45  ;;  %3407 = vmatprep.subr.bf16.mxu1 %v4078_v12  ;;  %v3920_v45 = vld [vmem:[%s5062_s6 + $0xb8] sm:$0xff]  }
 0x125   : > { %v4302_v50 = vpack.c.bf16 %v851_v48, %v850_v47  ;;  %v3921_v48 = vld [vmem:[%s5062_s6 + $0xc0] sm:$0xff]  }
 0x127   : > { %3408 = vmatpush3.bf16.msra.mxu1 %v4302_v50 }
 0x128   : > { %3409 = vmatprep.subr.bf16.mxu1 %v4078_v12 }
 0x12b   : > { %3410 = vmatpush3.bf16.msra.mxu1 %v4299_v49 }
 0x12c   : > { %3415 = vmatprep.subr.bf16.mxu1 %v4078_v12 }
 0x12e   : > { %3412 = vmatmul.mubr.msk.bf16.vlgmr.msra.gmra.mrb[0].mxu1 %vm865_vm1, %v3888_v51 }
 0x12f   : > { %3416 = vmatpush3.bf16.msra.mxu1 %v4294_v35  ;;  %3423 = vmatprep.mubr.msk.bf16.mxu1 %vm4079_vm0, %v4078_v12 }
 0x130   : > { %3417 = vmatprep.subr.bf16.mxu1 %v4078_v12 }
 0x133   : > { %3418 = vmatpush3.bf16.msra.mxu1 %v4292_v32 }
 0x134   : > { %3419 = vmatprep.subr.bf16.mxu1 %v4078_v12 }
 0x137   : > { %3420 = vmatpush3.bf16.msra.mxu1 %v4302_v50 }
 0x138   : > { %3421 = vmatprep.subr.bf16.mxu1 %v4078_v12 }
 0x13b   : > { %3422 = vmatpush3.bf16.msra.mxu1 %v4299_v49 }
 0x13c   : > { %3467 = vmatprep.subr.bf16.mxu1 %v4078_v12 }
 0x13e   : > { %3424 = vmatmul.mubr.msk.bf16.vlgmr.msra.gmra.mrb[4].mxu1 %vm865_vm1, %v3889_v55 }
 0x13f   : > { %3468 = vmatpush3.bf16.msra.mxu1 %v4294_v35  ;;  %3475 = vmatprep.mubr.msk.bf16.mxu1 %vm4079_vm0, %v4078_v12 }
 0x140   : > { %3469 = vmatprep.subr.bf16.mxu1 %v4078_v12 }
 0x143   : > { %3470 = vmatpush3.bf16.msra.mxu1 %v4292_v32 }
 0x144   : > { %3471 = vmatprep.subr.bf16.mxu1 %v4078_v12 }
 0x147   : > { %3472 = vmatpush3.bf16.msra.mxu1 %v4302_v50 }
 0x148   : > { %3473 = vmatprep.subr.bf16.mxu1 %v4078_v12 }
 0x14b   : > { %3474 = vmatpush3.bf16.msra.mxu1 %v4299_v49 }
 0x14c   : > { %3499 = vmatprep.subr.bf16.mxu1 %v4078_v12 }
 0x14e   : > { %3476 = vmatmul.mubr.msk.bf16.vlgmr.msra.gmra.mrb[8].mxu1 %vm865_vm1, %v3890_v56 }
 0x14f   : > { %3500 = vmatpush3.bf16.msra.mxu1 %v4294_v35  ;;  %3507 = vmatprep.mubr.msk.bf16.mxu1 %vm4079_vm0, %v4078_v12 }
 0x150   : > { %3501 = vmatprep.subr.bf16.mxu1 %v4078_v12 }
 0x153   : > { %3502 = vmatpush3.bf16.msra.mxu1 %v4292_v32 }
 0x154   : > { %3503 = vmatprep.subr.bf16.mxu1 %v4078_v12 }
 0x157   : > { %3504 = vmatpush3.bf16.msra.mxu1 %v4302_v50 }
 0x158   : > { %3505 = vmatprep.subr.bf16.mxu1 %v4078_v12 }
 0x15b   : > { %3506 = vmatpush3.bf16.msra.mxu1 %v4299_v49 }
 0x15c   : > { %3531 = vmatprep.subr.bf16.mxu1 %v4078_v12 }
 0x15e   : > { %3508 = vmatmul.mubr.msk.bf16.vlgmr.msra.gmra.mrb[12].mxu1 %vm865_vm1, %v3891_v57  ;;  %v3925_v57 = vld [vmem:[%s5062_s6 + $0xe0] sm:$0xff]  }
 0x15f   : > { %3532 = vmatpush3.bf16.msra.mxu1 %v4294_v35  ;;  %3539 = vmatprep.mubr.msk.bf16.mxu1 %vm4079_vm0, %v4078_v12 }
 0x160   : > { %3533 = vmatprep.subr.bf16.mxu1 %v4078_v12 }
 0x163   : > { %3534 = vmatpush3.bf16.msra.mxu1 %v4292_v32 }
 0x164   : > { %3535 = vmatprep.subr.bf16.mxu1 %v4078_v12 }
 0x167   : > { %3536 = vmatpush3.bf16.msra.mxu1 %v4302_v50 }
 0x168   : > { %3537 = vmatprep.subr.bf16.mxu1 %v4078_v12 }
 0x16b   : > { %3538 = vmatpush3.bf16.msra.mxu1 %v4299_v49 }
 0x16c   : > { %3563 = vmatprep.subr.bf16.mxu1 %v4078_v12 }
 0x16e   : > { %3540 = vmatmul.mubr.msk.bf16.vlgmr.msra.gmra.mrb[16].mxu1 %vm865_vm1, %v3892_v58 }
 0x16f   : > { %3564 = vmatpush3.bf16.msra.mxu1 %v4294_v35  ;;  %3571 = vmatprep.mubr.msk.bf16.mxu1 %vm4079_vm0, %v4078_v12 }
 0x170   : > { %3565 = vmatprep.subr.bf16.mxu1 %v4078_v12 }
 0x173   : > { %3566 = vmatpush3.bf16.msra.mxu1 %v4292_v32 }
 0x174   : > { %3567 = vmatprep.subr.bf16.mxu1 %v4078_v12 }
 0x177   : > { %3568 = vmatpush3.bf16.msra.mxu1 %v4302_v50 }
 0x178   : > { %3569 = vmatprep.subr.bf16.mxu1 %v4078_v12 }
 0x17b   : > { %3570 = vmatpush3.bf16.msra.mxu1 %v4299_v49 }
 0x17c   : > { %3595 = vmatprep.subr.bf16.mxu1 %v4078_v12 }
 0x17e   : > { %3572 = vmatmul.mubr.msk.bf16.vlgmr.msra.gmra.mrb[20].mxu1 %vm865_vm1, %v3893_v59 }
 0x17f   : > { %3596 = vmatpush3.bf16.msra.mxu1 %v4294_v35  ;;  %3603 = vmatprep.mubr.msk.bf16.mxu1 %vm4079_vm0, %v4078_v12 }
 0x180   : > { %3597 = vmatprep.subr.bf16.mxu1 %v4078_v12 }
 0x183   : > { %3598 = vmatpush3.bf16.msra.mxu1 %v4292_v32 }
 0x184   : > { %3599 = vmatprep.subr.bf16.mxu1 %v4078_v12 }
 0x187   : > { %3600 = vmatpush3.bf16.msra.mxu1 %v4302_v50 }
 0x188   : > { %3601 = vmatprep.subr.bf16.mxu1 %v4078_v12 }
 0x18b   : > { %3602 = vmatpush3.bf16.msra.mxu1 %v4299_v49 }
 0x18c   : > { %3627 = vmatprep.subr.bf16.mxu1 %v4078_v12 }
 0x18e   : > { %3604 = vmatmul.mubr.msk.bf16.vlgmr.msra.gmra.mrb[24].mxu1 %vm865_vm1, %v3894_v63  ;;  %v3928_v63 = vld [vmem:[%s5062_s6 + $0xf8] sm:$0xff]  }
 0x18f   : > { %3628 = vmatpush3.bf16.msra.mxu1 %v4294_v35  ;;  %3635 = vmatprep.mubr.msk.bf16.mxu1 %vm4079_vm0, %v4078_v12 }
 0x190   : > { %3629 = vmatprep.subr.bf16.mxu1 %v4078_v12 }
 0x193   : > { %3630 = vmatpush3.bf16.msra.mxu1 %v4292_v32 }
 0x194   : > { %3631 = vmatprep.subr.bf16.mxu1 %v4078_v12 }
 0x197   : > { %3632 = vmatpush3.bf16.msra.mxu1 %v4302_v50 }
 0x198   : > { %3633 = vmatprep.subr.bf16.mxu1 %v4078_v12 }
 0x19b   : > { %3634 = vmatpush3.bf16.msra.mxu1 %v4299_v49 }
 0x19c   : > { %3659 = vmatprep.subr.bf16.mxu1 %v4078_v12 }
 0x19e   : > { %3636 = vmatmul.mubr.msk.bf16.vlgmr.msra.gmra.mrb[28].mxu1 %vm865_vm1, %v3895_v2  ;;  %v3929_v2 = vld [vmem:[%s5062_s6 + $0x100] sm:$0xff]  }
 0x19f   : > { %3660 = vmatpush3.bf16.msra.mxu1 %v4294_v35  ;;  %3667 = vmatprep.mubr.msk.bf16.mxu1 %vm4079_vm0, %v4078_v12  ;;  %v3915_v35 = vld [vmem:[%s5062_s6 + $0x90] sm:$0xff]  }
 0x1a0   : > { %3661 = vmatprep.subr.bf16.mxu1 %v4078_v12 }
 0x1a3   : > { %3662 = vmatpush3.bf16.msra.mxu1 %v4292_v32 }
 0x1a4   : > { %3663 = vmatprep.subr.bf16.mxu1 %v4078_v12 }
 0x1a7   : > { %3664 = vmatpush3.bf16.msra.mxu1 %v4302_v50 }
 0x1a8   : > { %3665 = vmatprep.subr.bf16.mxu1 %v4078_v12 }
 0x1ab   : > { %3666 = vmatpush3.bf16.msra.mxu1 %v4299_v49 }
 0x1ac   : > { %3691 = vmatprep.subr.bf16.mxu1 %v4078_v12 }
 0x1ae   : > { %3668 = vmatmul.mubr.msk.bf16.vlgmr.msra.gmra.mrb[32].mxu1 %vm865_vm1, %v3914_v3 }
 0x1af   : > { %3692 = vmatpush3.bf16.msra.mxu1 %v4256_v4  ;;  %3699 = vmatprep.mubr.msk.bf16.mxu1 %vm4079_vm0, %v4078_v12 }
 0x1b0   : > { %3693 = vmatprep.subr.bf16.mxu1 %v4078_v12 }
 0x1b3   : > { %3694 = vmatpush3.bf16.msra.mxu1 %v4271_v9  ;;  %v3904_v9 = vld [vmem:[%s5062_s6] sm:$0xff]  }
 0x1b4   : > { %3695 = vmatprep.subr.bf16.mxu1 %v4078_v12 }
 0x1b7   : > { %3696 = vmatpush3.bf16.msra.mxu1 %v4273_v10 }
 0x1b8   : > { %3697 = vmatprep.subr.bf16.mxu1 %v4078_v12 }
 0x1bb   : > { %3698 = vmatpush3.bf16.msra.mxu1 %v4277_v11  ;;  %v3905_v11 = vld [vmem:[%s5062_s6 + $0x8] sm:$0xff]  }
 0x1bc   : > { %3703 = vmatprep.subr.bf16.mxu1 %v4078_v12 }
 0x201   : > { %v903_v5 = vpop.f32.mrb[0].mxu1 }
 0x202   : > { %v3413_v6 = vpop.f32.mrb[1].mxu1 }
 0x203   : > { %v906_v4 = vpop.f32.mrb[2].mxu1 }
 0x204   : > { %v910_v7 = vpack.c.bf16 %v906_v4, %v903_v5  ;;  %v3414_v8 = vpop.f32.mrb[3].mxu1  ;;  %v3930_v4 = vld [vmem:[%s5062_s6 + $0x108] sm:$0xff]  }
 0x205   : > { %v3932_v8 = vld [vmem:[%s5062_s6 + $0x118] sm:$0xff]  }
 0x211   : > { %v971_v13 = vpop.f32.mrb[4].mxu1 }
 0x212   : > { %v3425_v14 = vpop.f32.mrb[5].mxu1 }
 0x213   : > { %v974_v15 = vpop.f32.mrb[6].mxu1  ;;  %v3934_v14 = vld [vmem:[%s5062_s6 + $0x128] sm:$0xff]  }
 0x214   : > { %v978_v16 = vpack.c.bf16 %v974_v15, %v971_v13  ;;  %v3426_v10 = vpop.f32.mrb[7].mxu1  ;;  %v3933_v13 = vld [vmem:[%s5062_s6 + $0x120] sm:$0xff]  }
 0x215   : > { %v3967_v15 = vld [vmem:[%s5108_s28] sm:$0xff]   ;;  %v3936_v10 = vld [vmem:[%s5062_s6 + $0x138] sm:$0xff]   ;;  %s647_s28 = sand.u32 1, %s4068_s25  }
 0x216   : > { %3444 = vmatmul.mubr.bf16.vlgmr.msra.gmra.mrb[8].mxu0 %v978_v16  ;;  %3700 = vmatmul.mubr.msk.bf16.vlgmr.msra.gmra.mrb[36].mxu1 %vm865_vm1, %v3967_v15  ;;  %v3139_v15 = vld [vmem:[%s5064_s8] ss:$0 sm:$0xff]  ;;  %s648_s2 = scalar_lea.vmem [#allocation2], %s647_s28  ;;  %s2961_s1 = scalar_lea.sflag [#allocation3], %s647_s28 }
 0x217   : > { %3448 = vmatpush3.bf16.msra.mxu0 %v3904_v9  ;;  %3463 = vmatprep.mubr.msk.bf16.mxu0 %vm4079_vm0, %v4078_v12  ;;  %v3935_v9 = vld [vmem:[%s5062_s6 + $0x130] sm:$0xff]   ;;  %s2973_s27 = sshll.u32 %s648_s2, 4  ;;  %s5016_s27 = int_to_ptr.vmem [resolvable:$true] %s2973_s27 }
 0x218   : > { %3449 = vmatprep.subr.bf16.mxu0 %v4078_v12  ;;  %3719 = vmatprep.mubr.msk.bf16.mxu1 %vm4079_vm0, %v4078_v12  ;;  %s4014_s3 = scalar_lea.vmem %s5016_s27, 16  ;;  %p4021_p0 = scmp.lt.s32.totalorder %s5016_s27, %s4019_s26 }
 0x219   : > { %p4015_p11 = scmp.ne.s32.totalorder %s5016_s27, %s4014_s3  ;;  %p4022_p1 = scmp.lt.s32.totalorder %s4020_s29, %s4014_s3 }
 0x21b   : > { %3450 = vmatpush3.bf16.msra.mxu0 %v3905_v11  ;;  %p4016_p12 = pnand %p4015_p11, %p4229_p5  ;;  %p4023_p2 = por %p4022_p1, %p4021_p0 }
 0x21c   : > { %3451 = vmatprep.subr.bf16.mxu0 %v4078_v12 }
 0x21d   : > { %p4017_p13 = pneg %p4016_p12 }
 0x21f   : > { %3452 = vmatpush3.bf16.msra.mxu0 %v3906_v17  ;;  %p4024_p3 = pnand %p4023_p2, %p4017_p13 }
 0x220   : > { %3453 = vmatprep.subr.bf16.mxu0 %v4078_v12 }
 0x221   : > { %v1217_v19 = vpop.f32.mrb[8].mxu1 }
 0x222   : > { %v3477_v20 = vpop.f32.mrb[9].mxu1 }
 0x223   : > { %3454 = vmatpush3.bf16.msra.mxu0 %v3907_v18  ;;  %v1220_v22 = vpop.f32.mrb[10].mxu1  ;;  %v3937_v20 = vld [vmem:[%s5062_s6 + $0x140] sm:$0xff]  }
 0x224   : > { %3455 = vmatprep.subr.bf16.mxu0 %v4078_v12  ;;  %v1224_v23 = vpack.c.bf16 %v1220_v22, %v1217_v19  ;;  %v3478_v24 = vpop.f32.mrb[11].mxu1  ;;  %v3938_v22 = vld [vmem:[%s5062_s6 + $0x148] sm:$0xff]  }
 0x225   : > { %v3939_v24 = vld [vmem:[%s5062_s6 + $0x150] sm:$0xff]  }
 0x227   : > { %3456 = vmatpush3.bf16.msra.mxu0 %v3908_v21  ;;  %v3970_v21 = vld [vmem:[%s5065_s9] sm:$0xff]  }
 0x228   : > { %3457 = vmatprep.subr.bf16.mxu0 %v4078_v12  ;;  %3704 = vmatpush3.bf16.msra.mxu1 %v3970_v21 }
 0x229   : > { %3705 = vmatprep.subr.bf16.mxu1 %v4078_v12 }
 0x22b   : > { %3458 = vmatpush3.bf16.msra.mxu0 %v3909_v25  ;;  %v3972_v25 = vld [vmem:[%s5065_s9 + $0x10] sm:$0xff]  }
 0x22c   : > { %3459 = vmatprep.subr.bf16.mxu0 %v4078_v12 }
 0x22f   : > { %3460 = vmatpush3.bf16.msra.mxu0 %v3910_v26  ;;  %v3940_v26 = vld [vmem:[%s5062_s6 + $0x158] sm:$0xff]  }
 0x230   : > { %3461 = vmatprep.subr.bf16.mxu0 %v4078_v12 }
 0x231   : > { %v4499_v28 = vpop.f32.mrb[12].mxu1 }
 0x232   : > { %v3509_v29 = vpop.f32.mrb[13].mxu1 }
 0x233   : > { %3462 = vmatpush3.bf16.msra.mxu0 %v3911_v27  ;;  %v4504_v31 = vpop.f32.mrb[14].mxu1  ;;  %v3973_v27 = vld [vmem:[%s5065_s9 + $0x18] sm:$0xff]   ;;  %v3974_v29 = vld [vmem:[%s5065_s9 + $0x20] sm:$0xff]  }
 0x234   : > { %3479 = vmatprep.subr.bf16.mxu0 %v4078_v12  ;;  %v1383_v32 = vpack.c.bf16 %v4504_v31, %v4499_v28  ;;  %v3510_v33 = vpop.f32.mrb[15].mxu1  ;;  %v3941_v28 = vld [vmem:[%s5062_s6 + $0x160] sm:$0xff]   ;;  %v3975_v31 = vld [vmem:[%s5065_s9 + $0x28] sm:$0xff]  }
 0x235   : > { %v3976_v33 = vld [vmem:[%s5065_s9 + $0x30] sm:$0xff]  }
 0x236   : > { %3464 = vmatmul.mubr.bf16.vlgmr.msra.gmra.mrb[8].mxu0 %v910_v7  ;;  %v3931_v7 = vld [vmem:[%s5062_s6 + $0x110] sm:$0xff]  }
 0x237   : > { %3480 = vmatpush3.bf16.msra.mxu0 %v3912_v30  ;;  %3495 = vmatprep.mubr.msk.bf16.mxu0 %vm4079_vm0, %v4078_v12  ;;  %v3942_v30 = vld [vmem:[%s5062_s6 + $0x168] sm:$0xff]  }
 0x238   : > { %3481 = vmatprep.subr.bf16.mxu0 %v4078_v12 }
 0x23b   : > { %3482 = vmatpush3.bf16.msra.mxu0 %v3913_v34  ;;  %v3944_v34 = vld [vmem:[%s5062_s6 + $0x178] sm:$0xff]  }
 0x23c   : > { %3483 = vmatprep.subr.bf16.mxu0 %v4078_v12 }
 0x23f   : > { %3484 = vmatpush3.bf16.msra.mxu0 %v3915_v35  ;;  %v3945_v35 = vld [vmem:[%s5062_s6 + $0x180] sm:$0xff]  }
 0x240   : > { %3485 = vmatprep.subr.bf16.mxu0 %v4078_v12 }
 0x241   : > { %v4523_v37 = vpop.f32.mrb[16].mxu1 }
 0x242   : > { %v3541_v38 = vpop.f32.mrb[17].mxu1 }
 0x243   : > { %3486 = vmatpush3.bf16.msra.mxu0 %v3916_v36  ;;  %v4528_v40 = vpop.f32.mrb[18].mxu1  ;;  %v3946_v36 = vld [vmem:[%s5062_s6 + $0x188] sm:$0xff]   ;;  %v3948_v38 = vld [vmem:[%s5062_s6 + $0x198] sm:$0xff]  }
 0x244   : > { %3487 = vmatprep.subr.bf16.mxu0 %v4078_v12  ;;  %v1542_v41 = vpack.c.bf16 %v4528_v40, %v4523_v37  ;;  %v3542_v42 = vpop.f32.mrb[19].mxu1  ;;  %v3947_v37 = vld [vmem:[%s5062_s6 + $0x190] sm:$0xff]   ;;  %v3950_v40 = vld [vmem:[%s5062_s6 + $0x1a8] sm:$0xff]  }
 0x245   : > { %v3952_v42 = vld [vmem:[%s5062_s6 + $0x1b8] sm:$0xff]  }
 0x247   : > { %3488 = vmatpush3.bf16.msra.mxu0 %v3917_v39  ;;  %v3949_v39 = vld [vmem:[%s5062_s6 + $0x1a0] sm:$0xff]  }
 0x248   : > { %3489 = vmatprep.subr.bf16.mxu0 %v4078_v12 }
 0x24b   : > { %3490 = vmatpush3.bf16.msra.mxu0 %v3918_v43  ;;  %v3953_v43 = vld [vmem:[%s5062_s6 + $0x1c0] sm:$0xff]  }
 0x24c   : > { %3491 = vmatprep.subr.bf16.mxu0 %v4078_v12 }
 0x24f   : > { %3492 = vmatpush3.bf16.msra.mxu0 %v3919_v44  ;;  %v3954_v44 = vld [vmem:[%s5062_s6 + $0x1c8] sm:$0xff]  }
 0x250   : > { %3493 = vmatprep.subr.bf16.mxu0 %v4078_v12 }
 0x251   : > { %v4545_v46 = vpop.f32.mrb[20].mxu1 }
 0x252   : > { %v3573_v47 = vpop.f32.mrb[21].mxu1 }
 0x253   : > { %3494 = vmatpush3.bf16.msra.mxu0 %v3920_v45  ;;  %v4550_v49 = vpop.f32.mrb[22].mxu1  ;;  %v3955_v45 = vld [vmem:[%s5062_s6 + $0x1d0] sm:$0xff]   ;;  %v3977_v47 = vld [vmem:[%s5065_s9 + $0x38] sm:$0xff]  }
 0x254   : > { %3511 = vmatprep.subr.bf16.mxu0 %v4078_v12  ;;  %v1701_v50 = vpack.c.bf16 %v4550_v49, %v4545_v46  ;;  %v3574_v51 = vpop.f32.mrb[23].mxu1  ;;  %v3956_v46 = vld [vmem:[%s5062_s6 + $0x1d8] sm:$0xff]   ;;  %v3958_v49 = vld [vmem:[%s5062_s6 + $0x1e8] sm:$0xff]  }
 0x255   : > { %v3960_v51 = vld [vmem:[%s5062_s6 + $0x1f8] sm:$0xff]  }
 0x256   : > { %3496 = vmatmul.mubr.bf16.vlgmr.msra.gmra.mrb[8].mxu0 %v1224_v23  ;;  %v3971_v23 = vld [vmem:[%s5065_s9 + $0x8] sm:$0xff]  }
 0x257   : > { %3512 = vmatpush3.bf16.msra.mxu0 %v3921_v48  ;;  %3527 = vmatprep.mubr.msk.bf16.mxu0 %vm4079_vm0, %v4078_v12  ;;  %v3957_v48 = vld [vmem:[%s5062_s6 + $0x1e0] sm:$0xff]  }
 0x258   : > { %3513 = vmatprep.subr.bf16.mxu0 %v4078_v12  ;;  %3706 = vmatpush3.bf16.msra.mxu1 %v3971_v23 }
 0x259   : > { %3707 = vmatprep.subr.bf16.mxu1 %v4078_v12 }
 0x25b   : > { %3514 = vmatpush3.bf16.msra.mxu0 %v3922_v52  ;;  %v3961_v52 = vld [vmem:[%s5062_s6 + $0x200] sm:$0xff]  }
 0x25c   : > { %3515 = vmatprep.subr.bf16.mxu0 %v4078_v12  ;;  %3708 = vmatpush3.bf16.msra.mxu1 %v3972_v25 }
 0x25d   : > { %3709 = vmatprep.subr.bf16.mxu1 %v4078_v12 }
 0x25f   : > { %3516 = vmatpush3.bf16.msra.mxu0 %v3923_v53  ;;  %v3962_v53 = vld [vmem:[%s5062_s6 + $0x208] sm:$0xff]  }
 0x260   : > { %3517 = vmatprep.subr.bf16.mxu0 %v4078_v12  ;;  %3710 = vmatpush3.bf16.msra.mxu1 %v3973_v27 }
 0x261   : > { %v4569_v55 = vpop.f32.mrb[24].mxu1  ;;  %3711 = vmatprep.subr.bf16.mxu1 %v4078_v12 }
 0x262   : > { %v3605_v56 = vpop.f32.mrb[25].mxu1 }
 0x263   : > { %3518 = vmatpush3.bf16.msra.mxu0 %v3924_v54  ;;  %v4574_v58 = vpop.f32.mrb[26].mxu1  ;;  %v3963_v54 = vld [vmem:[%s5062_s6 + $0x210] sm:$0xff]   ;;  %v3965_v56 = vld [vmem:[%s5062_s6 + $0x220] sm:$0xff]  }
 0x264   : > { %3519 = vmatprep.subr.bf16.mxu0 %v4078_v12  ;;  %v1860_v59 = vpack.c.bf16 %v4574_v58, %v4569_v55  ;;  %v3606_v60 = vpop.f32.mrb[27].mxu1  ;;  %3712 = vmatpush3.bf16.msra.mxu1 %v3974_v29  ;;  %v3964_v55 = vld [vmem:[%s5062_s6 + $0x218] sm:$0xff]   ;;  %v3968_v58 = vld [vmem:[%s5062_s6 + $0x230] sm:$0xff]  }
 0x265   : > { %3713 = vmatprep.subr.bf16.mxu1 %v4078_v12 }
 0x267   : > { %3520 = vmatpush3.bf16.msra.mxu0 %v3925_v57  ;;  %v3966_v57 = vld [vmem:[%s5062_s6 + $0x228] sm:$0xff]  }
 0x268   : > { %3521 = vmatprep.subr.bf16.mxu0 %v4078_v12  ;;  %3714 = vmatpush3.bf16.msra.mxu1 %v3975_v31 }
 0x269   : > { %3715 = vmatprep.subr.bf16.mxu1 %v4078_v12 }
 0x26b   : > { %3522 = vmatpush3.bf16.msra.mxu0 %v3926_v61 }
 0x26c   : > { %3523 = vmatprep.subr.bf16.mxu0 %v4078_v12  ;;  %3716 = vmatpush3.bf16.msra.mxu1 %v3976_v33  ;;  %v3986_v33 = vld [vmem:[%s5070_s14] sm:$0xff]  }
 0x26d   : > { %3717 = vmatprep.subr.bf16.mxu1 %v4078_v12 }
 0x26f   : > { %3524 = vmatpush3.bf16.msra.mxu0 %v3927_v62 }
 0x270   : > { %3525 = vmatprep.subr.bf16.mxu0 %v4078_v12  ;;  %3718 = vmatpush3.bf16.msra.mxu1 %v3977_v47 }
 0x271   : > { %v4591_v0 = vpop.f32.mrb[28].mxu1  ;;  %3723 = vmatprep.subr.bf16.mxu1 %v4078_v12 }
 0x272   : > { %v3637_v1 = vpop.f32.mrb[29].mxu1 }
 0x273   : > { %3526 = vmatpush3.bf16.msra.mxu0 %v3928_v63  ;;  %v4596_v3 = vpop.f32.mrb[30].mxu1  ;;  %v3978_v1 = vld [vmem:[%s5068_s12] sm:$0xff]  }
 0x274   : > { %3543 = vmatprep.subr.bf16.mxu0 %v4078_v12  ;;  %v2019_v5 = vpack.c.bf16 %v4596_v3, %v4591_v0  ;;  %v3638_v6 = vpop.f32.mrb[31].mxu1  ;;  %v3980_v3 = vld [vmem:[%s5068_s12 + $0x10] sm:$0xff]  }
 0x275   : > { %v3982_v6 = vld [vmem:[%s5068_s12 + $0x20] sm:$0xff]  }
 0x276   : > { %3528 = vmatmul.mubr.bf16.vlgmr.msra.gmra.mrb[8].mxu0 %v1383_v32  ;;  %v3943_v32 = vld [vmem:[%s5062_s6 + $0x170] sm:$0xff]  }
 0x277   : > { %3544 = vmatpush3.bf16.msra.mxu0 %v3929_v2  ;;  %3559 = vmatprep.mubr.msk.bf16.mxu0 %vm4079_vm0, %v4078_v12  ;;  %v3979_v2 = vld [vmem:[%s5068_s12 + $0x8] sm:$0xff]  }
 0x278   : > { %3545 = vmatprep.subr.bf16.mxu0 %v4078_v12 }
 0x27b   : > { %3546 = vmatpush3.bf16.msra.mxu0 %v3930_v4  ;;  %v3983_v4 = vld [vmem:[%s5068_s12 + $0x28] sm:$0xff]  }
 0x27c   : > { %3547 = vmatprep.subr.bf16.mxu0 %v4078_v12 }
 0x27f   : > { %3548 = vmatpush3.bf16.msra.mxu0 %v3931_v7  ;;  %v3984_v7 = vld [vmem:[%s5068_s12 + $0x30] sm:$0xff]  }
 0x280   : > { %3549 = vmatprep.subr.bf16.mxu0 %v4078_v12 }
 0x281   : > { %v4636_v16 = vpop.f32.mrb[32].mxu1 }
 0x282   : > { %v3669_v11 = vpop.f32.mrb[33].mxu1 }
 0x283   : > { %3550 = vmatpush3.bf16.msra.mxu0 %v3932_v8  ;;  %v4642_v17 = vpop.f32.mrb[34].mxu1  ;;  %v3985_v8 = vld [vmem:[%s5068_s12 + $0x38] sm:$0xff]  }
 0x284   : > { %3551 = vmatprep.subr.bf16.mxu0 %v4078_v12  ;;  %v2178_v18 = vpack.c.bf16 %v4642_v17, %v4636_v16  ;;  %v3670_v19 = vpop.f32.mrb[35].mxu1 }
 0x287   : > { %3552 = vmatpush3.bf16.msra.mxu0 %v3933_v13  ;;  %v3138_v13 = vld [vmem:[%s5063_s7] ss:$0 sm:$0xff] }
 0x288   : > { %3553 = vmatprep.subr.bf16.mxu0 %v4078_v12 }
 0x28b   : > { %3554 = vmatpush3.bf16.msra.mxu0 %v3934_v14 }
 0x28c   : > { %3555 = vmatprep.subr.bf16.mxu0 %v4078_v12 }
 0x28f   : > { %3556 = vmatpush3.bf16.msra.mxu0 %v3935_v9 }
 0x290   : > { %3557 = vmatprep.subr.bf16.mxu0 %v4078_v12 }
 0x293   : > { %3558 = vmatpush3.bf16.msra.mxu0 %v3936_v10 }
 0x294   : > { %3575 = vmatprep.subr.bf16.mxu0 %v4078_v12 }
 0x296   : > { %3560 = vmatmul.mubr.bf16.vlgmr.msra.gmra.mrb[8].mxu0 %v1542_v41  ;;  %v3951_v41 = vld [vmem:[%s5062_s6 + $0x1b0] sm:$0xff]  }
 0x297   : > { %3576 = vmatpush3.bf16.msra.mxu0 %v3937_v20  ;;  %3591 = vmatprep.mubr.msk.bf16.mxu0 %vm4079_vm0, %v4078_v12 }
 0x298   : > { %3577 = vmatprep.subr.bf16.mxu0 %v4078_v12 }
 0x29b   : > { %3578 = vmatpush3.bf16.msra.mxu0 %v3938_v22 }
 0x29c   : > { %3579 = vmatprep.subr.bf16.mxu0 %v4078_v12 }
 0x29f   : > { %3580 = vmatpush3.bf16.msra.mxu0 %v3939_v24 }
 0x2a0   : > { %3581 = vmatprep.subr.bf16.mxu0 %v4078_v12 }
 0x2a3   : > { %3582 = vmatpush3.bf16.msra.mxu0 %v3940_v26 }
 0x2a4   : > { %3583 = vmatprep.subr.bf16.mxu0 %v4078_v12 }
 0x2a7   : > { %3584 = vmatpush3.bf16.msra.mxu0 %v3941_v28 }
 0x2a8   : > { %3585 = vmatprep.subr.bf16.mxu0 %v4078_v12 }
 0x2ab   : > { %3586 = vmatpush3.bf16.msra.mxu0 %v3942_v30 }
 0x2ac   : > { %3587 = vmatprep.subr.bf16.mxu0 %v4078_v12 }
 0x2af   : > { %3588 = vmatpush3.bf16.msra.mxu0 %v3943_v32 }
 0x2b0   : > { %3589 = vmatprep.subr.bf16.mxu0 %v4078_v12 }
 0x2b3   : > { %3590 = vmatpush3.bf16.msra.mxu0 %v3944_v34 }
 0x2b4   : > { %3607 = vmatprep.subr.bf16.mxu0 %v4078_v12 }
 0x2b6   : > { %3592 = vmatmul.mubr.bf16.vlgmr.msra.gmra.mrb[8].mxu0 %v1701_v50  ;;  %v3959_v50 = vld [vmem:[%s5062_s6 + $0x1f0] sm:$0xff]  }
 0x2b7   : > { %3608 = vmatpush3.bf16.msra.mxu0 %v3945_v35  ;;  %3623 = vmatprep.mubr.msk.bf16.mxu0 %vm4079_vm0, %v4078_v12  ;;  %v3987_v35 = vld [vmem:[%s5070_s14 + $0x8] sm:$0xff]  }
 0x2b8   : > { %3609 = vmatprep.subr.bf16.mxu0 %v4078_v12 }
 0x2bb   : > { %3610 = vmatpush3.bf16.msra.mxu0 %v3946_v36  ;;  %v3988_v36 = vld [vmem:[%s5070_s14 + $0x10] sm:$0xff]  }
 0x2bc   : > { %3611 = vmatprep.subr.bf16.mxu0 %v4078_v12 }
 0x2bf   : > { %3612 = vmatpush3.bf16.msra.mxu0 %v3947_v37  ;;  %v3989_v37 = vld [vmem:[%s5070_s14 + $0x18] sm:$0xff]  }
 0x2c0   : > { %3613 = vmatprep.subr.bf16.mxu0 %v4078_v12 }
 0x2c3   : > { %3614 = vmatpush3.bf16.msra.mxu0 %v3948_v38  ;;  %v3990_v38 = vld [vmem:[%s5070_s14 + $0x20] sm:$0xff]  }
 0x2c4   : > { %3615 = vmatprep.subr.bf16.mxu0 %v4078_v12 }
 0x2c7   : > { %3616 = vmatpush3.bf16.msra.mxu0 %v3949_v39  ;;  %v3991_v39 = vld [vmem:[%s5070_s14 + $0x28] sm:$0xff]  }
 0x2c8   : > { %3617 = vmatprep.subr.bf16.mxu0 %v4078_v12 }
 0x2cb   : > { %3618 = vmatpush3.bf16.msra.mxu0 %v3950_v40 }
 0x2cc   : > { %3619 = vmatprep.subr.bf16.mxu0 %v4078_v12 }
 0x2cf   : > { %3620 = vmatpush3.bf16.msra.mxu0 %v3951_v41 }
 0x2d0   : > { %3621 = vmatprep.subr.bf16.mxu0 %v4078_v12 }
 0x2d3   : > { %3622 = vmatpush3.bf16.msra.mxu0 %v3952_v42 }
 0x2d4   : > { %3639 = vmatprep.subr.bf16.mxu0 %v4078_v12 }
 0x2d6   : > { %3624 = vmatmul.mubr.bf16.vlgmr.msra.gmra.mrb[8].mxu0 %v1860_v59  ;;  %v3969_v59 = vld [vmem:[%s5062_s6 + $0x238] sm:$0xff]  }
 0x2d7   : > { %3640 = vmatpush3.bf16.msra.mxu0 %v3953_v43  ;;  %3655 = vmatprep.mubr.msk.bf16.mxu0 %vm4079_vm0, %v4078_v12 }
 0x2d8   : > { %3641 = vmatprep.subr.bf16.mxu0 %v4078_v12 }
 0x2db   : > { %3642 = vmatpush3.bf16.msra.mxu0 %v3954_v44  ;;  %v3992_v44 = vld [vmem:[%s5070_s14 + $0x30] sm:$0xff]  }
 0x2dc   : > { %3643 = vmatprep.subr.bf16.mxu0 %v4078_v12 }
 0x2df   : > { %3644 = vmatpush3.bf16.msra.mxu0 %v3955_v45  ;;  %v3993_v45 = vld [vmem:[%s5070_s14 + $0x38] sm:$0xff]  }
 0x2e0   : > { %3645 = vmatprep.subr.bf16.mxu0 %v4078_v12 }
 0x2e3   : > { %3646 = vmatpush3.bf16.msra.mxu0 %v3956_v46  ;;  %v2509_v46 = vld [vmem:[%s5069_s13] sm:$0x1] }
 0x2e4   : > { %3647 = vmatprep.subr.bf16.mxu0 %v4078_v12 }
 0x2e7   : > { %3648 = vmatpush3.bf16.msra.mxu0 %v3957_v48 }
 0x2e8   : > { %3649 = vmatprep.subr.bf16.mxu0 %v4078_v12 }
 0x2e9   : > { %v2351_v60 = vpop.f32.mrb[36].mxu1 }
 0x2ea   : > { %v3701_v61 = vpop.f32.mrb[37].mxu1 }
 0x2eb   : > { %3650 = vmatpush3.bf16.msra.mxu0 %v3958_v49  ;;  %v2354_v62 = vpop.f32.mrb[38].mxu1  ;;  %v4001_v61 = vld [vmem:[%s5072_s16 + $0x38] sm:$0xff]  }
 0x2ec   : > { %3651 = vmatprep.subr.bf16.mxu0 %v4078_v12  ;;  %v2358_v63 = vpack.c.bf16 %v2354_v62, %v2351_v60  ;;  %v3702_v0 = vpop.f32.mrb[39].mxu1  ;;  %v4000_v60 = vld [vmem:[%s5072_s16 + $0x30] sm:$0xff]   ;;  %v2616_v62 = vld [vmem:[%s5071_s15] sm:$0x1] }
 0x2ee   : > { %3720 = vmatmul.mubr.bf16.vlgmr.msra.gmra.mrb[40].mxu1 %v2358_v63 }
 0x2ef   : > { %3652 = vmatpush3.bf16.msra.mxu0 %v3959_v50  ;;  %3739 = vmatprep.mubr.msk.bf16.mxu1 %vm4079_vm0, %v4078_v12 }
 0x2f0   : > { %3653 = vmatprep.subr.bf16.mxu0 %v4078_v12  ;;  %3724 = vmatpush3.bf16.msra.mxu1 %v3978_v1 }
 0x2f1   : > { %3725 = vmatprep.subr.bf16.mxu1 %v4078_v12 }
 0x2f3   : > { %3654 = vmatpush3.bf16.msra.mxu0 %v3960_v51 }
 0x2f4   : > { %3671 = vmatprep.subr.bf16.mxu0 %v4078_v12  ;;  %3726 = vmatpush3.bf16.msra.mxu1 %v3979_v2 }
 0x2f5   : > { %3727 = vmatprep.subr.bf16.mxu1 %v4078_v12 }
 0x2f6   : > { %3656 = vmatmul.mubr.bf16.vlgmr.msra.gmra.mrb[8].mxu0 %v2019_v5  ;;  %v3981_v5 = vld [vmem:[%s5068_s12 + $0x18] sm:$0xff]  }
 0x2f7   : > { %3672 = vmatpush3.bf16.msra.mxu0 %v3961_v52  ;;  %3687 = vmatprep.mubr.msk.bf16.mxu0 %vm4079_vm0, %v4078_v12 }
 0x2f8   : > { %3673 = vmatprep.subr.bf16.mxu0 %v4078_v12  ;;  %3728 = vmatpush3.bf16.msra.mxu1 %v3980_v3 }
 0x2f9   : > { %3729 = vmatprep.subr.bf16.mxu1 %v4078_v12 }
 0x2fb   : > { %3674 = vmatpush3.bf16.msra.mxu0 %v3962_v53 }
 0x2fc   : > { %3675 = vmatprep.subr.bf16.mxu0 %v4078_v12  ;;  %3730 = vmatpush3.bf16.msra.mxu1 %v3981_v5 }
 0x2fd   : > { %3731 = vmatprep.subr.bf16.mxu1 %v4078_v12 }
 0x2ff   : > { %3676 = vmatpush3.bf16.msra.mxu0 %v3963_v54  ;;  %v3994_v54 = vld [vmem:[%s5072_s16] sm:$0xff]  }
 0x300   : > { %3677 = vmatprep.subr.bf16.mxu0 %v4078_v12  ;;  %3732 = vmatpush3.bf16.msra.mxu1 %v3982_v6 }
 0x301   : > { %3733 = vmatprep.subr.bf16.mxu1 %v4078_v12 }
 0x303   : > { %3678 = vmatpush3.bf16.msra.mxu0 %v3964_v55  ;;  %v3995_v55 = vld [vmem:[%s5072_s16 + $0x8] sm:$0xff]  }
 0x304   : > { %3679 = vmatprep.subr.bf16.mxu0 %v4078_v12  ;;  %3734 = vmatpush3.bf16.msra.mxu1 %v3983_v4 }
 0x305   : > { %3735 = vmatprep.subr.bf16.mxu1 %v4078_v12 }
 0x307   : > { %3680 = vmatpush3.bf16.msra.mxu0 %v3965_v56  ;;  %v3996_v56 = vld [vmem:[%s5072_s16 + $0x10] sm:$0xff]  }
 0x308   : > { %3681 = vmatprep.subr.bf16.mxu0 %v4078_v12  ;;  %3736 = vmatpush3.bf16.msra.mxu1 %v3984_v7  ;;  %v2711_v7 = vlaneseq }
 0x309   : > { %3737 = vmatprep.subr.bf16.mxu1 %v4078_v12 }
 0x30b   : > { %3682 = vmatpush3.bf16.msra.mxu0 %v3966_v57  ;;  %v3997_v57 = vld [vmem:[%s5072_s16 + $0x18] sm:$0xff]  }
 0x30c   : > { %3683 = vmatprep.subr.bf16.mxu0 %v4078_v12  ;;  %3738 = vmatpush3.bf16.msra.mxu1 %v3985_v8  ;;  %v2712_v8 = vshrl.u32 %v2711_v7, 7 }
 0x30d   : > { %3743 = vmatprep.subr.bf16.mxu1 %v4078_v12 }
 0x30f   : > { %3684 = vmatpush3.bf16.msra.mxu0 %v3968_v58  ;;  %v3998_v58 = vld [vmem:[%s5072_s16 + $0x20] sm:$0xff]  }
 0x310   : > { %3685 = vmatprep.subr.bf16.mxu0 %v4078_v12 }
 0x313   : > { %3686 = vmatpush3.bf16.msra.mxu0 %v3969_v59  ;;  %v3999_v59 = vld [vmem:[%s5072_s16 + $0x28] sm:$0xff]  }
 0x316   : > { %3688 = vmatmul.mubr.bf16.vlgmr.msra.gmra.mrb[8].mxu0 %v2178_v18 }
 0x3c1   : > { %v4903_v40 = vpop.f32.mrb[40].mxu1 }
 0x3c2   : > { %v3721_v41 = vpop.f32.mrb[41].mxu1 }
 0x3c3   : > { %v4905_v42 = vpop.f32.mrb[42].mxu1 }
 0x3c4   : > { %v3722_v43 = vpop.f32.mrb[43].mxu1 }
 0x3e9   : > { %v2277_v14 = vpop.f32.mrb[8].mxu0 }
 0x3ea   : > { %v2293_v9 = vmul.f32 %v3138_v13, %v2277_v14  ;;  %v3689_v16 = vpop.f32.mrb[9].mxu0 }
 0x3eb   : > { %v2280_v10 = vpop.f32.mrb[10].mxu0 }
 0x3ec   : > { %v2302_v11 = vadd.f32 %v3139_v15, %v2293_v9  ;;  %v2294_v17 = vmul.f32 %v3138_v13, %v2280_v10  ;;  %v3690_v18 = vpop.f32.mrb[11].mxu0  ;;  %v2713_v13 = vsub.s32 0, %v2712_v8  ;;  %v4002_v10 = vld [vmem:[%s5075_s19] sm:$0xff]  }
 0x3ed   : > { %v4004_v18 = vld [vmem:[%s5075_s19 + $0x10] sm:$0xff]  }
 0x3ee   : > { %v2303_v19 = vadd.f32 %v3139_v15, %v2294_v17  ;;  %v2304_v20 = vmax.f32 %v2302_v11, 0.0  ;;  %v4003_v17 = vld [vmem:[%s5075_s19 + $0x8] sm:$0xff]  }
 0x3f0   : > { %v2305_v21 = vmax.f32 %v2303_v19, 0.0  ;;  %v4005_v19 = vld [vmem:[%s5075_s19 + $0x18] sm:$0xff]  }
 0x3f2   : > { %v4869_v22 = vpack.c.bf16 %v2305_v21, %v2304_v20  ;;  %v4006_v20 = vld [vmem:[%s5075_s19 + $0x20] sm:$0xff]   ;;  %v4007_v21 = vld [vmem:[%s5075_s19 + $0x28] sm:$0xff]  }
 0x3f4   : > { %v2482_v23 = vunpack.c.l.bf16 %v4869_v22  ;;  %v2483_v24 = vunpack.c.h.bf16 %v4869_v22  ;;  %v4008_v22 = vld [vmem:[%s5075_s19 + $0x30] sm:$0xff]  }
 0x3f6   : > { %v2484_v25 = vadd.f32 %v2483_v24, %v2482_v23 }
 0x3f8   : > { %v2485_v26 = vrot.slane %v2484_v25, 4 }
 0x3fa   : > { %v2486_v27 = vadd.f32 %v2485_v26, %v2484_v25  ;;  %v3177_v25 = vld [vmem:[%s5073_s17] ss:$0 sm:$0xff] }
 0x3fc   : > { %v2487_v28 = vrot.slane %v2486_v27, 2 }
 0x3fe   : > { %v2488_v29 = vadd.f32 %v2487_v28, %v2486_v27  ;;  %v3151_v27 = vld [vmem:[%s5067_s11] ss:$0 sm:$0xff] }
 0x400   : > { %v2489_v30 = vrot.slane %v2488_v29, 1 }
 0x402   : > { %v2490_v31 = vadd.f32 %v2489_v30, %v2488_v29 }
 0x404   : > { %v2491_v32 = vmul.f32 0.0625, %v2490_v31 }
 0x406   : > { %v2492_v34 = vpack.c.bf16 %v2491_v32, %v2491_v32 }
 0x408   : > { %3740 = vmatmul.mubr.bf16.vlgmr.msra.gmra.mrb[44].mxu1 %v2492_v34 }
 0x409   : > { %3744 = vmatpush3.bf16.msra.mxu1 %v3986_v33  ;;  %3759 = vmatprep.mubr.msk.bf16.mxu1 %vm4079_vm0, %v4078_v12 }
 0x40a   : > { %3745 = vmatprep.subr.bf16.mxu1 %v4078_v12 }
 0x40d   : > { %3746 = vmatpush3.bf16.msra.mxu1 %v3987_v35 }
 0x40e   : > { %3747 = vmatprep.subr.bf16.mxu1 %v4078_v12 }
 0x411   : > { %3748 = vmatpush3.bf16.msra.mxu1 %v3988_v36 }
 0x412   : > { %3749 = vmatprep.subr.bf16.mxu1 %v4078_v12 }
 0x415   : > { %3750 = vmatpush3.bf16.msra.mxu1 %v3989_v37 }
 0x416   : > { %3751 = vmatprep.subr.bf16.mxu1 %v4078_v12 }
 0x419   : > { %3752 = vmatpush3.bf16.msra.mxu1 %v3990_v38 }
 0x41a   : > { %3753 = vmatprep.subr.bf16.mxu1 %v4078_v12 }
 0x41d   : > { %3754 = vmatpush3.bf16.msra.mxu1 %v3991_v39 }
 0x41e   : > { %3755 = vmatprep.subr.bf16.mxu1 %v4078_v12 }
 0x421   : > { %3756 = vmatpush3.bf16.msra.mxu1 %v3992_v44 }
 0x422   : > { %3757 = vmatprep.subr.bf16.mxu1 %v4078_v12 }
 0x425   : > { %3758 = vmatpush3.bf16.msra.mxu1 %v3993_v45 }
 0x426   : > { %3763 = vmatprep.subr.bf16.mxu1 %v4078_v12 }
 0x4db   : > { %v2592_v47 = vpop.f32.mrb[44].mxu1 }
 0x4dc   : > { %v2593_v48 = vadd.f32 %v2592_v47, %v2509_v46  ;;  %v3741_v49 = vpop.f32.mrb[45].mxu1 }
 0x4dd   : > { %v2595_v50 = vpop.f32.mrb[46].mxu1 }
 0x4de   : > { %v2598_v51 = vmax.f32 %v2593_v48, 0.0  ;;  %v3742_v52 = vpop.f32.mrb[47].mxu1 }
 0x4df   : > { %v2870_v52 = vld [vmem:[%s5076_s20] sm:$0x1] }
 0x4e0   : > { %v2599_v53 = vpack.c.bf16 %v2598_v51, %v2598_v51 }
 0x4e2   : > { %3760 = vmatmul.mubr.bf16.vlgmr.msra.gmra.mrb[48].mxu1 %v2599_v53 }
 0x4e3   : > { %3779 = vmatprep.mubr.msk.bf16.mxu1 %vm4079_vm0, %v4078_v12  ;;  %3764 = vmatpush3.bf16.msra.mxu1 %v3994_v54 }
 0x4e4   : > { %3765 = vmatprep.subr.bf16.mxu1 %v4078_v12 }
 0x4e7   : > { %3766 = vmatpush3.bf16.msra.mxu1 %v3995_v55 }
 0x4e8   : > { %3767 = vmatprep.subr.bf16.mxu1 %v4078_v12 }
 0x4eb   : > { %3768 = vmatpush3.bf16.msra.mxu1 %v3996_v56 }
 0x4ec   : > { %3769 = vmatprep.subr.bf16.mxu1 %v4078_v12 }
 0x4ef   : > { %3770 = vmatpush3.bf16.msra.mxu1 %v3997_v57 }
 0x4f0   : > { %3771 = vmatprep.subr.bf16.mxu1 %v4078_v12 }
 0x4f3   : > { %3772 = vmatpush3.bf16.msra.mxu1 %v3998_v58 }
 0x4f4   : > { %3773 = vmatprep.subr.bf16.mxu1 %v4078_v12 }
 0x4f7   : > { %3774 = vmatpush3.bf16.msra.mxu1 %v3999_v59 }
 0x4f8   : > { %3775 = vmatprep.subr.bf16.mxu1 %v4078_v12 }
 0x4fb   : > { %3776 = vmatpush3.bf16.msra.mxu1 %v4000_v60 }
 0x4fc   : > { %3777 = vmatprep.subr.bf16.mxu1 %v4078_v12 }
 0x4ff   : > { %3778 = vmatpush3.bf16.msra.mxu1 %v4001_v61 }
 0x500   : > { %3783 = vmatprep.subr.bf16.mxu1 %v4078_v12 }
 0x5b5   : > { %v2699_v63 = vpop.f32.mrb[48].mxu1 }
 0x5b6   : > { %v2700_v0 = vadd.f32 %v2699_v63, %v2616_v62  ;;  %v3761_v1 = vpop.f32.mrb[49].mxu1 }
 0x5b7   : > { %v2702_v2 = vpop.f32.mrb[50].mxu1 }
 0x5b8   : > { %v3168_v3 = vmul.f32 -1.442695, %v2700_v0  ;;  %v3762_v5 = vpop.f32.mrb[51].mxu1 }
 0x5ba   : > { %4010 = vpow2.f32 %v3168_v3 }
 0x5c4   : > { %v4011_v6 = vpop.eup %4010 }
 0x5c5   : > { %v2708_v4 = vadd.f32 1.0, %v4011_v6 }
 0x5c7   : > { %4012 = vrcp.f32 %v2708_v4 }
 0x5d1   : > { %v4013_v14 = vpop.eup %4012 }
 0x5d2   : > { %v2714_v15 = vrot.slane %v4013_v14, %v2713_v13 }
 0x5d4   : > { %v2715_v9 = vmul.f32 %v2714_v15, %v2482_v23  ;;  %v2716_v16 = vmul.f32 %v2714_v15, %v2483_v24  ;;  %v4009_v23 = vld [vmem:[%s5075_s19 + $0x38] sm:$0xff]   ;;  %v3150_v24 = vld [vmem:[%s5066_s10] ss:$0 sm:$0xff] }
 0x5d5   : > { %v2471_v26 = vmul.f32 %v3150_v24, %v4903_v40  ;;  %v2472_v29 = vmul.f32 %v3150_v24, %v4905_v42 }
 0x5d6   : > { %v2717_v11 = vpack.c.bf16 %v2716_v16, %v2715_v9 }
 0x5d7   : > { %v2480_v33 = vadd.f32 %v3151_v27, %v2471_v26  ;;  %v2481_v37 = vadd.f32 %v3151_v27, %v2472_v29 }
 0x5d8   : > { %3780 = vmatmul.mubr.bf16.vlgmr.msra.gmra.mrb[52].mxu1 %v2717_v11 }
 0x5d9   : > { %3784 = vmatpush3.bf16.msra.mxu1 %v4002_v10  ;;  %3799 = vmatprep.mubr.msk.bf16.mxu1 %vm4079_vm0, %v4078_v12 }
 0x5da   : > { %3785 = vmatprep.subr.bf16.mxu1 %v4078_v12 }
 0x5dd   : > { %3786 = vmatpush3.bf16.msra.mxu1 %v4003_v17 }
 0x5de   : > { %3787 = vmatprep.subr.bf16.mxu1 %v4078_v12 }
 0x5e1   : > { %3788 = vmatpush3.bf16.msra.mxu1 %v4004_v18 }
 0x5e2   : > { %3789 = vmatprep.subr.bf16.mxu1 %v4078_v12 }
 0x5e5   : > { %3790 = vmatpush3.bf16.msra.mxu1 %v4005_v19 }
 0x5e6   : > { %3791 = vmatprep.subr.bf16.mxu1 %v4078_v12 }
 0x5e9   : > { %3792 = vmatpush3.bf16.msra.mxu1 %v4006_v20 }
 0x5ea   : > { %3793 = vmatprep.subr.bf16.mxu1 %v4078_v12 }
 0x5ed   : > { %3794 = vmatpush3.bf16.msra.mxu1 %v4007_v21 }
 0x5ee   : > { %3795 = vmatprep.subr.bf16.mxu1 %v4078_v12 }
 0x5f1   : > { %3796 = vmatpush3.bf16.msra.mxu1 %v4008_v22 }
 0x5f2   : > { %3797 = vmatprep.subr.bf16.mxu1 %v4078_v12  ;;  %v3178_v12 = vld [vmem:[%s5074_s18] ss:$0 sm:$0xff] }
 0x5f5   : > { %3798 = vmatpush3.bf16.msra.mxu1 %v4009_v23 }
 0x6ab   : > { %v2816_v28 = vpop.f32.mrb[52].mxu1 }
 0x6ac   : > { %v2830_v30 = vmul.f32 %v3177_v25, %v2816_v28  ;;  %v3781_v31 = vpop.f32.mrb[53].mxu1 }
 0x6ad   : > { %v2819_v32 = vpop.f32.mrb[54].mxu1 }
 0x6ae   : > { %v2839_v34 = vadd.f32 %v3178_v12, %v2830_v30  ;;  %v2831_v35 = vmul.f32 %v3177_v25, %v2819_v32  ;;  %v3782_v36 = vpop.f32.mrb[55].mxu1 }
 0x6b0   : > { %v2841_v38 = vadd.f32 %v2839_v34, %v2480_v33  ;;  %v2840_v39 = vadd.f32 %v3178_v12, %v2831_v35 }
 0x6b2   : > { %v2842_v40 = vadd.f32 %v2840_v39, %v2481_v37  ;;  %v2843_v41 = vmax.f32 %v2841_v38, 0.0 }
 0x6b4   : > { %v2844_v43 = vmax.f32 %v2842_v40, 0.0 }
 0x6b6   : > { %v2845_v44 = vadd.f32 %v2844_v43, %v2843_v41 }
 0x6b8   : > { %v2846_v45 = vrot.slane %v2845_v44, 4 }
 0x6ba   : > { %v2847_v46 = vadd.f32 %v2846_v45, %v2845_v44 }
 0x6bc   : > { %v2848_v47 = vrot.slane %v2847_v46, 2 }
 0x6be   : > { %v2849_v42 = vadd.f32 %v2848_v47, %v2847_v46 }
 0x6c0   : > { %v2850_v48 = vrot.slane %v2849_v42, 1 }
 0x6c2   : > { %v2851_v49 = vadd.f32 %v2850_v48, %v2849_v42 }
 0x6c4   : > { %v2852_v50 = vmul.f32 0.0625, %v2851_v49 }
 0x6c6   : > { %v2853_v51 = vpack.c.bf16 %v2852_v50, %v2852_v50 }
 0x6c8   : > { %3800 = vmatmul.mubr.bf16.vlgmr.msra.gmra.mrb[56].mxu1 %v2853_v51 }
 0x79b   : > { %v2953_v53 = vpop.f32.mrb[56].mxu1 }
 0x79c   : > { %v2954_v54 = vadd.f32 %v2953_v53, %v2870_v52  ;;  %v3801_v55 = vpop.f32.mrb[57].mxu1 }
 0x79d   : > { %v2956_v56 = vpop.f32.mrb[58].mxu1 }
 0x79e   : > { %2959 = vst [vmem:[%s648_s2] sm:$0x1] %v2954_v54  ;;  %v3802_v57 = vpop.f32.mrb[59].mxu1 }
 0x79f   : > { %4027 = shalt.err (!%p4024_p3)
}
 0x7a0   : > { %s4028_s28 = scalar_lea.hbm %s5014_s23, 16  ;;  %s4032_s22 = scalar_lea.hbm %s5109_s4, 32 }
 0x7a1   : > { %p4029_p4 = scmp.ne.s32.totalorder %s5014_s23, %s4028_s28  ;;  %p4033_p9 = scmp.lt.u32.totalorder %s5014_s23, %s5109_s4 }
 0x7a2   : > { %p4034_p10 = scmp.lt.u32.totalorder %s4032_s22, %s4028_s28  ;;  %p4036_p12 = scmp.lt.u32.totalorder %s4028_s28, %s5014_s23 }
 0x7a3   : > { %p4030_p7 = pnand %p4029_p4, %p4229_p5 }
 0x7a4   : > { %p4035_p11 = por %p4034_p10, %p4033_p9 }
 0x7a5   : > { %p4031_p8 = pneg %p4030_p7 }
 0x7a6   : > { %p4037_p13 = por %p4036_p12, %p4035_p11 }
 0x7a8   : > { %p4038_p0 = pnand %p4037_p13, %p4031_p8 }
 0x7aa   : > { %4041 = shalt.err (!%p4038_p0)
}
 0x7ab   : > { %3835 = dma.vmem_to_hbm [thread:$0]  (%p4229_p5), %s5016_s27, 16, %s5014_s23, %s2961_s1  }
 0x7ac PF: > { %s5110_s3 = sld [smem:[#allocation7_spill]]  ;;  %s5111_s29 = sld [smem:[#allocation5_spill]] }
 0x7b2   : > { %p3841_p1 = scmp.ge.s32.totalorder %s5110_s3, 2  ;;  %s2985_s2 = sand.u32 1, %s5111_s29  }
 0x7b3   : > { %s2986_s0 = scalar_lea.sflag [#allocation3], %s2985_s2 }
 0x7b4   : > { %p3838_p2 = pnand %p3841_p1, %p4233_p6 }
 0x7b6   : > { %4059 = dma.done.wait (!%p3838_p2), %s2986_s0, 16  }
 0x7b7   : > { %4061 = vsyncadd (!%p3838_p2), %s2986_s0, 4294967280  ;;  %s5113_s27 = sld [smem:[#allocation8_spill]]  ;;  %s5114_s28 = sld [smem:[#allocation6_spill]] }
 0x7b8   : > { %s5115_s26 = sld [smem:[#allocation9_spill]]  ;;  %s5116_s2 = smov %s4068_s25 }
 0x7bd   : > { %p31_p3 = scmp.ge.s32.totalorder %s5113_s27, 4   ;;  %s5117_s25 = smov %s5114_s28 }
 0x7bf   :  { %33 = sbr.rel (!%p31_p3) target bundleno = 11 (0xb), region = 139 }
 0x7c6   :  { %2990 = vsyncpa [#allocation3], 1 }
 0x7c7   :  { %2992 = vsyncpa [#allocation3 + $0x1], 1 }

</bundles_post_ra>
